<compile_context>
chip_gen: v7x
topology: tpu7x:2x2x1
jax: 0.10.0
libtpu: 0.0.40
codegen_flags: <defaults>
</compile_context>

<pallas_src>
import functools

import jax
import jax.numpy as jnp
import numpy as np
from jax import lax
from jax.experimental import pallas as pl
from jax.experimental.pallas import tpu as pltpu


def _round_up(x, m):
    return (x + m - 1) // m * m


# ------------------------- fused Encoder kernel -------------------------

def _encoder_kernel(xw_ref, w1_ref, w2_ref, g1_ref, b1_ref, g2_ref, b2_ref,
                    p1_ref, p2_ref, mask_ref, o_ref, *,
                    offsets, shift, eps, count1, count2):
    lc = o_ref.shape[-1]          # lane-padded flat length used for compute/stores
    lx = xw_ref.shape[-1]         # lane-padded flat length of the input buffers
    mask = mask_ref[...]          # (1, lc): 1.0 at real output voxels, 0.0 elsewhere

    # ---- fused MaxPool3d(2,2,2): reduce the 8 window elements (axis 1) ----
    x = jnp.max(xw_ref[...], axis=1)              # (Cin, lx) zero-padded flat volume

    def conv_taps(src, w_ref):
        # Implicit GEMM: 27 statically shifted lane slices, each a small matmul,
        # accumulated in f32.  src: (Ci, lx), w_ref: (27, Co, Ci) -> (Co, lc).
        cout = w_ref.shape[1]
        acc = jnp.zeros((cout, lc), jnp.float32)
        for t, off in enumerate(offsets):
            acc = acc + jnp.dot(w_ref[t], src[:, off:off + lc],
                                preferred_element_type=jnp.float32)
        return acc

    def relu_gn(y, p_ref, g_ref, b_ref, count):
        # ReLU + GroupNorm epilogue.  Group sums via a (C, C) same-group matmul
        # (no in-kernel reshapes); padded/garbage positions masked out of stats.
        y = jnp.maximum(y, 0.0)
        ym = y * mask
        gsum = jnp.dot(p_ref[...], ym, preferred_element_type=jnp.float32)
        gsq = jnp.dot(p_ref[...], ym * ym, preferred_element_type=jnp.float32)
        s1 = jnp.sum(gsum, axis=1, keepdims=True)      # (C, 1) per-channel group sum
        s2 = jnp.sum(gsq, axis=1, keepdims=True)       # (C, 1) per-channel group sumsq
        mean = s1 * (1.0 / count)
        var = s2 * (1.0 / count) - mean * mean         # biased variance (PyTorch GN)
        inv = lax.rsqrt(var + eps)
        return ((y - mean) * inv) * g_ref[...] + b_ref[...]

    # ---- SingleConv1: conv -> ReLU -> GroupNorm ----
    h1 = relu_gn(conv_taps(x, w1_ref), p1_ref, g1_ref, b1_ref, count1)   # (C1, lc)

    # Re-zero the conv padding ring and shift by one padded voxel (+shift) so the
    # layer-1 output sits in the same zero-padded flat layout that the taps expect.
    c1 = h1.shape[0]
    pieces = [jnp.zeros((c1, shift), jnp.float32), h1 * mask]
    tail = lx - lc - shift
    if tail > 0:
        pieces.append(jnp.zeros((c1, tail), jnp.float32))
    h1 = jnp.concatenate(pieces, axis=1)                                 # (C1, lx)

    # ---- SingleConv2: conv -> ReLU -> GroupNorm ----
    h2 = relu_gn(conv_taps(h1, w2_ref), p2_ref, g2_ref, b2_ref, count2)  # (C2, lc)
    o_ref[...] = h2.astype(o_ref.dtype)


# ------------------------------- wrapper --------------------------------

def encoder_forward(x, params, num_groups=8, eps=1e-5):
    """Encoder.forward: MaxPool3d(2) -> (Conv3d->ReLU->GN) x 2, one fused kernel."""
    N, Cin, D0, H0, W0 = x.shape
    D, H, W = D0 // 2, H0 // 2, W0 // 2          # pooled spatial extents
    Dp, Hp, Wp = D + 2, H + 2, W + 2             # conv zero-padded extents
    L = Dp * Hp * Wp                             # flat padded volume length
    Lc = _round_up(L, 128)                       # lane-dense compute/store width
    shift = Hp * Wp + Wp + 1                     # flat offset of voxel (1,1,1)
    max_off = 2 * shift                          # largest 3x3x3 tap offset
    Lx = _round_up(Lc + max_off, 128)            # input-buffer width

    w1, w2 = params["w1"], params["w2"]
    C1, C2 = w1.shape[0], w2.shape[0]
    G1, G2 = min(num_groups, C1), min(num_groups, C2)

    # glue: put the 8 pooling-window elements on a leading axis and embed the
    # volume in the zero-padded flat conv layout (single XLA transpose/pad pass).
    xw = x.reshape(N, Cin, D, 2, H, 2, W, 2).transpose(0, 1, 3, 5, 7, 2, 4, 6)
    xw = xw.reshape(N, Cin, 8, D, H, W)
    xw = jnp.pad(xw, ((0, 0), (0, 0), (0, 0), (1, 1), (1, 1), (1, 1)))
    xw = xw.reshape(N, Cin, 8, L)
    xw = jnp.pad(xw, ((0, 0), (0, 0), (0, 0), (0, Lx - L)))

    # glue: static parameter packing.
    def prep_w(w):                               # (Co,Ci,3,3,3) -> (27, Co, Ci)
        co, ci = w.shape[0], w.shape[1]
        return w.transpose(2, 3, 4, 0, 1).reshape(27, co, ci)

    def group_mat(c, g):                         # (C, C) 0/1 same-group matrix
        gid = np.arange(c) // (c // g)
        return jnp.asarray((gid[:, None] == gid[None, :]).astype(np.float32))

    w1t, w2t = prep_w(w1), prep_w(w2)
    p1, p2 = group_mat(C1, G1), group_mat(C2, G2)
    g1 = params["g1"].reshape(C1, 1)
    b1 = params["b1"].reshape(C1, 1)
    g2 = params["g2"].reshape(C2, 1)
    b2 = params["b2"].reshape(C2, 1)

    mask_np = np.zeros((Dp, Hp, Wp), np.float32)
    mask_np[:D, :H, :W] = 1.0
    mask = np.zeros((1, Lc), np.float32)
    mask[0, :L] = mask_np.reshape(-1)
    mask = jnp.asarray(mask)

    offsets = tuple(kd * Hp * Wp + kh * Wp + kw
                    for kd in range(3) for kh in range(3) for kw in range(3))
    count1 = float((C1 // G1) * D * H * W)
    count2 = float((C2 // G2) * D * H * W)

    kernel = functools.partial(
        _encoder_kernel, offsets=offsets, shift=shift, eps=eps,
        count1=count1, count2=count2)

    out_flat = pl.pallas_call(
        kernel,
        out_shape=jax.ShapeDtypeStruct((N, C2, Lc), x.dtype),
        grid=(N,),
        in_specs=[
            pl.BlockSpec((None, Cin, 8, Lx), lambda n: (n, 0, 0, 0)),
            pl.BlockSpec((27, C1, Cin), lambda n: (0, 0, 0)),
            pl.BlockSpec((27, C2, C1), lambda n: (0, 0, 0)),
            pl.BlockSpec((C1, 1), lambda n: (0, 0)),
            pl.BlockSpec((C1, 1), lambda n: (0, 0)),
            pl.BlockSpec((C2, 1), lambda n: (0, 0)),
            pl.BlockSpec((C2, 1), lambda n: (0, 0)),
            pl.BlockSpec((C1, C1), lambda n: (0, 0)),
            pl.BlockSpec((C2, C2), lambda n: (0, 0)),
            pl.BlockSpec((1, Lc), lambda n: (0, 0)),
        ],
        out_specs=pl.BlockSpec((None, C2, Lc), lambda n: (n, 0, 0)),
        compiler_params=pltpu.CompilerParams(
            dimension_semantics=("parallel",)),
    )(xw, w1t, w2t, g1, b1, g2, b2, p1, p2, mask)

    # glue: pull the real voxels out of the lane-padded flat layout.
    out = out_flat[:, :, :L].reshape(N, C2, Dp, Hp, Wp)[:, :, :D, :H, :W]
    return out


# ------------------------------ reference -------------------------------

def ref_forward(x, params, num_groups=8):
    x = lax.reduce_window(x, -jnp.inf, lax.max,
                          (1, 1, 2, 2, 2), (1, 1, 2, 2, 2), "VALID")

    def conv(x, w):
        return lax.conv_general_dilated(
            x, w, (1, 1, 1), [(1, 1), (1, 1), (1, 1)],
            dimension_numbers=("NCDHW", "OIDHW", "NCDHW"),
            precision=lax.Precision.HIGHEST)

    def gn(x, gamma, beta, G):
        N, C, D, H, W = x.shape
        G = min(G, C)
        xr = x.reshape(N, G, -1)
        m = xr.mean(-1, keepdims=True)
        v = ((xr - m) ** 2).mean(-1, keepdims=True)
        xn = ((xr - m) / jnp.sqrt(v + 1e-5)).reshape(N, C, D, H, W)
        return xn * gamma.reshape(1, C, 1, 1, 1) + beta.reshape(1, C, 1, 1, 1)

    x = gn(jnp.maximum(conv(x, params["w1"]), 0.0), params["g1"], params["b1"], num_groups)
    x = gn(jnp.maximum(conv(x, params["w2"]), 0.0), params["g2"], params["b2"], num_groups)
    return x


# -------------------------------- main -----------------------------------

if __name__ == "__main__":
    # Encoder(in_channels=4, out_channels=32): conv1 4->16, conv2 16->32, groups=8
    in_channels, out_channels, num_groups = 4, 32, 8
    c1 = max(out_channels // 2, in_channels)   # 16
    c2 = out_channels                          # 32

    key = jax.random.PRNGKey(0)
    k1, k2, k3, k4, k5, k6, kx = jax.random.split(key, 7)
    params = {
        "w1": jax.random.normal(k1, (c1, in_channels, 3, 3, 3), jnp.float32) * 0.1,
        "g1": 1.0 + 0.1 * jax.random.normal(k2, (c1,), jnp.float32),
        "b1": 0.1 * jax.random.normal(k3, (c1,), jnp.float32),
        "w2": jax.random.normal(k4, (c2, c1, 3, 3, 3), jnp.float32) * 0.1,
        "g2": 1.0 + 0.1 * jax.random.normal(k5, (c2,), jnp.float32),
        "b2": 0.1 * jax.random.normal(k6, (c2,), jnp.float32),
    }

    # NCDHW input; spatial 8 -> 4 after pooling.
    x = jax.random.normal(kx, (2, in_channels, 8, 8, 8), jnp.float32)

    fwd = jax.jit(lambda xi, p: encoder_forward(xi, p, num_groups=num_groups))
    out = jax.block_until_ready(fwd(x, params))
    ref = jax.block_until_ready(ref_forward(x, params, num_groups))

    assert out.shape == (2, out_channels, 4, 4, 4), out.shape
    np.testing.assert_allclose(np.asarray(out), np.asarray(ref), rtol=2e-3, atol=2e-3)
    print("KERNEL_OK")
</pallas_src>

<mosaic_0001>
module attributes {stable_mosaic.version = 11 : i64} {
  func.func @_encoder_kernel(%arg0: i32, %arg1: memref<1x4x8x384xf32, #tpu.memory_space<vmem>>, %arg2: memref<27x16x4xf32, #tpu.memory_space<vmem>>, %arg3: memref<27x32x16xf32, #tpu.memory_space<vmem>>, %arg4: memref<16x1xf32, #tpu.memory_space<vmem>>, %arg5: memref<16x1xf32, #tpu.memory_space<vmem>>, %arg6: memref<32x1xf32, #tpu.memory_space<vmem>>, %arg7: memref<32x1xf32, #tpu.memory_space<vmem>>, %arg8: memref<16x16xf32, #tpu.memory_space<vmem>>, %arg9: memref<32x32xf32, #tpu.memory_space<vmem>>, %arg10: memref<1x256xf32, #tpu.memory_space<vmem>>, %arg11: memref<1x32x256xf32, #tpu.memory_space<vmem>>) attributes {dimension_semantics = [#tpu.dimension_semantics<parallel>], iteration_bounds = array<i64: 2>, scalar_prefetch = 0 : i64, scratch_operands = 0 : i64, tpu.core_type = #tpu.core_type<tc>, window_params = [{transform_indices = @transform_0, window_bounds = array<i64: 1, 4, 8, 384>}, {pipeline_mode = #tpu.pipeline_mode<synchronous>, transform_indices = @transform_1, window_bounds = array<i64: 27, 16, 4>}, {pipeline_mode = #tpu.pipeline_mode<synchronous>, transform_indices = @transform_2, window_bounds = array<i64: 27, 32, 16>}, {pipeline_mode = #tpu.pipeline_mode<synchronous>, transform_indices = @transform_3, window_bounds = array<i64: 16, 1>}, {pipeline_mode = #tpu.pipeline_mode<synchronous>, transform_indices = @transform_4, window_bounds = array<i64: 16, 1>}, {pipeline_mode = #tpu.pipeline_mode<synchronous>, transform_indices = @transform_5, window_bounds = array<i64: 32, 1>}, {pipeline_mode = #tpu.pipeline_mode<synchronous>, transform_indices = @transform_6, window_bounds = array<i64: 32, 1>}, {pipeline_mode = #tpu.pipeline_mode<synchronous>, transform_indices = @transform_7, window_bounds = array<i64: 16, 16>}, {pipeline_mode = #tpu.pipeline_mode<synchronous>, transform_indices = @transform_8, window_bounds = array<i64: 32, 32>}, {pipeline_mode = #tpu.pipeline_mode<synchronous>, transform_indices = @transform_9, window_bounds = array<i64: 1, 256>}, {transform_indices = @transform_10, window_bounds = array<i64: 1, 32, 256>}]} {
    %c0 = arith.constant 0 : index
    %c0_0 = arith.constant 0 : index
    %0 = vector.load %arg10[%c0, %c0_0] : memref<1x256xf32, #tpu.memory_space<vmem>>, vector<1x256xf32>
    %c0_1 = arith.constant 0 : index
    %c0_2 = arith.constant 0 : index
    %c0_3 = arith.constant 0 : index
    %c0_4 = arith.constant 0 : index
    %1 = vector.load %arg1[%c0_1, %c0_2, %c0_3, %c0_4] : memref<1x4x8x384xf32, #tpu.memory_space<vmem>>, vector<1x4x8x384xf32>
    %2 = vector.shape_cast %1 : vector<1x4x8x384xf32> to vector<4x8x384xf32>
    %cst = arith.constant dense<0xFF800000> : vector<4x384xf32>
    %3 = vector.multi_reduction <maximumf>, %2, %cst [1] : vector<4x8x384xf32> to vector<4x384xf32>
    %cst_5 = arith.constant 0.000000e+00 : f32
    %4 = vector.broadcast %cst_5 : f32 to vector<16x256xf32>
    %c0_6 = arith.constant 0 : index
    %c0_7 = arith.constant 0 : index
    %c0_8 = arith.constant 0 : index
    %5 = vector.load %arg2[%c0_6, %c0_7, %c0_8] : memref<27x16x4xf32, #tpu.memory_space<vmem>>, vector<1x16x4xf32>
    %6 = vector.shape_cast %5 : vector<1x16x4xf32> to vector<16x4xf32>
    %7 = vector.extract_strided_slice %3 {offsets = [0, 0], sizes = [4, 256], strides = [1, 1]} : vector<4x384xf32> to vector<4x256xf32>
    %cst_9 = arith.constant dense<0.000000e+00> : vector<16x256xf32>
    %8 = tpu.matmul %6, %7, %cst_9 {dimension_numbers = #tpu.dot_dimension_numbers<[1], [0], [0], [1], [0, 0, 1, 1], [], []>} : vector<16x4xf32>, vector<4x256xf32>, vector<16x256xf32> -> vector<16x256xf32>
    %9 = arith.addf %4, %8 : vector<16x256xf32>
    %c1 = arith.constant 1 : index
    %c0_10 = arith.constant 0 : index
    %c0_11 = arith.constant 0 : index
    %10 = vector.load %arg2[%c1, %c0_10, %c0_11] : memref<27x16x4xf32, #tpu.memory_space<vmem>>, vector<1x16x4xf32>
    %11 = vector.shape_cast %10 : vector<1x16x4xf32> to vector<16x4xf32>
    %12 = vector.extract_strided_slice %3 {offsets = [0, 1], sizes = [4, 256], strides = [1, 1]} : vector<4x384xf32> to vector<4x256xf32>
    %cst_12 = arith.constant dense<0.000000e+00> : vector<16x256xf32>
    %13 = tpu.matmul %11, %12, %cst_12 {dimension_numbers = #tpu.dot_dimension_numbers<[1], [0], [0], [1], [0, 0, 1, 1], [], []>} : vector<16x4xf32>, vector<4x256xf32>, vector<16x256xf32> -> vector<16x256xf32>
    %14 = arith.addf %9, %13 : vector<16x256xf32>
    %c2 = arith.constant 2 : index
    %c0_13 = arith.constant 0 : index
    %c0_14 = arith.constant 0 : index
    %15 = vector.load %arg2[%c2, %c0_13, %c0_14] : memref<27x16x4xf32, #tpu.memory_space<vmem>>, vector<1x16x4xf32>
    %16 = vector.shape_cast %15 : vector<1x16x4xf32> to vector<16x4xf32>
    %17 = vector.extract_strided_slice %3 {offsets = [0, 2], sizes = [4, 256], strides = [1, 1]} : vector<4x384xf32> to vector<4x256xf32>
    %cst_15 = arith.constant dense<0.000000e+00> : vector<16x256xf32>
    %18 = tpu.matmul %16, %17, %cst_15 {dimension_numbers = #tpu.dot_dimension_numbers<[1], [0], [0], [1], [0, 0, 1, 1], [], []>} : vector<16x4xf32>, vector<4x256xf32>, vector<16x256xf32> -> vector<16x256xf32>
    %19 = arith.addf %14, %18 : vector<16x256xf32>
    %c3 = arith.constant 3 : index
    %c0_16 = arith.constant 0 : index
    %c0_17 = arith.constant 0 : index
    %20 = vector.load %arg2[%c3, %c0_16, %c0_17] : memref<27x16x4xf32, #tpu.memory_space<vmem>>, vector<1x16x4xf32>
    %21 = vector.shape_cast %20 : vector<1x16x4xf32> to vector<16x4xf32>
    %22 = vector.extract_strided_slice %3 {offsets = [0, 6], sizes = [4, 256], strides = [1, 1]} : vector<4x384xf32> to vector<4x256xf32>
    %cst_18 = arith.constant dense<0.000000e+00> : vector<16x256xf32>
    %23 = tpu.matmul %21, %22, %cst_18 {dimension_numbers = #tpu.dot_dimension_numbers<[1], [0], [0], [1], [0, 0, 1, 1], [], []>} : vector<16x4xf32>, vector<4x256xf32>, vector<16x256xf32> -> vector<16x256xf32>
    %24 = arith.addf %19, %23 : vector<16x256xf32>
    %c4 = arith.constant 4 : index
    %c0_19 = arith.constant 0 : index
    %c0_20 = arith.constant 0 : index
    %25 = vector.load %arg2[%c4, %c0_19, %c0_20] : memref<27x16x4xf32, #tpu.memory_space<vmem>>, vector<1x16x4xf32>
    %26 = vector.shape_cast %25 : vector<1x16x4xf32> to vector<16x4xf32>
    %27 = vector.extract_strided_slice %3 {offsets = [0, 7], sizes = [4, 256], strides = [1, 1]} : vector<4x384xf32> to vector<4x256xf32>
    %cst_21 = arith.constant dense<0.000000e+00> : vector<16x256xf32>
    %28 = tpu.matmul %26, %27, %cst_21 {dimension_numbers = #tpu.dot_dimension_numbers<[1], [0], [0], [1], [0, 0, 1, 1], [], []>} : vector<16x4xf32>, vector<4x256xf32>, vector<16x256xf32> -> vector<16x256xf32>
    %29 = arith.addf %24, %28 : vector<16x256xf32>
    %c5 = arith.constant 5 : index
    %c0_22 = arith.constant 0 : index
    %c0_23 = arith.constant 0 : index
    %30 = vector.load %arg2[%c5, %c0_22, %c0_23] : memref<27x16x4xf32, #tpu.memory_space<vmem>>, vector<1x16x4xf32>
    %31 = vector.shape_cast %30 : vector<1x16x4xf32> to vector<16x4xf32>
    %32 = vector.extract_strided_slice %3 {offsets = [0, 8], sizes = [4, 256], strides = [1, 1]} : vector<4x384xf32> to vector<4x256xf32>
    %cst_24 = arith.constant dense<0.000000e+00> : vector<16x256xf32>
    %33 = tpu.matmul %31, %32, %cst_24 {dimension_numbers = #tpu.dot_dimension_numbers<[1], [0], [0], [1], [0, 0, 1, 1], [], []>} : vector<16x4xf32>, vector<4x256xf32>, vector<16x256xf32> -> vector<16x256xf32>
    %34 = arith.addf %29, %33 : vector<16x256xf32>
    %c6 = arith.constant 6 : index
    %c0_25 = arith.constant 0 : index
    %c0_26 = arith.constant 0 : index
    %35 = vector.load %arg2[%c6, %c0_25, %c0_26] : memref<27x16x4xf32, #tpu.memory_space<vmem>>, vector<1x16x4xf32>
    %36 = vector.shape_cast %35 : vector<1x16x4xf32> to vector<16x4xf32>
    %37 = vector.extract_strided_slice %3 {offsets = [0, 12], sizes = [4, 256], strides = [1, 1]} : vector<4x384xf32> to vector<4x256xf32>
    %cst_27 = arith.constant dense<0.000000e+00> : vector<16x256xf32>
    %38 = tpu.matmul %36, %37, %cst_27 {dimension_numbers = #tpu.dot_dimension_numbers<[1], [0], [0], [1], [0, 0, 1, 1], [], []>} : vector<16x4xf32>, vector<4x256xf32>, vector<16x256xf32> -> vector<16x256xf32>
    %39 = arith.addf %34, %38 : vector<16x256xf32>
    %c7 = arith.constant 7 : index
    %c0_28 = arith.constant 0 : index
    %c0_29 = arith.constant 0 : index
    %40 = vector.load %arg2[%c7, %c0_28, %c0_29] : memref<27x16x4xf32, #tpu.memory_space<vmem>>, vector<1x16x4xf32>
    %41 = vector.shape_cast %40 : vector<1x16x4xf32> to vector<16x4xf32>
    %42 = vector.extract_strided_slice %3 {offsets = [0, 13], sizes = [4, 256], strides = [1, 1]} : vector<4x384xf32> to vector<4x256xf32>
    %cst_30 = arith.constant dense<0.000000e+00> : vector<16x256xf32>
    %43 = tpu.matmul %41, %42, %cst_30 {dimension_numbers = #tpu.dot_dimension_numbers<[1], [0], [0], [1], [0, 0, 1, 1], [], []>} : vector<16x4xf32>, vector<4x256xf32>, vector<16x256xf32> -> vector<16x256xf32>
    %44 = arith.addf %39, %43 : vector<16x256xf32>
    %c8 = arith.constant 8 : index
    %c0_31 = arith.constant 0 : index
    %c0_32 = arith.constant 0 : index
    %45 = vector.load %arg2[%c8, %c0_31, %c0_32] : memref<27x16x4xf32, #tpu.memory_space<vmem>>, vector<1x16x4xf32>
    %46 = vector.shape_cast %45 : vector<1x16x4xf32> to vector<16x4xf32>
    %47 = vector.extract_strided_slice %3 {offsets = [0, 14], sizes = [4, 256], strides = [1, 1]} : vector<4x384xf32> to vector<4x256xf32>
    %cst_33 = arith.constant dense<0.000000e+00> : vector<16x256xf32>
    %48 = tpu.matmul %46, %47, %cst_33 {dimension_numbers = #tpu.dot_dimension_numbers<[1], [0], [0], [1], [0, 0, 1, 1], [], []>} : vector<16x4xf32>, vector<4x256xf32>, vector<16x256xf32> -> vector<16x256xf32>
    %49 = arith.addf %44, %48 : vector<16x256xf32>
    %c9 = arith.constant 9 : index
    %c0_34 = arith.constant 0 : index
    %c0_35 = arith.constant 0 : index
    %50 = vector.load %arg2[%c9, %c0_34, %c0_35] : memref<27x16x4xf32, #tpu.memory_space<vmem>>, vector<1x16x4xf32>
    %51 = vector.shape_cast %50 : vector<1x16x4xf32> to vector<16x4xf32>
    %52 = vector.extract_strided_slice %3 {offsets = [0, 36], sizes = [4, 256], strides = [1, 1]} : vector<4x384xf32> to vector<4x256xf32>
    %cst_36 = arith.constant dense<0.000000e+00> : vector<16x256xf32>
    %53 = tpu.matmul %51, %52, %cst_36 {dimension_numbers = #tpu.dot_dimension_numbers<[1], [0], [0], [1], [0, 0, 1, 1], [], []>} : vector<16x4xf32>, vector<4x256xf32>, vector<16x256xf32> -> vector<16x256xf32>
    %54 = arith.addf %49, %53 : vector<16x256xf32>
    %c10 = arith.constant 10 : index
    %c0_37 = arith.constant 0 : index
    %c0_38 = arith.constant 0 : index
    %55 = vector.load %arg2[%c10, %c0_37, %c0_38] : memref<27x16x4xf32, #tpu.memory_space<vmem>>, vector<1x16x4xf32>
    %56 = vector.shape_cast %55 : vector<1x16x4xf32> to vector<16x4xf32>
    %57 = vector.extract_strided_slice %3 {offsets = [0, 37], sizes = [4, 256], strides = [1, 1]} : vector<4x384xf32> to vector<4x256xf32>
    %cst_39 = arith.constant dense<0.000000e+00> : vector<16x256xf32>
    %58 = tpu.matmul %56, %57, %cst_39 {dimension_numbers = #tpu.dot_dimension_numbers<[1], [0], [0], [1], [0, 0, 1, 1], [], []>} : vector<16x4xf32>, vector<4x256xf32>, vector<16x256xf32> -> vector<16x256xf32>
    %59 = arith.addf %54, %58 : vector<16x256xf32>
    %c11 = arith.constant 11 : index
    %c0_40 = arith.constant 0 : index
    %c0_41 = arith.constant 0 : index
    %60 = vector.load %arg2[%c11, %c0_40, %c0_41] : memref<27x16x4xf32, #tpu.memory_space<vmem>>, vector<1x16x4xf32>
    %61 = vector.shape_cast %60 : vector<1x16x4xf32> to vector<16x4xf32>
    %62 = vector.extract_strided_slice %3 {offsets = [0, 38], sizes = [4, 256], strides = [1, 1]} : vector<4x384xf32> to vector<4x256xf32>
    %cst_42 = arith.constant dense<0.000000e+00> : vector<16x256xf32>
    %63 = tpu.matmul %61, %62, %cst_42 {dimension_numbers = #tpu.dot_dimension_numbers<[1], [0], [0], [1], [0, 0, 1, 1], [], []>} : vector<16x4xf32>, vector<4x256xf32>, vector<16x256xf32> -> vector<16x256xf32>
    %64 = arith.addf %59, %63 : vector<16x256xf32>
    %c12 = arith.constant 12 : index
    %c0_43 = arith.constant 0 : index
    %c0_44 = arith.constant 0 : index
    %65 = vector.load %arg2[%c12, %c0_43, %c0_44] : memref<27x16x4xf32, #tpu.memory_space<vmem>>, vector<1x16x4xf32>
    %66 = vector.shape_cast %65 : vector<1x16x4xf32> to vector<16x4xf32>
    %67 = vector.extract_strided_slice %3 {offsets = [0, 42], sizes = [4, 256], strides = [1, 1]} : vector<4x384xf32> to vector<4x256xf32>
    %cst_45 = arith.constant dense<0.000000e+00> : vector<16x256xf32>
    %68 = tpu.matmul %66, %67, %cst_45 {dimension_numbers = #tpu.dot_dimension_numbers<[1], [0], [0], [1], [0, 0, 1, 1], [], []>} : vector<16x4xf32>, vector<4x256xf32>, vector<16x256xf32> -> vector<16x256xf32>
    %69 = arith.addf %64, %68 : vector<16x256xf32>
    %c13 = arith.constant 13 : index
    %c0_46 = arith.constant 0 : index
    %c0_47 = arith.constant 0 : index
    %70 = vector.load %arg2[%c13, %c0_46, %c0_47] : memref<27x16x4xf32, #tpu.memory_space<vmem>>, vector<1x16x4xf32>
    %71 = vector.shape_cast %70 : vector<1x16x4xf32> to vector<16x4xf32>
    %72 = vector.extract_strided_slice %3 {offsets = [0, 43], sizes = [4, 256], strides = [1, 1]} : vector<4x384xf32> to vector<4x256xf32>
    %cst_48 = arith.constant dense<0.000000e+00> : vector<16x256xf32>
    %73 = tpu.matmul %71, %72, %cst_48 {dimension_numbers = #tpu.dot_dimension_numbers<[1], [0], [0], [1], [0, 0, 1, 1], [], []>} : vector<16x4xf32>, vector<4x256xf32>, vector<16x256xf32> -> vector<16x256xf32>
    %74 = arith.addf %69, %73 : vector<16x256xf32>
    %c14 = arith.constant 14 : index
    %c0_49 = arith.constant 0 : index
    %c0_50 = arith.constant 0 : index
    %75 = vector.load %arg2[%c14, %c0_49, %c0_50] : memref<27x16x4xf32, #tpu.memory_space<vmem>>, vector<1x16x4xf32>
    %76 = vector.shape_cast %75 : vector<1x16x4xf32> to vector<16x4xf32>
    %77 = vector.extract_strided_slice %3 {offsets = [0, 44], sizes = [4, 256], strides = [1, 1]} : vector<4x384xf32> to vector<4x256xf32>
    %cst_51 = arith.constant dense<0.000000e+00> : vector<16x256xf32>
    %78 = tpu.matmul %76, %77, %cst_51 {dimension_numbers = #tpu.dot_dimension_numbers<[1], [0], [0], [1], [0, 0, 1, 1], [], []>} : vector<16x4xf32>, vector<4x256xf32>, vector<16x256xf32> -> vector<16x256xf32>
    %79 = arith.addf %74, %78 : vector<16x256xf32>
    %c15 = arith.constant 15 : index
    %c0_52 = arith.constant 0 : index
    %c0_53 = arith.constant 0 : index
    %80 = vector.load %arg2[%c15, %c0_52, %c0_53] : memref<27x16x4xf32, #tpu.memory_space<vmem>>, vector<1x16x4xf32>
    %81 = vector.shape_cast %80 : vector<1x16x4xf32> to vector<16x4xf32>
    %82 = vector.extract_strided_slice %3 {offsets = [0, 48], sizes = [4, 256], strides = [1, 1]} : vector<4x384xf32> to vector<4x256xf32>
    %cst_54 = arith.constant dense<0.000000e+00> : vector<16x256xf32>
    %83 = tpu.matmul %81, %82, %cst_54 {dimension_numbers = #tpu.dot_dimension_numbers<[1], [0], [0], [1], [0, 0, 1, 1], [], []>} : vector<16x4xf32>, vector<4x256xf32>, vector<16x256xf32> -> vector<16x256xf32>
    %84 = arith.addf %79, %83 : vector<16x256xf32>
    %c16 = arith.constant 16 : index
    %c0_55 = arith.constant 0 : index
    %c0_56 = arith.constant 0 : index
    %85 = vector.load %arg2[%c16, %c0_55, %c0_56] : memref<27x16x4xf32, #tpu.memory_space<vmem>>, vector<1x16x4xf32>
    %86 = vector.shape_cast %85 : vector<1x16x4xf32> to vector<16x4xf32>
    %87 = vector.extract_strided_slice %3 {offsets = [0, 49], sizes = [4, 256], strides = [1, 1]} : vector<4x384xf32> to vector<4x256xf32>
    %cst_57 = arith.constant dense<0.000000e+00> : vector<16x256xf32>
    %88 = tpu.matmul %86, %87, %cst_57 {dimension_numbers = #tpu.dot_dimension_numbers<[1], [0], [0], [1], [0, 0, 1, 1], [], []>} : vector<16x4xf32>, vector<4x256xf32>, vector<16x256xf32> -> vector<16x256xf32>
    %89 = arith.addf %84, %88 : vector<16x256xf32>
    %c17 = arith.constant 17 : index
    %c0_58 = arith.constant 0 : index
    %c0_59 = arith.constant 0 : index
    %90 = vector.load %arg2[%c17, %c0_58, %c0_59] : memref<27x16x4xf32, #tpu.memory_space<vmem>>, vector<1x16x4xf32>
    %91 = vector.shape_cast %90 : vector<1x16x4xf32> to vector<16x4xf32>
    %92 = vector.extract_strided_slice %3 {offsets = [0, 50], sizes = [4, 256], strides = [1, 1]} : vector<4x384xf32> to vector<4x256xf32>
    %cst_60 = arith.constant dense<0.000000e+00> : vector<16x256xf32>
    %93 = tpu.matmul %91, %92, %cst_60 {dimension_numbers = #tpu.dot_dimension_numbers<[1], [0], [0], [1], [0, 0, 1, 1], [], []>} : vector<16x4xf32>, vector<4x256xf32>, vector<16x256xf32> -> vector<16x256xf32>
    %94 = arith.addf %89, %93 : vector<16x256xf32>
    %c18 = arith.constant 18 : index
    %c0_61 = arith.constant 0 : index
    %c0_62 = arith.constant 0 : index
    %95 = vector.load %arg2[%c18, %c0_61, %c0_62] : memref<27x16x4xf32, #tpu.memory_space<vmem>>, vector<1x16x4xf32>
    %96 = vector.shape_cast %95 : vector<1x16x4xf32> to vector<16x4xf32>
    %97 = vector.extract_strided_slice %3 {offsets = [0, 72], sizes = [4, 256], strides = [1, 1]} : vector<4x384xf32> to vector<4x256xf32>
    %cst_63 = arith.constant dense<0.000000e+00> : vector<16x256xf32>
    %98 = tpu.matmul %96, %97, %cst_63 {dimension_numbers = #tpu.dot_dimension_numbers<[1], [0], [0], [1], [0, 0, 1, 1], [], []>} : vector<16x4xf32>, vector<4x256xf32>, vector<16x256xf32> -> vector<16x256xf32>
    %99 = arith.addf %94, %98 : vector<16x256xf32>
    %c19 = arith.constant 19 : index
    %c0_64 = arith.constant 0 : index
    %c0_65 = arith.constant 0 : index
    %100 = vector.load %arg2[%c19, %c0_64, %c0_65] : memref<27x16x4xf32, #tpu.memory_space<vmem>>, vector<1x16x4xf32>
    %101 = vector.shape_cast %100 : vector<1x16x4xf32> to vector<16x4xf32>
    %102 = vector.extract_strided_slice %3 {offsets = [0, 73], sizes = [4, 256], strides = [1, 1]} : vector<4x384xf32> to vector<4x256xf32>
    %cst_66 = arith.constant dense<0.000000e+00> : vector<16x256xf32>
    %103 = tpu.matmul %101, %102, %cst_66 {dimension_numbers = #tpu.dot_dimension_numbers<[1], [0], [0], [1], [0, 0, 1, 1], [], []>} : vector<16x4xf32>, vector<4x256xf32>, vector<16x256xf32> -> vector<16x256xf32>
    %104 = arith.addf %99, %103 : vector<16x256xf32>
    %c20 = arith.constant 20 : index
    %c0_67 = arith.constant 0 : index
    %c0_68 = arith.constant 0 : index
    %105 = vector.load %arg2[%c20, %c0_67, %c0_68] : memref<27x16x4xf32, #tpu.memory_space<vmem>>, vector<1x16x4xf32>
    %106 = vector.shape_cast %105 : vector<1x16x4xf32> to vector<16x4xf32>
    %107 = vector.extract_strided_slice %3 {offsets = [0, 74], sizes = [4, 256], strides = [1, 1]} : vector<4x384xf32> to vector<4x256xf32>
    %cst_69 = arith.constant dense<0.000000e+00> : vector<16x256xf32>
    %108 = tpu.matmul %106, %107, %cst_69 {dimension_numbers = #tpu.dot_dimension_numbers<[1], [0], [0], [1], [0, 0, 1, 1], [], []>} : vector<16x4xf32>, vector<4x256xf32>, vector<16x256xf32> -> vector<16x256xf32>
    %109 = arith.addf %104, %108 : vector<16x256xf32>
    %c21 = arith.constant 21 : index
    %c0_70 = arith.constant 0 : index
    %c0_71 = arith.constant 0 : index
    %110 = vector.load %arg2[%c21, %c0_70, %c0_71] : memref<27x16x4xf32, #tpu.memory_space<vmem>>, vector<1x16x4xf32>
    %111 = vector.shape_cast %110 : vector<1x16x4xf32> to vector<16x4xf32>
    %112 = vector.extract_strided_slice %3 {offsets = [0, 78], sizes = [4, 256], strides = [1, 1]} : vector<4x384xf32> to vector<4x256xf32>
    %cst_72 = arith.constant dense<0.000000e+00> : vector<16x256xf32>
    %113 = tpu.matmul %111, %112, %cst_72 {dimension_numbers = #tpu.dot_dimension_numbers<[1], [0], [0], [1], [0, 0, 1, 1], [], []>} : vector<16x4xf32>, vector<4x256xf32>, vector<16x256xf32> -> vector<16x256xf32>
    %114 = arith.addf %109, %113 : vector<16x256xf32>
    %c22 = arith.constant 22 : index
    %c0_73 = arith.constant 0 : index
    %c0_74 = arith.constant 0 : index
    %115 = vector.load %arg2[%c22, %c0_73, %c0_74] : memref<27x16x4xf32, #tpu.memory_space<vmem>>, vector<1x16x4xf32>
    %116 = vector.shape_cast %115 : vector<1x16x4xf32> to vector<16x4xf32>
    %117 = vector.extract_strided_slice %3 {offsets = [0, 79], sizes = [4, 256], strides = [1, 1]} : vector<4x384xf32> to vector<4x256xf32>
    %cst_75 = arith.constant dense<0.000000e+00> : vector<16x256xf32>
    %118 = tpu.matmul %116, %117, %cst_75 {dimension_numbers = #tpu.dot_dimension_numbers<[1], [0], [0], [1], [0, 0, 1, 1], [], []>} : vector<16x4xf32>, vector<4x256xf32>, vector<16x256xf32> -> vector<16x256xf32>
    %119 = arith.addf %114, %118 : vector<16x256xf32>
    %c23 = arith.constant 23 : index
    %c0_76 = arith.constant 0 : index
    %c0_77 = arith.constant 0 : index
    %120 = vector.load %arg2[%c23, %c0_76, %c0_77] : memref<27x16x4xf32, #tpu.memory_space<vmem>>, vector<1x16x4xf32>
    %121 = vector.shape_cast %120 : vector<1x16x4xf32> to vector<16x4xf32>
    %122 = vector.extract_strided_slice %3 {offsets = [0, 80], sizes = [4, 256], strides = [1, 1]} : vector<4x384xf32> to vector<4x256xf32>
    %cst_78 = arith.constant dense<0.000000e+00> : vector<16x256xf32>
    %123 = tpu.matmul %121, %122, %cst_78 {dimension_numbers = #tpu.dot_dimension_numbers<[1], [0], [0], [1], [0, 0, 1, 1], [], []>} : vector<16x4xf32>, vector<4x256xf32>, vector<16x256xf32> -> vector<16x256xf32>
    %124 = arith.addf %119, %123 : vector<16x256xf32>
    %c24 = arith.constant 24 : index
    %c0_79 = arith.constant 0 : index
    %c0_80 = arith.constant 0 : index
    %125 = vector.load %arg2[%c24, %c0_79, %c0_80] : memref<27x16x4xf32, #tpu.memory_space<vmem>>, vector<1x16x4xf32>
    %126 = vector.shape_cast %125 : vector<1x16x4xf32> to vector<16x4xf32>
    %127 = vector.extract_strided_slice %3 {offsets = [0, 84], sizes = [4, 256], strides = [1, 1]} : vector<4x384xf32> to vector<4x256xf32>
    %cst_81 = arith.constant dense<0.000000e+00> : vector<16x256xf32>
    %128 = tpu.matmul %126, %127, %cst_81 {dimension_numbers = #tpu.dot_dimension_numbers<[1], [0], [0], [1], [0, 0, 1, 1], [], []>} : vector<16x4xf32>, vector<4x256xf32>, vector<16x256xf32> -> vector<16x256xf32>
    %129 = arith.addf %124, %128 : vector<16x256xf32>
    %c25 = arith.constant 25 : index
    %c0_82 = arith.constant 0 : index
    %c0_83 = arith.constant 0 : index
    %130 = vector.load %arg2[%c25, %c0_82, %c0_83] : memref<27x16x4xf32, #tpu.memory_space<vmem>>, vector<1x16x4xf32>
    %131 = vector.shape_cast %130 : vector<1x16x4xf32> to vector<16x4xf32>
    %132 = vector.extract_strided_slice %3 {offsets = [0, 85], sizes = [4, 256], strides = [1, 1]} : vector<4x384xf32> to vector<4x256xf32>
    %cst_84 = arith.constant dense<0.000000e+00> : vector<16x256xf32>
    %133 = tpu.matmul %131, %132, %cst_84 {dimension_numbers = #tpu.dot_dimension_numbers<[1], [0], [0], [1], [0, 0, 1, 1], [], []>} : vector<16x4xf32>, vector<4x256xf32>, vector<16x256xf32> -> vector<16x256xf32>
    %134 = arith.addf %129, %133 : vector<16x256xf32>
    %c26 = arith.constant 26 : index
    %c0_85 = arith.constant 0 : index
    %c0_86 = arith.constant 0 : index
    %135 = vector.load %arg2[%c26, %c0_85, %c0_86] : memref<27x16x4xf32, #tpu.memory_space<vmem>>, vector<1x16x4xf32>
    %136 = vector.shape_cast %135 : vector<1x16x4xf32> to vector<16x4xf32>
    %137 = vector.extract_strided_slice %3 {offsets = [0, 86], sizes = [4, 256], strides = [1, 1]} : vector<4x384xf32> to vector<4x256xf32>
    %cst_87 = arith.constant dense<0.000000e+00> : vector<16x256xf32>
    %138 = tpu.matmul %136, %137, %cst_87 {dimension_numbers = #tpu.dot_dimension_numbers<[1], [0], [0], [1], [0, 0, 1, 1], [], []>} : vector<16x4xf32>, vector<4x256xf32>, vector<16x256xf32> -> vector<16x256xf32>
    %139 = arith.addf %134, %138 : vector<16x256xf32>
    %cst_88 = arith.constant 0.000000e+00 : f32
    %140 = vector.broadcast %cst_88 : f32 to vector<16x256xf32>
    %141 = arith.maximumf %139, %140 : vector<16x256xf32>
    %142 = vector.broadcast %0 : vector<1x256xf32> to vector<16x256xf32>
    %143 = arith.mulf %141, %142 : vector<16x256xf32>
    %c0_89 = arith.constant 0 : index
    %c0_90 = arith.constant 0 : index
    %144 = vector.load %arg8[%c0_89, %c0_90] : memref<16x16xf32, #tpu.memory_space<vmem>>, vector<16x16xf32>
    %cst_91 = arith.constant dense<0.000000e+00> : vector<16x256xf32>
    %145 = tpu.matmul %144, %143, %cst_91 {dimension_numbers = #tpu.dot_dimension_numbers<[1], [0], [0], [1], [0, 0, 1, 1], [], []>} : vector<16x16xf32>, vector<16x256xf32>, vector<16x256xf32> -> vector<16x256xf32>
    %c0_92 = arith.constant 0 : index
    %c0_93 = arith.constant 0 : index
    %146 = vector.load %arg8[%c0_92, %c0_93] : memref<16x16xf32, #tpu.memory_space<vmem>>, vector<16x16xf32>
    %147 = arith.mulf %143, %143 : vector<16x256xf32>
    %cst_94 = arith.constant dense<0.000000e+00> : vector<16x256xf32>
    %148 = tpu.matmul %146, %147, %cst_94 {dimension_numbers = #tpu.dot_dimension_numbers<[1], [0], [0], [1], [0, 0, 1, 1], [], []>} : vector<16x16xf32>, vector<16x256xf32>, vector<16x256xf32> -> vector<16x256xf32>
    %cst_95 = arith.constant dense<0.000000e+00> : vector<16xf32>
    %149 = vector.multi_reduction <add>, %145, %cst_95 [1] : vector<16x256xf32> to vector<16xf32>
    %150 = vector.shape_cast %149 : vector<16xf32> to vector<16x1xf32>
    %cst_96 = arith.constant dense<0.000000e+00> : vector<16xf32>
    %151 = vector.multi_reduction <add>, %148, %cst_96 [1] : vector<16x256xf32> to vector<16xf32>
    %152 = vector.shape_cast %151 : vector<16xf32> to vector<16x1xf32>
    %cst_97 = arith.constant 7.812500e-03 : f32
    %153 = vector.broadcast %cst_97 : f32 to vector<16x1xf32>
    %154 = arith.mulf %150, %153 : vector<16x1xf32>
    %cst_98 = arith.constant 7.812500e-03 : f32
    %155 = vector.broadcast %cst_98 : f32 to vector<16x1xf32>
    %156 = arith.mulf %152, %155 : vector<16x1xf32>
    %157 = arith.mulf %154, %154 : vector<16x1xf32>
    %158 = arith.subf %156, %157 : vector<16x1xf32>
    %cst_99 = arith.constant 9.99999974E-6 : f32
    %159 = vector.broadcast %cst_99 : f32 to vector<16x1xf32>
    %160 = arith.addf %158, %159 : vector<16x1xf32>
    %161 = math.rsqrt %160 : vector<16x1xf32>
    %162 = vector.broadcast %154 : vector<16x1xf32> to vector<16x256xf32>
    %163 = arith.subf %141, %162 : vector<16x256xf32>
    %164 = vector.broadcast %161 : vector<16x1xf32> to vector<16x256xf32>
    %165 = arith.mulf %163, %164 : vector<16x256xf32>
    %c0_100 = arith.constant 0 : index
    %c0_101 = arith.constant 0 : index
    %166 = vector.load %arg4[%c0_100, %c0_101] : memref<16x1xf32, #tpu.memory_space<vmem>>, vector<16x1xf32>
    %167 = vector.broadcast %166 : vector<16x1xf32> to vector<16x256xf32>
    %168 = arith.mulf %165, %167 : vector<16x256xf32>
    %c0_102 = arith.constant 0 : index
    %c0_103 = arith.constant 0 : index
    %169 = vector.load %arg5[%c0_102, %c0_103] : memref<16x1xf32, #tpu.memory_space<vmem>>, vector<16x1xf32>
    %170 = vector.broadcast %169 : vector<16x1xf32> to vector<16x256xf32>
    %171 = arith.addf %168, %170 : vector<16x256xf32>
    %cst_104 = arith.constant 0.000000e+00 : f32
    %172 = vector.broadcast %cst_104 : f32 to vector<16x43xf32>
    %173 = vector.broadcast %0 : vector<1x256xf32> to vector<16x256xf32>
    %174 = arith.mulf %171, %173 : vector<16x256xf32>
    %cst_105 = arith.constant 0.000000e+00 : f32
    %175 = vector.broadcast %cst_105 : f32 to vector<16x85xf32>
    %176 = tpu.concatenate %172, %174, %175 in 1 : vector<16x43xf32>, vector<16x256xf32>, vector<16x85xf32> -> vector<16x384xf32>
    %cst_106 = arith.constant 0.000000e+00 : f32
    %177 = vector.broadcast %cst_106 : f32 to vector<32x256xf32>
    %c0_107 = arith.constant 0 : index
    %c0_108 = arith.constant 0 : index
    %c0_109 = arith.constant 0 : index
    %178 = vector.load %arg3[%c0_107, %c0_108, %c0_109] : memref<27x32x16xf32, #tpu.memory_space<vmem>>, vector<1x32x16xf32>
    %179 = vector.shape_cast %178 : vector<1x32x16xf32> to vector<32x16xf32>
    %180 = vector.extract_strided_slice %176 {offsets = [0, 0], sizes = [16, 256], strides = [1, 1]} : vector<16x384xf32> to vector<16x256xf32>
    %cst_110 = arith.constant dense<0.000000e+00> : vector<32x256xf32>
    %181 = tpu.matmul %179, %180, %cst_110 {dimension_numbers = #tpu.dot_dimension_numbers<[1], [0], [0], [1], [0, 0, 1, 1], [], []>} : vector<32x16xf32>, vector<16x256xf32>, vector<32x256xf32> -> vector<32x256xf32>
    %182 = arith.addf %177, %181 : vector<32x256xf32>
    %c1_111 = arith.constant 1 : index
    %c0_112 = arith.constant 0 : index
    %c0_113 = arith.constant 0 : index
    %183 = vector.load %arg3[%c1_111, %c0_112, %c0_113] : memref<27x32x16xf32, #tpu.memory_space<vmem>>, vector<1x32x16xf32>
    %184 = vector.shape_cast %183 : vector<1x32x16xf32> to vector<32x16xf32>
    %185 = vector.extract_strided_slice %176 {offsets = [0, 1], sizes = [16, 256], strides = [1, 1]} : vector<16x384xf32> to vector<16x256xf32>
    %cst_114 = arith.constant dense<0.000000e+00> : vector<32x256xf32>
    %186 = tpu.matmul %184, %185, %cst_114 {dimension_numbers = #tpu.dot_dimension_numbers<[1], [0], [0], [1], [0, 0, 1, 1], [], []>} : vector<32x16xf32>, vector<16x256xf32>, vector<32x256xf32> -> vector<32x256xf32>
    %187 = arith.addf %182, %186 : vector<32x256xf32>
    %c2_115 = arith.constant 2 : index
    %c0_116 = arith.constant 0 : index
    %c0_117 = arith.constant 0 : index
    %188 = vector.load %arg3[%c2_115, %c0_116, %c0_117] : memref<27x32x16xf32, #tpu.memory_space<vmem>>, vector<1x32x16xf32>
    %189 = vector.shape_cast %188 : vector<1x32x16xf32> to vector<32x16xf32>
    %190 = vector.extract_strided_slice %176 {offsets = [0, 2], sizes = [16, 256], strides = [1, 1]} : vector<16x384xf32> to vector<16x256xf32>
    %cst_118 = arith.constant dense<0.000000e+00> : vector<32x256xf32>
    %191 = tpu.matmul %189, %190, %cst_118 {dimension_numbers = #tpu.dot_dimension_numbers<[1], [0], [0], [1], [0, 0, 1, 1], [], []>} : vector<32x16xf32>, vector<16x256xf32>, vector<32x256xf32> -> vector<32x256xf32>
    %192 = arith.addf %187, %191 : vector<32x256xf32>
    %c3_119 = arith.constant 3 : index
    %c0_120 = arith.constant 0 : index
    %c0_121 = arith.constant 0 : index
    %193 = vector.load %arg3[%c3_119, %c0_120, %c0_121] : memref<27x32x16xf32, #tpu.memory_space<vmem>>, vector<1x32x16xf32>
    %194 = vector.shape_cast %193 : vector<1x32x16xf32> to vector<32x16xf32>
    %195 = vector.extract_strided_slice %176 {offsets = [0, 6], sizes = [16, 256], strides = [1, 1]} : vector<16x384xf32> to vector<16x256xf32>
    %cst_122 = arith.constant dense<0.000000e+00> : vector<32x256xf32>
    %196 = tpu.matmul %194, %195, %cst_122 {dimension_numbers = #tpu.dot_dimension_numbers<[1], [0], [0], [1], [0, 0, 1, 1], [], []>} : vector<32x16xf32>, vector<16x256xf32>, vector<32x256xf32> -> vector<32x256xf32>
    %197 = arith.addf %192, %196 : vector<32x256xf32>
    %c4_123 = arith.constant 4 : index
    %c0_124 = arith.constant 0 : index
    %c0_125 = arith.constant 0 : index
    %198 = vector.load %arg3[%c4_123, %c0_124, %c0_125] : memref<27x32x16xf32, #tpu.memory_space<vmem>>, vector<1x32x16xf32>
    %199 = vector.shape_cast %198 : vector<1x32x16xf32> to vector<32x16xf32>
    %200 = vector.extract_strided_slice %176 {offsets = [0, 7], sizes = [16, 256], strides = [1, 1]} : vector<16x384xf32> to vector<16x256xf32>
    %cst_126 = arith.constant dense<0.000000e+00> : vector<32x256xf32>
    %201 = tpu.matmul %199, %200, %cst_126 {dimension_numbers = #tpu.dot_dimension_numbers<[1], [0], [0], [1], [0, 0, 1, 1], [], []>} : vector<32x16xf32>, vector<16x256xf32>, vector<32x256xf32> -> vector<32x256xf32>
    %202 = arith.addf %197, %201 : vector<32x256xf32>
    %c5_127 = arith.constant 5 : index
    %c0_128 = arith.constant 0 : index
    %c0_129 = arith.constant 0 : index
    %203 = vector.load %arg3[%c5_127, %c0_128, %c0_129] : memref<27x32x16xf32, #tpu.memory_space<vmem>>, vector<1x32x16xf32>
    %204 = vector.shape_cast %203 : vector<1x32x16xf32> to vector<32x16xf32>
    %205 = vector.extract_strided_slice %176 {offsets = [0, 8], sizes = [16, 256], strides = [1, 1]} : vector<16x384xf32> to vector<16x256xf32>
    %cst_130 = arith.constant dense<0.000000e+00> : vector<32x256xf32>
    %206 = tpu.matmul %204, %205, %cst_130 {dimension_numbers = #tpu.dot_dimension_numbers<[1], [0], [0], [1], [0, 0, 1, 1], [], []>} : vector<32x16xf32>, vector<16x256xf32>, vector<32x256xf32> -> vector<32x256xf32>
    %207 = arith.addf %202, %206 : vector<32x256xf32>
    %c6_131 = arith.constant 6 : index
    %c0_132 = arith.constant 0 : index
    %c0_133 = arith.constant 0 : index
    %208 = vector.load %arg3[%c6_131, %c0_132, %c0_133] : memref<27x32x16xf32, #tpu.memory_space<vmem>>, vector<1x32x16xf32>
    %209 = vector.shape_cast %208 : vector<1x32x16xf32> to vector<32x16xf32>
    %210 = vector.extract_strided_slice %176 {offsets = [0, 12], sizes = [16, 256], strides = [1, 1]} : vector<16x384xf32> to vector<16x256xf32>
    %cst_134 = arith.constant dense<0.000000e+00> : vector<32x256xf32>
    %211 = tpu.matmul %209, %210, %cst_134 {dimension_numbers = #tpu.dot_dimension_numbers<[1], [0], [0], [1], [0, 0, 1, 1], [], []>} : vector<32x16xf32>, vector<16x256xf32>, vector<32x256xf32> -> vector<32x256xf32>
    %212 = arith.addf %207, %211 : vector<32x256xf32>
    %c7_135 = arith.constant 7 : index
    %c0_136 = arith.constant 0 : index
    %c0_137 = arith.constant 0 : index
    %213 = vector.load %arg3[%c7_135, %c0_136, %c0_137] : memref<27x32x16xf32, #tpu.memory_space<vmem>>, vector<1x32x16xf32>
    %214 = vector.shape_cast %213 : vector<1x32x16xf32> to vector<32x16xf32>
    %215 = vector.extract_strided_slice %176 {offsets = [0, 13], sizes = [16, 256], strides = [1, 1]} : vector<16x384xf32> to vector<16x256xf32>
    %cst_138 = arith.constant dense<0.000000e+00> : vector<32x256xf32>
    %216 = tpu.matmul %214, %215, %cst_138 {dimension_numbers = #tpu.dot_dimension_numbers<[1], [0], [0], [1], [0, 0, 1, 1], [], []>} : vector<32x16xf32>, vector<16x256xf32>, vector<32x256xf32> -> vector<32x256xf32>
    %217 = arith.addf %212, %216 : vector<32x256xf32>
    %c8_139 = arith.constant 8 : index
    %c0_140 = arith.constant 0 : index
    %c0_141 = arith.constant 0 : index
    %218 = vector.load %arg3[%c8_139, %c0_140, %c0_141] : memref<27x32x16xf32, #tpu.memory_space<vmem>>, vector<1x32x16xf32>
    %219 = vector.shape_cast %218 : vector<1x32x16xf32> to vector<32x16xf32>
    %220 = vector.extract_strided_slice %176 {offsets = [0, 14], sizes = [16, 256], strides = [1, 1]} : vector<16x384xf32> to vector<16x256xf32>
    %cst_142 = arith.constant dense<0.000000e+00> : vector<32x256xf32>
    %221 = tpu.matmul %219, %220, %cst_142 {dimension_numbers = #tpu.dot_dimension_numbers<[1], [0], [0], [1], [0, 0, 1, 1], [], []>} : vector<32x16xf32>, vector<16x256xf32>, vector<32x256xf32> -> vector<32x256xf32>
    %222 = arith.addf %217, %221 : vector<32x256xf32>
    %c9_143 = arith.constant 9 : index
    %c0_144 = arith.constant 0 : index
    %c0_145 = arith.constant 0 : index
    %223 = vector.load %arg3[%c9_143, %c0_144, %c0_145] : memref<27x32x16xf32, #tpu.memory_space<vmem>>, vector<1x32x16xf32>
    %224 = vector.shape_cast %223 : vector<1x32x16xf32> to vector<32x16xf32>
    %225 = vector.extract_strided_slice %176 {offsets = [0, 36], sizes = [16, 256], strides = [1, 1]} : vector<16x384xf32> to vector<16x256xf32>
    %cst_146 = arith.constant dense<0.000000e+00> : vector<32x256xf32>
    %226 = tpu.matmul %224, %225, %cst_146 {dimension_numbers = #tpu.dot_dimension_numbers<[1], [0], [0], [1], [0, 0, 1, 1], [], []>} : vector<32x16xf32>, vector<16x256xf32>, vector<32x256xf32> -> vector<32x256xf32>
    %227 = arith.addf %222, %226 : vector<32x256xf32>
    %c10_147 = arith.constant 10 : index
    %c0_148 = arith.constant 0 : index
    %c0_149 = arith.constant 0 : index
    %228 = vector.load %arg3[%c10_147, %c0_148, %c0_149] : memref<27x32x16xf32, #tpu.memory_space<vmem>>, vector<1x32x16xf32>
    %229 = vector.shape_cast %228 : vector<1x32x16xf32> to vector<32x16xf32>
    %230 = vector.extract_strided_slice %176 {offsets = [0, 37], sizes = [16, 256], strides = [1, 1]} : vector<16x384xf32> to vector<16x256xf32>
    %cst_150 = arith.constant dense<0.000000e+00> : vector<32x256xf32>
    %231 = tpu.matmul %229, %230, %cst_150 {dimension_numbers = #tpu.dot_dimension_numbers<[1], [0], [0], [1], [0, 0, 1, 1], [], []>} : vector<32x16xf32>, vector<16x256xf32>, vector<32x256xf32> -> vector<32x256xf32>
    %232 = arith.addf %227, %231 : vector<32x256xf32>
    %c11_151 = arith.constant 11 : index
    %c0_152 = arith.constant 0 : index
    %c0_153 = arith.constant 0 : index
    %233 = vector.load %arg3[%c11_151, %c0_152, %c0_153] : memref<27x32x16xf32, #tpu.memory_space<vmem>>, vector<1x32x16xf32>
    %234 = vector.shape_cast %233 : vector<1x32x16xf32> to vector<32x16xf32>
    %235 = vector.extract_strided_slice %176 {offsets = [0, 38], sizes = [16, 256], strides = [1, 1]} : vector<16x384xf32> to vector<16x256xf32>
    %cst_154 = arith.constant dense<0.000000e+00> : vector<32x256xf32>
    %236 = tpu.matmul %234, %235, %cst_154 {dimension_numbers = #tpu.dot_dimension_numbers<[1], [0], [0], [1], [0, 0, 1, 1], [], []>} : vector<32x16xf32>, vector<16x256xf32>, vector<32x256xf32> -> vector<32x256xf32>
    %237 = arith.addf %232, %236 : vector<32x256xf32>
    %c12_155 = arith.constant 12 : index
    %c0_156 = arith.constant 0 : index
    %c0_157 = arith.constant 0 : index
    %238 = vector.load %arg3[%c12_155, %c0_156, %c0_157] : memref<27x32x16xf32, #tpu.memory_space<vmem>>, vector<1x32x16xf32>
    %239 = vector.shape_cast %238 : vector<1x32x16xf32> to vector<32x16xf32>
    %240 = vector.extract_strided_slice %176 {offsets = [0, 42], sizes = [16, 256], strides = [1, 1]} : vector<16x384xf32> to vector<16x256xf32>
    %cst_158 = arith.constant dense<0.000000e+00> : vector<32x256xf32>
    %241 = tpu.matmul %239, %240, %cst_158 {dimension_numbers = #tpu.dot_dimension_numbers<[1], [0], [0], [1], [0, 0, 1, 1], [], []>} : vector<32x16xf32>, vector<16x256xf32>, vector<32x256xf32> -> vector<32x256xf32>
    %242 = arith.addf %237, %241 : vector<32x256xf32>
    %c13_159 = arith.constant 13 : index
    %c0_160 = arith.constant 0 : index
    %c0_161 = arith.constant 0 : index
    %243 = vector.load %arg3[%c13_159, %c0_160, %c0_161] : memref<27x32x16xf32, #tpu.memory_space<vmem>>, vector<1x32x16xf32>
    %244 = vector.shape_cast %243 : vector<1x32x16xf32> to vector<32x16xf32>
    %245 = vector.extract_strided_slice %176 {offsets = [0, 43], sizes = [16, 256], strides = [1, 1]} : vector<16x384xf32> to vector<16x256xf32>
    %cst_162 = arith.constant dense<0.000000e+00> : vector<32x256xf32>
    %246 = tpu.matmul %244, %245, %cst_162 {dimension_numbers = #tpu.dot_dimension_numbers<[1], [0], [0], [1], [0, 0, 1, 1], [], []>} : vector<32x16xf32>, vector<16x256xf32>, vector<32x256xf32> -> vector<32x256xf32>
    %247 = arith.addf %242, %246 : vector<32x256xf32>
    %c14_163 = arith.constant 14 : index
    %c0_164 = arith.constant 0 : index
    %c0_165 = arith.constant 0 : index
    %248 = vector.load %arg3[%c14_163, %c0_164, %c0_165] : memref<27x32x16xf32, #tpu.memory_space<vmem>>, vector<1x32x16xf32>
    %249 = vector.shape_cast %248 : vector<1x32x16xf32> to vector<32x16xf32>
    %250 = vector.extract_strided_slice %176 {offsets = [0, 44], sizes = [16, 256], strides = [1, 1]} : vector<16x384xf32> to vector<16x256xf32>
    %cst_166 = arith.constant dense<0.000000e+00> : vector<32x256xf32>
    %251 = tpu.matmul %249, %250, %cst_166 {dimension_numbers = #tpu.dot_dimension_numbers<[1], [0], [0], [1], [0, 0, 1, 1], [], []>} : vector<32x16xf32>, vector<16x256xf32>, vector<32x256xf32> -> vector<32x256xf32>
    %252 = arith.addf %247, %251 : vector<32x256xf32>
    %c15_167 = arith.constant 15 : index
    %c0_168 = arith.constant 0 : index
    %c0_169 = arith.constant 0 : index
    %253 = vector.load %arg3[%c15_167, %c0_168, %c0_169] : memref<27x32x16xf32, #tpu.memory_space<vmem>>, vector<1x32x16xf32>
    %254 = vector.shape_cast %253 : vector<1x32x16xf32> to vector<32x16xf32>
    %255 = vector.extract_strided_slice %176 {offsets = [0, 48], sizes = [16, 256], strides = [1, 1]} : vector<16x384xf32> to vector<16x256xf32>
    %cst_170 = arith.constant dense<0.000000e+00> : vector<32x256xf32>
    %256 = tpu.matmul %254, %255, %cst_170 {dimension_numbers = #tpu.dot_dimension_numbers<[1], [0], [0], [1], [0, 0, 1, 1], [], []>} : vector<32x16xf32>, vector<16x256xf32>, vector<32x256xf32> -> vector<32x256xf32>
    %257 = arith.addf %252, %256 : vector<32x256xf32>
    %c16_171 = arith.constant 16 : index
    %c0_172 = arith.constant 0 : index
    %c0_173 = arith.constant 0 : index
    %258 = vector.load %arg3[%c16_171, %c0_172, %c0_173] : memref<27x32x16xf32, #tpu.memory_space<vmem>>, vector<1x32x16xf32>
    %259 = vector.shape_cast %258 : vector<1x32x16xf32> to vector<32x16xf32>
    %260 = vector.extract_strided_slice %176 {offsets = [0, 49], sizes = [16, 256], strides = [1, 1]} : vector<16x384xf32> to vector<16x256xf32>
    %cst_174 = arith.constant dense<0.000000e+00> : vector<32x256xf32>
    %261 = tpu.matmul %259, %260, %cst_174 {dimension_numbers = #tpu.dot_dimension_numbers<[1], [0], [0], [1], [0, 0, 1, 1], [], []>} : vector<32x16xf32>, vector<16x256xf32>, vector<32x256xf32> -> vector<32x256xf32>
    %262 = arith.addf %257, %261 : vector<32x256xf32>
    %c17_175 = arith.constant 17 : index
    %c0_176 = arith.constant 0 : index
    %c0_177 = arith.constant 0 : index
    %263 = vector.load %arg3[%c17_175, %c0_176, %c0_177] : memref<27x32x16xf32, #tpu.memory_space<vmem>>, vector<1x32x16xf32>
    %264 = vector.shape_cast %263 : vector<1x32x16xf32> to vector<32x16xf32>
    %265 = vector.extract_strided_slice %176 {offsets = [0, 50], sizes = [16, 256], strides = [1, 1]} : vector<16x384xf32> to vector<16x256xf32>
    %cst_178 = arith.constant dense<0.000000e+00> : vector<32x256xf32>
    %266 = tpu.matmul %264, %265, %cst_178 {dimension_numbers = #tpu.dot_dimension_numbers<[1], [0], [0], [1], [0, 0, 1, 1], [], []>} : vector<32x16xf32>, vector<16x256xf32>, vector<32x256xf32> -> vector<32x256xf32>
    %267 = arith.addf %262, %266 : vector<32x256xf32>
    %c18_179 = arith.constant 18 : index
    %c0_180 = arith.constant 0 : index
    %c0_181 = arith.constant 0 : index
    %268 = vector.load %arg3[%c18_179, %c0_180, %c0_181] : memref<27x32x16xf32, #tpu.memory_space<vmem>>, vector<1x32x16xf32>
    %269 = vector.shape_cast %268 : vector<1x32x16xf32> to vector<32x16xf32>
    %270 = vector.extract_strided_slice %176 {offsets = [0, 72], sizes = [16, 256], strides = [1, 1]} : vector<16x384xf32> to vector<16x256xf32>
    %cst_182 = arith.constant dense<0.000000e+00> : vector<32x256xf32>
    %271 = tpu.matmul %269, %270, %cst_182 {dimension_numbers = #tpu.dot_dimension_numbers<[1], [0], [0], [1], [0, 0, 1, 1], [], []>} : vector<32x16xf32>, vector<16x256xf32>, vector<32x256xf32> -> vector<32x256xf32>
    %272 = arith.addf %267, %271 : vector<32x256xf32>
    %c19_183 = arith.constant 19 : index
    %c0_184 = arith.constant 0 : index
    %c0_185 = arith.constant 0 : index
    %273 = vector.load %arg3[%c19_183, %c0_184, %c0_185] : memref<27x32x16xf32, #tpu.memory_space<vmem>>, vector<1x32x16xf32>
    %274 = vector.shape_cast %273 : vector<1x32x16xf32> to vector<32x16xf32>
    %275 = vector.extract_strided_slice %176 {offsets = [0, 73], sizes = [16, 256], strides = [1, 1]} : vector<16x384xf32> to vector<16x256xf32>
    %cst_186 = arith.constant dense<0.000000e+00> : vector<32x256xf32>
    %276 = tpu.matmul %274, %275, %cst_186 {dimension_numbers = #tpu.dot_dimension_numbers<[1], [0], [0], [1], [0, 0, 1, 1], [], []>} : vector<32x16xf32>, vector<16x256xf32>, vector<32x256xf32> -> vector<32x256xf32>
    %277 = arith.addf %272, %276 : vector<32x256xf32>
    %c20_187 = arith.constant 20 : index
    %c0_188 = arith.constant 0 : index
    %c0_189 = arith.constant 0 : index
    %278 = vector.load %arg3[%c20_187, %c0_188, %c0_189] : memref<27x32x16xf32, #tpu.memory_space<vmem>>, vector<1x32x16xf32>
    %279 = vector.shape_cast %278 : vector<1x32x16xf32> to vector<32x16xf32>
    %280 = vector.extract_strided_slice %176 {offsets = [0, 74], sizes = [16, 256], strides = [1, 1]} : vector<16x384xf32> to vector<16x256xf32>
    %cst_190 = arith.constant dense<0.000000e+00> : vector<32x256xf32>
    %281 = tpu.matmul %279, %280, %cst_190 {dimension_numbers = #tpu.dot_dimension_numbers<[1], [0], [0], [1], [0, 0, 1, 1], [], []>} : vector<32x16xf32>, vector<16x256xf32>, vector<32x256xf32> -> vector<32x256xf32>
    %282 = arith.addf %277, %281 : vector<32x256xf32>
    %c21_191 = arith.constant 21 : index
    %c0_192 = arith.constant 0 : index
    %c0_193 = arith.constant 0 : index
    %283 = vector.load %arg3[%c21_191, %c0_192, %c0_193] : memref<27x32x16xf32, #tpu.memory_space<vmem>>, vector<1x32x16xf32>
    %284 = vector.shape_cast %283 : vector<1x32x16xf32> to vector<32x16xf32>
    %285 = vector.extract_strided_slice %176 {offsets = [0, 78], sizes = [16, 256], strides = [1, 1]} : vector<16x384xf32> to vector<16x256xf32>
    %cst_194 = arith.constant dense<0.000000e+00> : vector<32x256xf32>
    %286 = tpu.matmul %284, %285, %cst_194 {dimension_numbers = #tpu.dot_dimension_numbers<[1], [0], [0], [1], [0, 0, 1, 1], [], []>} : vector<32x16xf32>, vector<16x256xf32>, vector<32x256xf32> -> vector<32x256xf32>
    %287 = arith.addf %282, %286 : vector<32x256xf32>
    %c22_195 = arith.constant 22 : index
    %c0_196 = arith.constant 0 : index
    %c0_197 = arith.constant 0 : index
    %288 = vector.load %arg3[%c22_195, %c0_196, %c0_197] : memref<27x32x16xf32, #tpu.memory_space<vmem>>, vector<1x32x16xf32>
    %289 = vector.shape_cast %288 : vector<1x32x16xf32> to vector<32x16xf32>
    %290 = vector.extract_strided_slice %176 {offsets = [0, 79], sizes = [16, 256], strides = [1, 1]} : vector<16x384xf32> to vector<16x256xf32>
    %cst_198 = arith.constant dense<0.000000e+00> : vector<32x256xf32>
    %291 = tpu.matmul %289, %290, %cst_198 {dimension_numbers = #tpu.dot_dimension_numbers<[1], [0], [0], [1], [0, 0, 1, 1], [], []>} : vector<32x16xf32>, vector<16x256xf32>, vector<32x256xf32> -> vector<32x256xf32>
    %292 = arith.addf %287, %291 : vector<32x256xf32>
    %c23_199 = arith.constant 23 : index
    %c0_200 = arith.constant 0 : index
    %c0_201 = arith.constant 0 : index
    %293 = vector.load %arg3[%c23_199, %c0_200, %c0_201] : memref<27x32x16xf32, #tpu.memory_space<vmem>>, vector<1x32x16xf32>
    %294 = vector.shape_cast %293 : vector<1x32x16xf32> to vector<32x16xf32>
    %295 = vector.extract_strided_slice %176 {offsets = [0, 80], sizes = [16, 256], strides = [1, 1]} : vector<16x384xf32> to vector<16x256xf32>
    %cst_202 = arith.constant dense<0.000000e+00> : vector<32x256xf32>
    %296 = tpu.matmul %294, %295, %cst_202 {dimension_numbers = #tpu.dot_dimension_numbers<[1], [0], [0], [1], [0, 0, 1, 1], [], []>} : vector<32x16xf32>, vector<16x256xf32>, vector<32x256xf32> -> vector<32x256xf32>
    %297 = arith.addf %292, %296 : vector<32x256xf32>
    %c24_203 = arith.constant 24 : index
    %c0_204 = arith.constant 0 : index
    %c0_205 = arith.constant 0 : index
    %298 = vector.load %arg3[%c24_203, %c0_204, %c0_205] : memref<27x32x16xf32, #tpu.memory_space<vmem>>, vector<1x32x16xf32>
    %299 = vector.shape_cast %298 : vector<1x32x16xf32> to vector<32x16xf32>
    %300 = vector.extract_strided_slice %176 {offsets = [0, 84], sizes = [16, 256], strides = [1, 1]} : vector<16x384xf32> to vector<16x256xf32>
    %cst_206 = arith.constant dense<0.000000e+00> : vector<32x256xf32>
    %301 = tpu.matmul %299, %300, %cst_206 {dimension_numbers = #tpu.dot_dimension_numbers<[1], [0], [0], [1], [0, 0, 1, 1], [], []>} : vector<32x16xf32>, vector<16x256xf32>, vector<32x256xf32> -> vector<32x256xf32>
    %302 = arith.addf %297, %301 : vector<32x256xf32>
    %c25_207 = arith.constant 25 : index
    %c0_208 = arith.constant 0 : index
    %c0_209 = arith.constant 0 : index
    %303 = vector.load %arg3[%c25_207, %c0_208, %c0_209] : memref<27x32x16xf32, #tpu.memory_space<vmem>>, vector<1x32x16xf32>
    %304 = vector.shape_cast %303 : vector<1x32x16xf32> to vector<32x16xf32>
    %305 = vector.extract_strided_slice %176 {offsets = [0, 85], sizes = [16, 256], strides = [1, 1]} : vector<16x384xf32> to vector<16x256xf32>
    %cst_210 = arith.constant dense<0.000000e+00> : vector<32x256xf32>
    %306 = tpu.matmul %304, %305, %cst_210 {dimension_numbers = #tpu.dot_dimension_numbers<[1], [0], [0], [1], [0, 0, 1, 1], [], []>} : vector<32x16xf32>, vector<16x256xf32>, vector<32x256xf32> -> vector<32x256xf32>
    %307 = arith.addf %302, %306 : vector<32x256xf32>
    %c26_211 = arith.constant 26 : index
    %c0_212 = arith.constant 0 : index
    %c0_213 = arith.constant 0 : index
    %308 = vector.load %arg3[%c26_211, %c0_212, %c0_213] : memref<27x32x16xf32, #tpu.memory_space<vmem>>, vector<1x32x16xf32>
    %309 = vector.shape_cast %308 : vector<1x32x16xf32> to vector<32x16xf32>
    %310 = vector.extract_strided_slice %176 {offsets = [0, 86], sizes = [16, 256], strides = [1, 1]} : vector<16x384xf32> to vector<16x256xf32>
    %cst_214 = arith.constant dense<0.000000e+00> : vector<32x256xf32>
    %311 = tpu.matmul %309, %310, %cst_214 {dimension_numbers = #tpu.dot_dimension_numbers<[1], [0], [0], [1], [0, 0, 1, 1], [], []>} : vector<32x16xf32>, vector<16x256xf32>, vector<32x256xf32> -> vector<32x256xf32>
    %312 = arith.addf %307, %311 : vector<32x256xf32>
    %cst_215 = arith.constant 0.000000e+00 : f32
    %313 = vector.broadcast %cst_215 : f32 to vector<32x256xf32>
    %314 = arith.maximumf %312, %313 : vector<32x256xf32>
    %315 = vector.broadcast %0 : vector<1x256xf32> to vector<32x256xf32>
    %316 = arith.mulf %314, %315 : vector<32x256xf32>
    %c0_216 = arith.constant 0 : index
    %c0_217 = arith.constant 0 : index
    %317 = vector.load %arg9[%c0_216, %c0_217] : memref<32x32xf32, #tpu.memory_space<vmem>>, vector<32x32xf32>
    %cst_218 = arith.constant dense<0.000000e+00> : vector<32x256xf32>
    %318 = tpu.matmul %317, %316, %cst_218 {dimension_numbers = #tpu.dot_dimension_numbers<[1], [0], [0], [1], [0, 0, 1, 1], [], []>} : vector<32x32xf32>, vector<32x256xf32>, vector<32x256xf32> -> vector<32x256xf32>
    %c0_219 = arith.constant 0 : index
    %c0_220 = arith.constant 0 : index
    %319 = vector.load %arg9[%c0_219, %c0_220] : memref<32x32xf32, #tpu.memory_space<vmem>>, vector<32x32xf32>
    %320 = arith.mulf %316, %316 : vector<32x256xf32>
    %cst_221 = arith.constant dense<0.000000e+00> : vector<32x256xf32>
    %321 = tpu.matmul %319, %320, %cst_221 {dimension_numbers = #tpu.dot_dimension_numbers<[1], [0], [0], [1], [0, 0, 1, 1], [], []>} : vector<32x32xf32>, vector<32x256xf32>, vector<32x256xf32> -> vector<32x256xf32>
    %cst_222 = arith.constant dense<0.000000e+00> : vector<32xf32>
    %322 = vector.multi_reduction <add>, %318, %cst_222 [1] : vector<32x256xf32> to vector<32xf32>
    %323 = vector.shape_cast %322 : vector<32xf32> to vector<32x1xf32>
    %cst_223 = arith.constant dense<0.000000e+00> : vector<32xf32>
    %324 = vector.multi_reduction <add>, %321, %cst_223 [1] : vector<32x256xf32> to vector<32xf32>
    %325 = vector.shape_cast %324 : vector<32xf32> to vector<32x1xf32>
    %cst_224 = arith.constant 3.906250e-03 : f32
    %326 = vector.broadcast %cst_224 : f32 to vector<32x1xf32>
    %327 = arith.mulf %323, %326 : vector<32x1xf32>
    %cst_225 = arith.constant 3.906250e-03 : f32
    %328 = vector.broadcast %cst_225 : f32 to vector<32x1xf32>
    %329 = arith.mulf %325, %328 : vector<32x1xf32>
    %330 = arith.mulf %327, %327 : vector<32x1xf32>
    %331 = arith.subf %329, %330 : vector<32x1xf32>
    %cst_226 = arith.constant 9.99999974E-6 : f32
    %332 = vector.broadcast %cst_226 : f32 to vector<32x1xf32>
    %333 = arith.addf %331, %332 : vector<32x1xf32>
    %334 = math.rsqrt %333 : vector<32x1xf32>
    %335 = vector.broadcast %327 : vector<32x1xf32> to vector<32x256xf32>
    %336 = arith.subf %314, %335 : vector<32x256xf32>
    %337 = vector.broadcast %334 : vector<32x1xf32> to vector<32x256xf32>
    %338 = arith.mulf %336, %337 : vector<32x256xf32>
    %c0_227 = arith.constant 0 : index
    %c0_228 = arith.constant 0 : index
    %339 = vector.load %arg6[%c0_227, %c0_228] : memref<32x1xf32, #tpu.memory_space<vmem>>, vector<32x1xf32>
    %340 = vector.broadcast %339 : vector<32x1xf32> to vector<32x256xf32>
    %341 = arith.mulf %338, %340 : vector<32x256xf32>
    %c0_229 = arith.constant 0 : index
    %c0_230 = arith.constant 0 : index
    %342 = vector.load %arg7[%c0_229, %c0_230] : memref<32x1xf32, #tpu.memory_space<vmem>>, vector<32x1xf32>
    %343 = vector.broadcast %342 : vector<32x1xf32> to vector<32x256xf32>
    %344 = arith.addf %341, %343 : vector<32x256xf32>
    %c0_231 = arith.constant 0 : index
    %c0_232 = arith.constant 0 : index
    %c0_233 = arith.constant 0 : index
    %345 = vector.load %arg11[%c0_231, %c0_232, %c0_233] : memref<1x32x256xf32, #tpu.memory_space<vmem>>, vector<1x32x256xf32>
    %346 = vector.shape_cast %345 : vector<1x32x256xf32> to vector<32x256xf32>
    %347 = vector.shape_cast %344 : vector<32x256xf32> to vector<1x32x256xf32>
    tpu.vector_store %arg11[%c0_231, %c0_232, %c0_233], %347 {strides = array<i32>} : memref<1x32x256xf32, #tpu.memory_space<vmem>>, vector<1x32x256xf32>,
    return
  }
  func.func @transform_0(%arg0: i32) -> (i32, i32, i32, i32) {
    %c0_i32 = arith.constant 0 : i32
    %c0_i32_0 = arith.constant 0 : i32
    %c0_i32_1 = arith.constant 0 : i32
    %c0_i32_2 = arith.constant 0 : i32
    return %arg0, %c0_i32, %c0_i32_0, %c0_i32_1 : i32, i32, i32, i32
  }
  func.func @transform_1(%arg0: i32) -> (i32, i32, i32) {
    %c0_i32 = arith.constant 0 : i32
    %c0_i32_0 = arith.constant 0 : i32
    %c0_i32_1 = arith.constant 0 : i32
    %c0_i32_2 = arith.constant 0 : i32
    return %c0_i32, %c0_i32_0, %c0_i32_1 : i32, i32, i32
  }
  func.func @transform_2(%arg0: i32) -> (i32, i32, i32) {
    %c0_i32 = arith.constant 0 : i32
    %c0_i32_0 = arith.constant 0 : i32
    %c0_i32_1 = arith.constant 0 : i32
    %c0_i32_2 = arith.constant 0 : i32
    return %c0_i32, %c0_i32_0, %c0_i32_1 : i32, i32, i32
  }
  func.func @transform_3(%arg0: i32) -> (i32, i32) {
    %c0_i32 = arith.constant 0 : i32
    %c0_i32_0 = arith.constant 0 : i32
    %c0_i32_1 = arith.constant 0 : i32
    return %c0_i32, %c0_i32_0 : i32, i32
  }
  func.func @transform_4(%arg0: i32) -> (i32, i32) {
    %c0_i32 = arith.constant 0 : i32
    %c0_i32_0 = arith.constant 0 : i32
    %c0_i32_1 = arith.constant 0 : i32
    return %c0_i32, %c0_i32_0 : i32, i32
  }
  func.func @transform_5(%arg0: i32) -> (i32, i32) {
    %c0_i32 = arith.constant 0 : i32
    %c0_i32_0 = arith.constant 0 : i32
    %c0_i32_1 = arith.constant 0 : i32
    return %c0_i32, %c0_i32_0 : i32, i32
  }
  func.func @transform_6(%arg0: i32) -> (i32, i32) {
    %c0_i32 = arith.constant 0 : i32
    %c0_i32_0 = arith.constant 0 : i32
    %c0_i32_1 = arith.constant 0 : i32
    return %c0_i32, %c0_i32_0 : i32, i32
  }
  func.func @transform_7(%arg0: i32) -> (i32, i32) {
    %c0_i32 = arith.constant 0 : i32
    %c0_i32_0 = arith.constant 0 : i32
    %c0_i32_1 = arith.constant 0 : i32
    return %c0_i32, %c0_i32_0 : i32, i32
  }
  func.func @transform_8(%arg0: i32) -> (i32, i32) {
    %c0_i32 = arith.constant 0 : i32
    %c0_i32_0 = arith.constant 0 : i32
    %c0_i32_1 = arith.constant 0 : i32
    return %c0_i32, %c0_i32_0 : i32, i32
  }
  func.func @transform_9(%arg0: i32) -> (i32, i32) {
    %c0_i32 = arith.constant 0 : i32
    %c0_i32_0 = arith.constant 0 : i32
    %c0_i32_1 = arith.constant 0 : i32
    return %c0_i32, %c0_i32_0 : i32, i32
  }
  func.func @transform_10(%arg0: i32) -> (i32, i32, i32) {
    %c0_i32 = arith.constant 0 : i32
    %c0_i32_0 = arith.constant 0 : i32
    %c0_i32_1 = arith.constant 0 : i32
    return %arg0, %c0_i32, %c0_i32_0 : i32, i32, i32
  }
}

</mosaic_0001>

<bundles_post_ra>
// kernel: _lambda_.1
= control target key start
LH: loop header
LB: loop body
LE: loop exit
PB: predicated region body
PF: predicated region fallthrough
CT: control target
= control target key end

     0   :  { %s8895_s13 = smov 0   ;;  %s10878_s0 = inlined_call_operand.vmem [shape: f32[2,4,8,384], index: 0, kind: input, shape index: {}]   ;;  %s10879_s1 = inlined_call_operand.vmem [shape: f32[27,16,4], index: 1, kind: input, shape index: {}]   ;;  %s10880_s2 = inlined_call_operand.vmem [shape: f32[27,32,16], index: 2, kind: input, shape index: {}]   ;;  %s10881_s3 = inlined_call_operand.vmem [shape: f32[16,1], index: 3, kind: input, shape index: {}]   ;;  %s10882_s4 = inlined_call_operand.vmem [shape: f32[16,1], index: 4, kind: input, shape index: {}]   ;;  %s10883_s5 = inlined_call_operand.vmem [shape: f32[32,1], index: 5, kind: input, shape index: {}]   ;;  %s10884_s6 = inlined_call_operand.vmem [shape: f32[32,1], index: 6, kind: input, shape index: {}]   ;;  %s10885_s7 = inlined_call_operand.vmem [shape: f32[16,16], index: 7, kind: input, shape index: {}]   ;;  %s10886_s8 = inlined_call_operand.vmem [shape: f32[32,32], index: 8, kind: input, shape index: {}]   ;;  %s10887_s9 = inlined_call_operand.vmem [shape: f32[1,256], index: 9, kind: input, shape index: {}]   ;;  %s10888_s10 = inlined_call_operand.vmem [shape: f32[2,32,256], index: 10, kind: output, shape index: {}]  }
   0x1 LB: > { %s7507_s14 = sadd.s32 4294967295, %s8810_s13   ;;  %p7511_p0 = scmp.ge.s32.totalorder %s8810_s13, 1  ;;  %s8810_s13 = sphi %s8895_s13, %s20_s13  }
   0x2   : > { %p312_p1 = scmp.lt.s32.totalorder %s8810_s13, 3 }
   0x4   : > { %p313_p2 = pnand %p7511_p0, %p312_p1 }
   0x5   : > { %p350_p3 = scmp.lt.s32.totalorder (!%p313_p2), %s7507_s14, 1  ;;  %vm462_vm0 = vcmask (!%p313_p2), 1041409   ;;  %vm464_vm1 = vcmask (!%p313_p2), 1042434   ;;  %vm466_vm2 = vcmask (!%p313_p2), 1043459   ;;  %s10897_s19 = smov (!%p313_p2), 127   ;;  %vm10918_vm3 = vcmask (!%p313_p2), 1039360  }
   0x6   : > { %316 = sbr.rel (%p313_p2) target bundleno = 2205 (0x89d), region = 60  ;;  %s10895_s20 = smov (!%p313_p2), 126   ;;  %vm490_vm4 = vcmask (!%p313_p2), 1043456   ;;  %vm483_vm5 = vcmask (!%p313_p2), 31744   ;;  %vm10916_vm6 = vcmask (!%p313_p2), 1031168   ;;  %vm10915_vm7 = vcmask (!%p313_p2), 998400  }
   0x7   : > { %s10893_s21 = smov (!%p313_p2), 122   ;;  %s10891_s22 = smov (!%p313_p2), 121   ;;  %vm10914_vm8 = vcmask (!%p313_p2), 990208   ;;  %vm10913_vm9 = vcmask (!%p313_p2), 982016   ;;  %vm1080_vm10 = vcmask (!%p313_p2), 949248   ;;  %vm1183_vm11 = vcmask (!%p313_p2), 941056  }
   0x8   : > { %s10889_s23 = smov (!%p313_p2), 120   ;;  %s8818_s24 = smov (!%p313_p2), 116   ;;  %vm1286_vm12 = vcmask (!%p313_p2), 932864   ;;  %vm1389_vm13 = vcmask (!%p313_p2), 752640   ;;  %vm1492_vm14 = vcmask (!%p313_p2), 744448   ;;  %vm1595_vm15 = vcmask (!%p313_p2), 736256  }
   0x9   : > { %s8819_s25 = smov (!%p313_p2), 115   ;;  %s8820_s26 = smov (!%p313_p2), 114  }
   0xa   : > { %s8821_s27 = smov (!%p313_p2), 92   ;;  %s8822_s28 = smov (!%p313_p2), 91  }
   0xb   : > { %s8823_s29 = smov (!%p313_p2), 90   ;;  %s8824_s30 = smov (!%p313_p2), 86  }
   0xc   : > { %s8825_s11 = smov (!%p313_p2), 85   ;;  %s8826_s12 = smov (!%p313_p2), 84  }
   0xd   : > { %s11010_s14 = smov (!%p350_p3, %s7507_s14), 1  ;;  %s8828_s16 = smov 79  }
   0xe   : > { %s8353_s15 = smul.u32 96, %s11010_s14  ;;  %s10911_s17 = smov 78  }
  0x10   : > { %s8909_s18 = scalar_lea.vmem %s10878_s0, %s8353_s15  ;;  %s8827_s15 = smov 80  }
  0x11   : > { %v362_v0 = vld [vmem:[%s8909_s18 + $0x8] sm:$0xff]  ;;  %v365_v1 = vld [vmem:[%s8909_s18 + $0x20] sm:$0xff]  ;;  %v368_v2 = vld [vmem:[%s8909_s18 + $0x38] sm:$0xff] }
  0x12   : > { %v371_v3 = vld [vmem:[%s8909_s18 + $0x50] sm:$0xff]  ;;  %v379_v4 = vrot.slane %v362_v0, 4  ;;  %v397_v5 = vrot.slane %v365_v1, 4  ;;  %v415_v6 = vrot.slane %v368_v2, 4  ;;  %v361_v7 = vld [vmem:[%s8909_s18] sm:$0xff]  ;;  %v364_v8 = vld [vmem:[%s8909_s18 + $0x18] sm:$0xff] }
  0x13   : > { %v433_v9 = vrot.slane %v371_v3, 4  ;;  %v367_v10 = vld [vmem:[%s8909_s18 + $0x30] sm:$0xff]  ;;  %v370_v11 = vld [vmem:[%s8909_s18 + $0x48] sm:$0xff]  ;;  %v373_v12 = vrot.slane %v361_v7, 4  ;;  %v391_v13 = vrot.slane %v364_v8, 4  ;;  %v369_v52 = vld [vmem:[%s8909_s18 + $0x40] sm:$0xff] }
  0x14   : > { %v380_v14 = vmax.f32 %v362_v0, %v379_v4  ;;  %v398_v15 = vmax.f32 %v365_v1, %v397_v5  ;;  %v416_v16 = vmax.f32 %v368_v2, %v415_v6  ;;  %v409_v17 = vrot.slane %v367_v10, 4  ;;  %v363_v46 = vld [vmem:[%s8909_s18 + $0x10] sm:$0xff]  ;;  %v366_v47 = vld [vmem:[%s8909_s18 + $0x28] sm:$0xff]  ;;  %v372_v59 = vld [vmem:[%s8909_s18 + $0x58] sm:$0xff]  ;;  %s10899_s18 = smov 56  }
  0x15   : > { %v434_v18 = vmax.f32 %v371_v3, %v433_v9  ;;  %v374_v19 = vmax.f32 %v361_v7, %v373_v12  ;;  %v392_v20 = vmax.f32 %v364_v8, %v391_v13  ;;  %v427_v21 = vrot.slane %v370_v11, 4 }
  0x16   : > { %v381_v22 = vrot.slane %v380_v14, 2  ;;  %v399_v23 = vrot.slane %v398_v15, 2  ;;  %v417_v24 = vrot.slane %v416_v16, 2  ;;  %v410_v25 = vmax.f32 %v367_v10, %v409_v17 }
  0x17   : > { %v435_v26 = vrot.slane %v434_v18, 2  ;;  %v375_v27 = vrot.slane %v374_v19, 2  ;;  %v393_v28 = vrot.slane %v392_v20, 2  ;;  %v428_v29 = vmax.f32 %v370_v11, %v427_v21 }
  0x18   : > { %v382_v30 = vmax.f32 %v380_v14, %v381_v22  ;;  %v400_v31 = vmax.f32 %v398_v15, %v399_v23  ;;  %v418_v32 = vmax.f32 %v416_v16, %v417_v24  ;;  %v411_v33 = vrot.slane %v410_v25, 2 }
  0x19   : > { %v436_v34 = vmax.f32 %v434_v18, %v435_v26  ;;  %v376_v35 = vmax.f32 %v374_v19, %v375_v27  ;;  %v394_v36 = vmax.f32 %v392_v20, %v393_v28  ;;  %v429_v37 = vrot.slane %v428_v29, 2 }
  0x1a   : > { %v383_v38 = vrot.slane %v382_v30, 1  ;;  %v401_v39 = vrot.slane %v400_v31, 1  ;;  %v419_v40 = vrot.slane %v418_v32, 1  ;;  %v412_v41 = vmax.f32 %v410_v25, %v411_v33 }
  0x1b   : > { %v437_v42 = vrot.slane %v436_v34, 1  ;;  %v377_v43 = vrot.slane %v376_v35, 1  ;;  %v395_v44 = vrot.slane %v394_v36, 1  ;;  %v430_v45 = vmax.f32 %v428_v29, %v429_v37 }
  0x1c   : > { %v384_v48 = vmax.f32 %v382_v30, %v383_v38  ;;  %v402_v49 = vmax.f32 %v400_v31, %v401_v39  ;;  %v420_v50 = vmax.f32 %v418_v32, %v419_v40  ;;  %v413_v51 = vrot.slane %v412_v41, 1  ;;  %v7516_v39 = vld [vmem:[%s10879_s1 + $0x18] sm:$0xff] }
  0x1d   : > { %v438_v53 = vmax.f32 %v436_v34, %v437_v42  ;;  %v378_v54 = vmax.f32 %v376_v35, %v377_v43  ;;  %v396_v55 = vmax.f32 %v394_v36, %v395_v44  ;;  %v431_v56 = vrot.slane %v430_v45, 1  ;;  %v7515_v35 = vld [vmem:[%s10879_s1 + $0x10] sm:$0xff]  ;;  %v445_v43 = vld [vmem:[%s10879_s1] sm:$0xff] }
  0x1e   : > { %v468_v57 = vsel %vm462_vm0, %v402_v49, %v384_v48  ;;  %v414_v58 = vmax.f32 %v412_v41, %v413_v51  ;;  %v385_v60 = vrot.slane %v363_v46, 4  ;;  %v403_v61 = vrot.slane %v366_v47, 4 }
  0x1f   : > { %v469_v62 = vsel %vm464_vm1, %v420_v50, %v468_v57  ;;  %v432_v63 = vmax.f32 %v430_v45, %v431_v56  ;;  %v463_v0 = vsel %vm462_vm0, %v396_v55, %v378_v54  ;;  %v421_v1 = vrot.slane %v369_v52, 4  ;;  %v7525_v50 = vld [vmem:[%s10879_s1 + $0x20] sm:$0xff]  ;;  %v7526_v54 = vld [vmem:[%s10879_s1 + $0x28] sm:$0xff]  ;;  %v7531_v57 = vld [vmem:[%s10879_s1 + $0x30] sm:$0xff] }
  0x20   : > { %v8927_v2 = vsel %vm466_vm2, %v438_v53, %v469_v62  ;;  %v465_v3 = vsel %vm464_vm1, %v414_v58, %v463_v0  ;;  %v386_v4 = vmax.f32 %v363_v46, %v385_v60  ;;  %v404_v5 = vmax.f32 %v366_v47, %v403_v61  ;;  %v446_v47 = vld [vmem:[%s10879_s1 + $0x8] sm:$0xff]  ;;  %v7532_v61 = vld [vmem:[%s10879_s1 + $0x38] sm:$0xff]  ;;  %v7537_v0 = vld [vmem:[%s10879_s1 + $0x40] sm:$0xff] }
  0x21   : > { %476 = vrot.lane.b32.xlu0 %v8927_v2, %s10897_s19  ;;  %v8933_v6 = vsel %vm466_vm2, %v432_v63, %v465_v3  ;;  %v422_v7 = vmax.f32 %v369_v52, %v421_v1  ;;  %v439_v8 = vrot.slane %v372_v59, 4  ;;  %v8813_v13 = vmov 0.0  }
  0x22   : > { %474 = vrot.lane.b32.xlu1 %v8933_v6, %s10897_s19  ;;  %v387_v9 = vrot.slane %v386_v4, 2  ;;  %v405_v10 = vrot.slane %v404_v5, 2  ;;  %559 = vmatprep.mubr.f32.mxu0 %v8813_v13 }
  0x23   : > { %v423_v11 = vrot.slane %v422_v7, 2  ;;  %v440_v12 = vmax.f32 %v372_v59, %v439_v8  ;;  %3332 = vmatprep.mubr.f32.mxu1 %v8813_v13 }
  0x24   : > { %v388_v14 = vmax.f32 %v386_v4, %v387_v9  ;;  %v406_v15 = vmax.f32 %v404_v5, %v405_v10  ;;  %v7538_v4 = vld [vmem:[%s10879_s1 + $0x48] sm:$0xff] }
  0x25   : > { %v424_v16 = vmax.f32 %v422_v7, %v423_v11  ;;  %v441_v17 = vrot.slane %v440_v12, 2  ;;  %v7543_v7 = vld [vmem:[%s10879_s1 + $0x50] sm:$0xff]  ;;  %v7544_v11 = vld [vmem:[%s10879_s1 + $0x58] sm:$0xff] }
  0x26   : > { %v389_v18 = vrot.slane %v388_v14, 1  ;;  %v407_v19 = vrot.slane %v406_v15, 1  ;;  %664 = vrot.lane.b32.xlu1 %v8927_v2, %s10895_s20 }
  0x27   : > { %v425_v20 = vrot.slane %v424_v16, 1  ;;  %v442_v21 = vmax.f32 %v440_v12, %v441_v17 }
  0x28   : > { %v390_v22 = vmax.f32 %v388_v14, %v389_v18  ;;  %v408_v23 = vmax.f32 %v406_v15, %v407_v19  ;;  %v7549_v15 = vld [vmem:[%s10879_s1 + $0x60] sm:$0xff]  ;;  %v7550_v19 = vld [vmem:[%s10879_s1 + $0x68] sm:$0xff] }
  0x29   : > { %v426_v24 = vmax.f32 %v424_v16, %v425_v20  ;;  %v443_v25 = vrot.slane %v442_v21, 1 }
  0x2a   : > { %v471_v26 = vsel %vm462_vm0, %v408_v23, %v390_v22  ;;  %662 = vrot.lane.b32.xlu1 %v8933_v6, %s10895_s20  ;;  %v7555_v22 = vld [vmem:[%s10879_s1 + $0x70] sm:$0xff]  ;;  %vm1698_vm0 = vcmask 703488  }
  0x2b   : > { %v444_v27 = vmax.f32 %v442_v21, %v443_v25  ;;  %v472_v28 = vsel %vm464_vm1, %v426_v24, %v471_v26  ;;  %v7556_v26 = vld [vmem:[%s10879_s1 + $0x78] sm:$0xff]  ;;  %vm10919_vm1 = vcmask 695296  }
  0x2d   : > { %v8946_v29 = vsel %vm466_vm2, %v444_v27, %v472_v28  ;;  %vm10917_vm2 = vcmask 687104  }
  0x2e   : > { %478 = vrot.lane.b32.xlu0 %v8946_v29, %s10897_s19  ;;  %769 = vrot.lane.b32.xlu1 %v8946_v29, %s10893_s21  ;;  %s8837_s19 = smov 43  }
  0x32   : > { %666 = vrot.lane.b32.xlu0 %v8946_v29, %s10895_s20  ;;  %870 = vrot.lane.b32.xlu1 %v8927_v2, %s10891_s22  ;;  %s10905_s20 = smov 49  }
  0x36   : > { %767 = vrot.lane.b32.xlu0 %v8927_v2, %s10893_s21  ;;  %868 = vrot.lane.b32.xlu1 %v8933_v6, %s10891_s22 }
  0x3a   : > { %765 = vrot.lane.b32.xlu0 %v8933_v6, %s10893_s21  ;;  %975 = vrot.lane.b32.xlu1 %v8946_v29, %s10889_s23  ;;  %s10903_s21 = smov 50  }
  0x3e   : > { %872 = vrot.lane.b32.xlu0 %v8946_v29, %s10891_s22  ;;  %1076 = vrot.lane.b32.xlu1 %v8927_v2, %s8818_s24  ;;  %s10901_s22 = smov 54  }
  0x42   : > { %973 = vrot.lane.b32.xlu0 %v8927_v2, %s10889_s23  ;;  %1074 = vrot.lane.b32.xlu1 %v8933_v6, %s8818_s24 }
  0x46   : > { %971 = vrot.lane.b32.xlu0 %v8933_v6, %s10889_s23  ;;  %1181 = vrot.lane.b32.xlu1 %v8946_v29, %s8819_s25  ;;  %s10907_s23 = smov 55  }
  0x4a   : > { %1078 = vrot.lane.b32.xlu0 %v8946_v29, %s8818_s24  ;;  %1282 = vrot.lane.b32.xlu1 %v8927_v2, %s8820_s26 }
  0x4e   : > { %1179 = vrot.lane.b32.xlu0 %v8927_v2, %s8819_s25  ;;  %1280 = vrot.lane.b32.xlu1 %v8933_v6, %s8820_s26 }
  0x52   : > { %1177 = vrot.lane.b32.xlu0 %v8933_v6, %s8819_s25  ;;  %1387 = vrot.lane.b32.xlu1 %v8946_v29, %s8821_s27 }
  0x56   : > { %1284 = vrot.lane.b32.xlu0 %v8946_v29, %s8820_s26  ;;  %1488 = vrot.lane.b32.xlu1 %v8927_v2, %s8822_s28 }
  0x5a   : > { %1385 = vrot.lane.b32.xlu0 %v8927_v2, %s8821_s27  ;;  %1486 = vrot.lane.b32.xlu1 %v8933_v6, %s8822_s28 }
  0x5e   : > { %1383 = vrot.lane.b32.xlu0 %v8933_v6, %s8821_s27  ;;  %1593 = vrot.lane.b32.xlu1 %v8946_v29, %s8823_s29 }
  0x62   : > { %1490 = vrot.lane.b32.xlu0 %v8946_v29, %s8822_s28  ;;  %1694 = vrot.lane.b32.xlu1 %v8927_v2, %s8824_s30 }
  0x66   : > { %1591 = vrot.lane.b32.xlu0 %v8927_v2, %s8823_s29  ;;  %1692 = vrot.lane.b32.xlu1 %v8933_v6, %s8824_s30 }
  0x6a   : > { %1589 = vrot.lane.b32.xlu0 %v8933_v6, %s8823_s29  ;;  %1799 = vrot.lane.b32.xlu1 %v8946_v29, %s8825_s11 }
  0x6e   : > { %1696 = vrot.lane.b32.xlu0 %v8946_v29, %s8824_s30  ;;  %1900 = vrot.lane.b32.xlu1 %v8927_v2, %s8826_s12 }
  0x72   : > { %1797 = vrot.lane.b32.xlu0 %v8927_v2, %s8825_s11  ;;  %1898 = vrot.lane.b32.xlu1 %v8933_v6, %s8826_s12 }
  0x76   : > { %1795 = vrot.lane.b32.xlu0 %v8933_v6, %s8825_s11  ;;  %2005 = vrot.lane.b32.xlu1 %v8946_v29, %s8827_s15 }
  0x7a   : > { %1902 = vrot.lane.b32.xlu0 %v8946_v29, %s8826_s12  ;;  %2106 = vrot.lane.b32.xlu1 %v8927_v2, %s8828_s16 }
  0x7e   : > { %2003 = vrot.lane.b32.xlu0 %v8927_v2, %s8827_s15  ;;  %2104 = vrot.lane.b32.xlu1 %v8933_v6, %s8828_s16 }
  0x82   : > { %2001 = vrot.lane.b32.xlu0 %v8933_v6, %s8827_s15  ;;  %2211 = vrot.lane.b32.xlu1 %v8946_v29, %s10911_s17 }
  0x86   : > { %2108 = vrot.lane.b32.xlu0 %v8946_v29, %s8828_s16  ;;  %2312 = vrot.lane.b32.xlu1 %v8927_v2, %s10899_s18 }
  0x8a   : > { %2209 = vrot.lane.b32.xlu0 %v8927_v2, %s10911_s17  ;;  %2310 = vrot.lane.b32.xlu1 %v8933_v6, %s10899_s18 }
  0x8e   : > { %2207 = vrot.lane.b32.xlu0 %v8933_v6, %s10911_s17  ;;  %2417 = vrot.lane.b32.xlu1 %v8946_v29, %s10907_s23 }
  0x92   : > { %2314 = vrot.lane.b32.xlu0 %v8946_v29, %s10899_s18  ;;  %2518 = vrot.lane.b32.xlu1 %v8927_v2, %s10901_s22  ;;  %s10925_s18 = smov 42  }
  0x93   : > { %v477_v30 = vpop.permute.xlu0 %476 }
  0x94   : > { %v475_v31 = vpop.permute.xlu1 %474 }
  0x95   : > { %v481_v36 = vsel %vm10918_vm3, %v475_v31, %v477_v30 }
  0x96   : > { %2415 = vrot.lane.b32.xlu0 %v8927_v2, %s10907_s23  ;;  %2516 = vrot.lane.b32.xlu1 %v8933_v6, %s10901_s22 }
  0x98   : > { %v665_v32 = vpop.permute.xlu1 %664 }
  0x9a   : > { %2413 = vrot.lane.b32.xlu0 %v8933_v6, %s10907_s23  ;;  %2623 = vrot.lane.b32.xlu1 %v8946_v29, %s10903_s21 }
  0x9c   : > { %v663_v38 = vpop.permute.xlu1 %662 }
  0x9d   : > { %v669_v44 = vsel %vm10916_vm6, %v663_v38, %v665_v32 }
  0x9e   : > { %2520 = vrot.lane.b32.xlu0 %v8946_v29, %s10901_s22  ;;  %2724 = vrot.lane.b32.xlu1 %v8927_v2, %s10905_s20  ;;  %s10909_s22 = smov 48  }
  0xa0   : > { %v479_v33 = vpop.permute.xlu0 %478  ;;  %v770_v42 = vpop.permute.xlu1 %769 }
  0xa1   : > { %v482_v34 = vsel %vm10918_vm3, %v477_v30, %v479_v33  ;;  %v7562_v33 = vld [vmem:[%s10879_s1 + $0x88] sm:$0xff]  ;;  %vm10921_vm3 = vcmask 441344  }
  0xa2   : > { %7517 = vmatprep.subr.msk.mxu0 %vm490_vm4, %v482_v34  ;;  %2621 = vrot.lane.b32.xlu0 %v8927_v2, %s10903_s21 }
  0xa3   : > { %7518 = vmatpush1.msk.msra.mxu0 %vm490_vm4, %v481_v36  ;;  %2722 = vrot.lane.b32.xlu1 %v8933_v6, %s10905_s20  ;;  %v7567_v36 = vld [vmem:[%s10879_s1 + $0x90] sm:$0xff] }
  0xa4   : > { %7519 = vmatmul.mubr.msk.f32.vlgmr.msra.gmra.mrb[0].mxu0 %vm483_vm5, %v7515_v35  ;;  %7521 = vmatprep.subr.msk.mxu0 %vm490_vm4, %v8927_v2  ;;  %v667_v37 = vpop.permute.xlu0 %666  ;;  %v871_v48 = vpop.permute.xlu1 %870 }
  0xa5   : > { %565 = vmatprep.mubr.f32.mxu0 %v8813_v13  ;;  %7522 = vmatpush1.msk.msra.mxu0 %vm490_vm4, %v8933_v6  ;;  %v670_v40 = vsel %vm10916_vm6, %v665_v32, %v667_v37  ;;  %vm2316_vm6 = vcmask 457728  }
  0xa6   : > { %7527 = vmatprep.subr.msk.mxu0 %vm490_vm4, %v670_v40  ;;  %2619 = vrot.lane.b32.xlu0 %v8933_v6, %s10903_s21  ;;  %s10927_s21 = smov 44   ;;  %v7568_v40 = vld [vmem:[%s10879_s1 + $0x98] sm:$0xff] }
  0xa7   : > { %2829 = vrot.lane.b32.xlu1 %v8946_v29, %s10909_s22 }
  0xa8   : > { %7520 = vmatmul.mubr.msk.f32.gmra.mrb[2].mxu0 %vm483_vm5, %v7516_v39  ;;  %v768_v41 = vpop.permute.xlu0 %767  ;;  %v869_v53 = vpop.permute.xlu1 %868 }
  0xa9   : > { %646 = vmatprep.mubr.f32.mxu0 %v8813_v13  ;;  %v773_v45 = vsel %vm10915_vm7, %v768_v41, %v770_v42  ;;  %v875_v58 = vsel %vm10914_vm8, %v869_v53, %v871_v48 }
  0xaa   : > { %2726 = vrot.lane.b32.xlu0 %v8946_v29, %s10905_s20 }
  0xab   : > { %2930 = vrot.lane.b32.xlu1 %v8927_v2, %s10927_s21 }
  0xac   : > { %7523 = vmatmul.mubr.msk.f32.vlgmr.msra.gmra.mrb[0].mxu0 %vm483_vm5, %v445_v43  ;;  %v766_v46 = vpop.permute.xlu0 %765  ;;  %v976_v56 = vpop.permute.xlu1 %975  ;;  %v7573_v43 = vld [vmem:[%s10879_s1 + $0xa0] sm:$0xff] }
  0xad   : > { %7528 = vmatpush1.msk.msra.mxu0 %vm490_vm4, %v669_v44  ;;  %652 = vmatprep.mubr.f32.mxu0 %v8813_v13  ;;  %v772_v51 = vsel %vm10915_vm7, %v766_v46, %v768_v41  ;;  %vm2213_vm7 = vcmask 637952  }
  0xae   : > { %7533 = vmatprep.subr.msk.mxu0 %vm490_vm4, %v773_v45  ;;  %2827 = vrot.lane.b32.xlu0 %v8927_v2, %s10909_s22 }
  0xaf   : > { %2928 = vrot.lane.b32.xlu1 %v8933_v6, %s10927_s21 }
  0xb0   : > { %7524 = vmatmul.mubr.msk.f32.gmra.mrb[2].mxu0 %vm483_vm5, %v446_v47  ;;  %v873_v49 = vpop.permute.xlu0 %872  ;;  %v1077_v62 = vpop.permute.xlu1 %1076  ;;  %v7574_v47 = vld [vmem:[%s10879_s1 + $0xa8] sm:$0xff] }
  0xb1   : > { %745 = vmatprep.mubr.f32.mxu0 %v8813_v13  ;;  %v876_v52 = vsel %vm10914_vm8, %v871_v48, %v873_v49  ;;  %vm2110_vm8 = vcmask 646144  }
  0xb2   : > { %2825 = vrot.lane.b32.xlu0 %v8933_v6, %s10909_s22 }
  0xb3   : > { %3035 = vrot.lane.b32.xlu1 %v8946_v29, %s8837_s19 }
  0xb4   : > { %7529 = vmatmul.mubr.msk.f32.vlgmr.msra.gmra.mrb[0].mxu0 %vm483_vm5, %v7525_v50  ;;  %v974_v55 = vpop.permute.xlu0 %973  ;;  %v1075_v3 = vpop.permute.xlu1 %1074  ;;  %v7579_v50 = vld [vmem:[%s10879_s1 + $0xb0] sm:$0xff] }
  0xb5   : > { %7534 = vmatpush1.msk.msra.mxu0 %vm490_vm4, %v772_v51  ;;  %751 = vmatprep.mubr.f32.mxu0 %v8813_v13  ;;  %v979_v59 = vsel %vm10913_vm9, %v974_v55, %v976_v56  ;;  %v1081_v8 = vsel %vm1080_vm10, %v1075_v3, %v1077_v62 }
  0xb6   : > { %7539 = vmatprep.subr.msk.mxu0 %vm490_vm4, %v876_v52  ;;  %2932 = vrot.lane.b32.xlu0 %v8946_v29, %s10927_s21  ;;  %s10940_s21 = smov 121  }
  0xb7   : > { %3136 = vrot.lane.b32.xlu1 %v8927_v2, %s10925_s18 }
  0xb8   : > { %7530 = vmatmul.mubr.msk.f32.gmra.mrb[2].mxu0 %vm483_vm5, %v7526_v54  ;;  %v972_v60 = vpop.permute.xlu0 %971  ;;  %v7580_v54 = vld [vmem:[%s10879_s1 + $0xb8] sm:$0xff] }
  0xb9   : > { %848 = vmatprep.mubr.f32.mxu0 %v8813_v13  ;;  %v978_v1 = vsel %vm10913_vm9, %v972_v60, %v974_v55  ;;  %vm2007_vm9 = vcmask 654336  }
  0xba   : > { %3033 = vrot.lane.b32.xlu0 %v8927_v2, %s8837_s19 }
  0xbb   : > { %3134 = vrot.lane.b32.xlu1 %v8933_v6, %s10925_s18 }
  0xbc   : > { %7535 = vmatmul.mubr.msk.f32.vlgmr.msra.gmra.mrb[0].mxu0 %vm483_vm5, %v7531_v57  ;;  %v1079_v63 = vpop.permute.xlu0 %1078  ;;  %v7585_v57 = vld [vmem:[%s10879_s1 + $0xc0] sm:$0xff] }
  0xbd   : > { %7540 = vmatpush1.msk.msra.mxu0 %vm490_vm4, %v875_v58  ;;  %854 = vmatprep.mubr.f32.mxu0 %v8813_v13  ;;  %v1082_v2 = vsel %vm1080_vm10, %v1077_v62, %v1079_v63 }
  0xbe   : > { %7545 = vmatprep.subr.msk.mxu0 %vm490_vm4, %v979_v59  ;;  %3031 = vrot.lane.b32.xlu0 %v8933_v6, %s8837_s19  ;;  %v1182_v6 = vpop.permute.xlu1 %1181 }
  0xc0   : > { %7536 = vmatmul.mubr.msk.f32.gmra.mrb[2].mxu0 %vm483_vm5, %v7532_v61  ;;  %v1180_v5 = vpop.permute.xlu0 %1179  ;;  %v7586_v61 = vld [vmem:[%s10879_s1 + $0xc8] sm:$0xff] }
  0xc1   : > { %951 = vmatprep.mubr.f32.mxu0 %v8813_v13  ;;  %v1185_v9 = vsel %vm1183_vm11, %v1180_v5, %v1182_v6 }
  0xc2   : > { %3138 = vrot.lane.b32.xlu0 %v8946_v29, %s10925_s18  ;;  %v1283_v12 = vpop.permute.xlu1 %1282  ;;  %v7561_v29 = vld [vmem:[%s10879_s1 + $0x80] sm:$0xff] }
  0xc4   : > { %7541 = vmatmul.mubr.msk.f32.vlgmr.msra.gmra.mrb[0].mxu0 %vm483_vm5, %v7537_v0  ;;  %v1178_v10 = vpop.permute.xlu0 %1177  ;;  %v7591_v0 = vld [vmem:[%s10879_s1 + $0xd0] sm:$0xff] }
  0xc5   : > { %7546 = vmatpush1.msk.msra.mxu0 %vm490_vm4, %v978_v1  ;;  %957 = vmatprep.mubr.f32.mxu0 %v8813_v13  ;;  %v1184_v16 = vsel %vm1183_vm11, %v1178_v10, %v1180_v5 }
  0xc6   : > { %7551 = vmatprep.subr.msk.mxu0 %vm490_vm4, %v1082_v2  ;;  %v1281_v18 = vpop.permute.xlu1 %1280 }
  0xc7   : > { %v1287_v23 = vsel %vm1286_vm12, %v1281_v18, %v1283_v12 }
  0xc8   : > { %7542 = vmatmul.mubr.msk.f32.gmra.mrb[2].mxu0 %vm483_vm5, %v7538_v4  ;;  %v1285_v14 = vpop.permute.xlu0 %1284  ;;  %v7592_v4 = vld [vmem:[%s10879_s1 + $0xd8] sm:$0xff] }
  0xc9   : > { %1054 = vmatprep.mubr.f32.mxu0 %v8813_v13  ;;  %v1288_v17 = vsel %vm1286_vm12, %v1283_v12, %v1285_v14 }
  0xca   : > { %v1388_v21 = vpop.permute.xlu1 %1387 }
  0xcc   : > { %7547 = vmatmul.mubr.msk.f32.vlgmr.msra.gmra.mrb[0].mxu0 %vm483_vm5, %v7543_v7  ;;  %v1386_v20 = vpop.permute.xlu0 %1385  ;;  %v7597_v7 = vld [vmem:[%s10879_s1 + $0xe0] sm:$0xff] }
  0xcd   : > { %7552 = vmatpush1.msk.msra.mxu0 %vm490_vm4, %v1081_v8  ;;  %1060 = vmatprep.mubr.f32.mxu0 %v8813_v13  ;;  %v1391_v24 = vsel %vm1389_vm13, %v1386_v20, %v1388_v21 }
  0xce   : > { %7557 = vmatprep.subr.msk.mxu0 %vm490_vm4, %v1185_v9  ;;  %v1489_v27 = vpop.permute.xlu1 %1488 }
  0xd0   : > { %7548 = vmatmul.mubr.msk.f32.gmra.mrb[2].mxu0 %vm483_vm5, %v7544_v11  ;;  %v1384_v25 = vpop.permute.xlu0 %1383  ;;  %v7598_v11 = vld [vmem:[%s10879_s1 + $0xe8] sm:$0xff] }
  0xd1   : > { %1157 = vmatprep.mubr.f32.mxu0 %v8813_v13  ;;  %v1390_v30 = vsel %vm1389_vm13, %v1384_v25, %v1386_v20 }
  0xd2   : > { %v1487_v32 = vpop.permute.xlu1 %1486 }
  0xd3   : > { %v1493_v37 = vsel %vm1492_vm14, %v1487_v32, %v1489_v27 }
  0xd4   : > { %7553 = vmatmul.mubr.msk.f32.vlgmr.msra.gmra.mrb[0].mxu0 %vm483_vm5, %v7549_v15  ;;  %v1491_v28 = vpop.permute.xlu0 %1490  ;;  %v7603_v15 = vld [vmem:[%s10879_s1 + $0xf0] sm:$0xff] }
  0xd5   : > { %7558 = vmatpush1.msk.msra.mxu0 %vm490_vm4, %v1184_v16  ;;  %1163 = vmatprep.mubr.f32.mxu0 %v8813_v13  ;;  %v1494_v31 = vsel %vm1492_vm14, %v1489_v27, %v1491_v28 }
  0xd6   : > { %7563 = vmatprep.subr.msk.mxu0 %vm490_vm4, %v1288_v17  ;;  %v1594_v35 = vpop.permute.xlu1 %1593 }
  0xd8   : > { %7554 = vmatmul.mubr.msk.f32.gmra.mrb[2].mxu0 %vm483_vm5, %v7550_v19  ;;  %v1592_v34 = vpop.permute.xlu0 %1591  ;;  %v7604_v19 = vld [vmem:[%s10879_s1 + $0xf8] sm:$0xff] }
  0xd9   : > { %1260 = vmatprep.mubr.f32.mxu0 %v8813_v13  ;;  %v1597_v38 = vsel %vm1595_vm15, %v1592_v34, %v1594_v35 }
  0xda   : > { %v1695_v41 = vpop.permute.xlu1 %1694 }
  0xdc   : > { %7559 = vmatmul.mubr.msk.f32.vlgmr.msra.gmra.mrb[0].mxu0 %vm483_vm5, %v7555_v22  ;;  %v1590_v39 = vpop.permute.xlu0 %1589  ;;  %v7609_v22 = vld [vmem:[%s10879_s1 + $0x100] sm:$0xff] }
  0xdd   : > { %7564 = vmatpush1.msk.msra.mxu0 %vm490_vm4, %v1287_v23  ;;  %1266 = vmatprep.mubr.f32.mxu0 %v8813_v13  ;;  %v1596_v44 = vsel %vm1595_vm15, %v1590_v39, %v1592_v34 }
  0xde   : > { %7569 = vmatprep.subr.msk.mxu0 %vm490_vm4, %v1391_v24  ;;  %v1693_v46 = vpop.permute.xlu1 %1692 }
  0xdf   : > { %v1699_v51 = vsel %vm1698_vm0, %v1693_v46, %v1695_v41 }
  0xe0   : > { %7560 = vmatmul.mubr.msk.f32.gmra.mrb[2].mxu0 %vm483_vm5, %v7556_v26  ;;  %v1697_v42 = vpop.permute.xlu0 %1696  ;;  %v7610_v26 = vld [vmem:[%s10879_s1 + $0x108] sm:$0xff] }
  0xe1   : > { %1363 = vmatprep.mubr.f32.mxu0 %v8813_v13  ;;  %v1700_v45 = vsel %vm1698_vm0, %v1695_v41, %v1697_v42 }
  0xe2   : > { %v1800_v49 = vpop.permute.xlu1 %1799 }
  0xe4   : > { %7565 = vmatmul.mubr.msk.f32.vlgmr.msra.gmra.mrb[0].mxu0 %vm483_vm5, %v7561_v29  ;;  %v1798_v48 = vpop.permute.xlu0 %1797  ;;  %v7615_v29 = vld [vmem:[%s10879_s1 + $0x110] sm:$0xff] }
  0xe5   : > { %7570 = vmatpush1.msk.msra.mxu0 %vm490_vm4, %v1390_v30  ;;  %1369 = vmatprep.mubr.f32.mxu0 %v8813_v13  ;;  %v1803_v52 = vsel %vm10919_vm1, %v1798_v48, %v1800_v49 }
  0xe6   : > { %7575 = vmatprep.subr.msk.mxu0 %vm490_vm4, %v1494_v31  ;;  %v1901_v55 = vpop.permute.xlu1 %1900 }
  0xe8   : > { %7566 = vmatmul.mubr.msk.f32.gmra.mrb[2].mxu0 %vm483_vm5, %v7562_v33  ;;  %v1796_v53 = vpop.permute.xlu0 %1795  ;;  %v7616_v33 = vld [vmem:[%s10879_s1 + $0x118] sm:$0xff] }
  0xe9   : > { %1466 = vmatprep.mubr.f32.mxu0 %v8813_v13  ;;  %v1802_v58 = vsel %vm10919_vm1, %v1796_v53, %v1798_v48  ;;  %vm10922_vm1 = vcmask 408576  }
  0xea   : > { %v1899_v60 = vpop.permute.xlu1 %1898 }
  0xeb   : > { %v1905_v1 = vsel %vm10917_vm2, %v1899_v60, %v1901_v55 }
  0xec   : > { %7571 = vmatmul.mubr.msk.f32.vlgmr.msra.gmra.mrb[0].mxu0 %vm483_vm5, %v7567_v36  ;;  %v1903_v56 = vpop.permute.xlu0 %1902  ;;  %v7621_v36 = vld [vmem:[%s10879_s1 + $0x120] sm:$0xff] }
  0xed   : > { %7576 = vmatpush1.msk.msra.mxu0 %vm490_vm4, %v1493_v37  ;;  %1472 = vmatprep.mubr.f32.mxu0 %v8813_v13  ;;  %v1906_v59 = vsel %vm10917_vm2, %v1901_v55, %v1903_v56  ;;  %vm10920_vm2 = vcmask 449536  }
  0xee   : > { %7581 = vmatprep.subr.msk.mxu0 %vm490_vm4, %v1597_v38  ;;  %v2006_v63 = vpop.permute.xlu1 %2005 }
  0xf0   : > { %7572 = vmatmul.mubr.msk.f32.gmra.mrb[2].mxu0 %vm483_vm5, %v7568_v40  ;;  %v2004_v62 = vpop.permute.xlu0 %2003  ;;  %v7622_v40 = vld [vmem:[%s10879_s1 + $0x128] sm:$0xff] }
  0xf1   : > { %1569 = vmatprep.mubr.f32.mxu0 %v8813_v13  ;;  %v2009_v2 = vsel %vm2007_vm9, %v2004_v62, %v2006_v63 }
  0xf2   : > { %v2107_v5 = vpop.permute.xlu1 %2106 }
  0xf4   : > { %7577 = vmatmul.mubr.msk.f32.vlgmr.msra.gmra.mrb[0].mxu0 %vm483_vm5, %v7573_v43  ;;  %v2002_v3 = vpop.permute.xlu0 %2001  ;;  %v7627_v43 = vld [vmem:[%s10879_s1 + $0x130] sm:$0xff] }
  0xf5   : > { %7582 = vmatpush1.msk.msra.mxu0 %vm490_vm4, %v1596_v44  ;;  %1575 = vmatprep.mubr.f32.mxu0 %v8813_v13  ;;  %v2008_v8 = vsel %vm2007_vm9, %v2002_v3, %v2004_v62 }
  0xf6   : > { %7587 = vmatprep.subr.msk.mxu0 %vm490_vm4, %v1700_v45  ;;  %v2105_v10 = vpop.permute.xlu1 %2104 }
  0xf7   : > { %v2111_v16 = vsel %vm2110_vm8, %v2105_v10, %v2107_v5 }
  0xf8   : > { %7578 = vmatmul.mubr.msk.f32.gmra.mrb[2].mxu0 %vm483_vm5, %v7574_v47  ;;  %v2109_v6 = vpop.permute.xlu0 %2108  ;;  %v7628_v47 = vld [vmem:[%s10879_s1 + $0x138] sm:$0xff] }
  0xf9   : > { %1672 = vmatprep.mubr.f32.mxu0 %v8813_v13  ;;  %v2112_v9 = vsel %vm2110_vm8, %v2107_v5, %v2109_v6 }
  0xfa   : > { %v2212_v14 = vpop.permute.xlu1 %2211 }
  0xfc   : > { %7583 = vmatmul.mubr.msk.f32.vlgmr.msra.gmra.mrb[0].mxu0 %vm483_vm5, %v7579_v50  ;;  %v2210_v12 = vpop.permute.xlu0 %2209  ;;  %v7633_v50 = vld [vmem:[%s10879_s1 + $0x140] sm:$0xff] }
  0xfd   : > { %7588 = vmatpush1.msk.msra.mxu0 %vm490_vm4, %v1699_v51  ;;  %1678 = vmatprep.mubr.f32.mxu0 %v8813_v13  ;;  %v2215_v17 = vsel %vm2213_vm7, %v2210_v12, %v2212_v14  ;;  %v7657_v14 = vld [vmem:[%s10879_s1 + $0x180] sm:$0xff] }
  0xfe   : > { %7593 = vmatprep.subr.msk.mxu0 %vm490_vm4, %v1803_v52  ;;  %v2313_v20 = vpop.permute.xlu1 %2312 }
 0x100   : > { %7584 = vmatmul.mubr.msk.f32.gmra.mrb[2].mxu0 %vm483_vm5, %v7580_v54  ;;  %v2208_v18 = vpop.permute.xlu0 %2207  ;;  %v7634_v54 = vld [vmem:[%s10879_s1 + $0x148] sm:$0xff] }
 0x101   : > { %1775 = vmatprep.mubr.f32.mxu0 %v8813_v13  ;;  %v2214_v23 = vsel %vm2213_vm7, %v2208_v18, %v2210_v12  ;;  %v7658_v18 = vld [vmem:[%s10879_s1 + $0x188] sm:$0xff] }
 0x102   : > { %v2311_v25 = vpop.permute.xlu1 %2310 }
 0x103   : > { %v2317_v30 = vsel %vm2316_vm6, %v2311_v25, %v2313_v20  ;;  %v3452_v25 = vld [vmem:[%s10881_s3] sm:$0xff] }
 0x104   : > { %7589 = vmatmul.mubr.msk.f32.vlgmr.msra.gmra.mrb[0].mxu0 %vm483_vm5, %v7585_v57  ;;  %v2315_v21 = vpop.permute.xlu0 %2314  ;;  %v7639_v57 = vld [vmem:[%s10879_s1 + $0x150] sm:$0xff] }
 0x105   : > { %7594 = vmatpush1.msk.msra.mxu0 %vm490_vm4, %v1802_v58  ;;  %1781 = vmatprep.mubr.f32.mxu0 %v8813_v13  ;;  %v2318_v24 = vsel %vm2316_vm6, %v2313_v20, %v2315_v21  ;;  %v7663_v20 = vld [vmem:[%s10879_s1 + $0x190] sm:$0xff] }
 0x106   : > { %7599 = vmatprep.subr.msk.mxu0 %vm490_vm4, %v1906_v59  ;;  %v2418_v28 = vpop.permute.xlu1 %2417 }
 0x108   : > { %7590 = vmatmul.mubr.msk.f32.gmra.mrb[2].mxu0 %vm483_vm5, %v7586_v61  ;;  %v2416_v27 = vpop.permute.xlu0 %2415  ;;  %v7640_v61 = vld [vmem:[%s10879_s1 + $0x158] sm:$0xff] }
 0x109   : > { %1878 = vmatprep.mubr.f32.mxu0 %v8813_v13  ;;  %v2421_v31 = vsel %vm10920_vm2, %v2416_v27, %v2418_v28 }
 0x10a   : > { %v2519_v34 = vpop.permute.xlu1 %2518 }
 0x10c   : > { %7595 = vmatmul.mubr.msk.f32.vlgmr.msra.gmra.mrb[0].mxu0 %vm483_vm5, %v7591_v0  ;;  %v2414_v32 = vpop.permute.xlu0 %2413  ;;  %v7645_v0 = vld [vmem:[%s10879_s1 + $0x160] sm:$0xff] }
 0x10d   : > { %7600 = vmatpush1.msk.msra.mxu0 %vm490_vm4, %v1905_v1  ;;  %1884 = vmatprep.mubr.f32.mxu0 %v8813_v13  ;;  %v2420_v37 = vsel %vm10920_vm2, %v2414_v32, %v2416_v27  ;;  %vm10923_vm2 = vcmask 400384   ;;  %v3239_v27 = vlaneseq }
 0x10e   : > { %7605 = vmatprep.subr.msk.mxu0 %vm490_vm4, %v2009_v2  ;;  %v2517_v39 = vpop.permute.xlu1 %2516 }
 0x10f   : > { %v2523_v44 = vsel %vm10921_vm3, %v2517_v39, %v2519_v34  ;;  %v3240_v28 = vshrl.u32 %v3239_v27, 7 }
 0x110   : > { %7596 = vmatmul.mubr.msk.f32.gmra.mrb[2].mxu0 %vm483_vm5, %v7592_v4  ;;  %v2521_v35 = vpop.permute.xlu0 %2520  ;;  %v7646_v4 = vld [vmem:[%s10879_s1 + $0x168] sm:$0xff] }
 0x111   : > { %1981 = vmatprep.mubr.f32.mxu0 %v8813_v13  ;;  %v2524_v38 = vsel %vm10921_vm3, %v2519_v34, %v2521_v35  ;;  %vm10924_vm3 = vcmask 392192   ;;  %v3241_v32 = vsub.s32 0, %v3240_v28 }
 0x112   : > { %v2624_v42 = vpop.permute.xlu1 %2623 }
 0x114   : > { %7601 = vmatmul.mubr.msk.f32.vlgmr.msra.gmra.mrb[0].mxu0 %vm483_vm5, %v7597_v7  ;;  %v2622_v41 = vpop.permute.xlu0 %2621  ;;  %v7651_v7 = vld [vmem:[%s10879_s1 + $0x170] sm:$0xff] }
 0x115   : > { %7606 = vmatpush1.msk.msra.mxu0 %vm490_vm4, %v2008_v8  ;;  %1987 = vmatprep.mubr.f32.mxu0 %v8813_v13  ;;  %v2627_v45 = vsel %vm10922_vm1, %v2622_v41, %v2624_v42 }
 0x116   : > { %7611 = vmatprep.subr.msk.mxu0 %vm490_vm4, %v2112_v9  ;;  %v2725_v48 = vpop.permute.xlu1 %2724 }
 0x118   : > { %7602 = vmatmul.mubr.msk.f32.gmra.mrb[2].mxu0 %vm483_vm5, %v7598_v11  ;;  %v2620_v46 = vpop.permute.xlu0 %2619  ;;  %v7652_v11 = vld [vmem:[%s10879_s1 + $0x178] sm:$0xff] }
 0x119   : > { %2084 = vmatprep.mubr.f32.mxu0 %v8813_v13  ;;  %v2626_v51 = vsel %vm10922_vm1, %v2620_v46, %v2622_v41  ;;  %vm2934_vm1 = vcmask 359424  }
 0x11a   : > { %v2723_v53 = vpop.permute.xlu1 %2722 }
 0x11b   : > { %v2729_v58 = vsel %vm10923_vm2, %v2723_v53, %v2725_v48  ;;  %v3253_v53 = vld [vmem:[%s10885_s7] sm:$0xff] }
 0x11c   : > { %7607 = vmatmul.mubr.msk.f32.vlgmr.msra.gmra.mrb[0].mxu0 %vm483_vm5, %v7603_v15  ;;  %v2727_v49 = vpop.permute.xlu0 %2726 }
 0x11d   : > { %7612 = vmatpush1.msk.msra.mxu0 %vm490_vm4, %v2111_v16  ;;  %2090 = vmatprep.mubr.f32.mxu0 %v8813_v13  ;;  %v2730_v52 = vsel %vm10923_vm2, %v2725_v48, %v2727_v49  ;;  %vm3037_vm2 = vcmask 351232  }
 0x11e   : > { %7617 = vmatprep.subr.msk.mxu0 %vm490_vm4, %v2215_v17  ;;  %v2830_v56 = vpop.permute.xlu1 %2829 }
 0x120   : > { %7608 = vmatmul.mubr.msk.f32.gmra.mrb[2].mxu0 %vm483_vm5, %v7604_v19  ;;  %v2828_v55 = vpop.permute.xlu0 %2827 }
 0x121   : > { %2187 = vmatprep.mubr.f32.mxu0 %v8813_v13  ;;  %v2833_v59 = vsel %vm10924_vm3, %v2828_v55, %v2830_v56 }
 0x122   : > { %v2931_v62 = vpop.permute.xlu1 %2930 }
 0x124   : > { %7613 = vmatmul.mubr.msk.f32.vlgmr.msra.gmra.mrb[0].mxu0 %vm483_vm5, %v7609_v22  ;;  %v2826_v60 = vpop.permute.xlu0 %2825  ;;  %v7664_v22 = vld [vmem:[%s10879_s1 + $0x198] sm:$0xff] }
 0x125   : > { %7618 = vmatpush1.msk.msra.mxu0 %vm490_vm4, %v2214_v23  ;;  %2193 = vmatprep.mubr.f32.mxu0 %v8813_v13  ;;  %v2832_v1 = vsel %vm10924_vm3, %v2826_v60, %v2828_v55  ;;  %vm3140_vm3 = vcmask 343040   ;;  %v7669_v23 = vld [vmem:[%s10879_s1 + $0x1a0] sm:$0xff] }
 0x126   : > { %7623 = vmatprep.subr.msk.mxu0 %vm490_vm4, %v2318_v24  ;;  %v2929_v3 = vpop.permute.xlu1 %2928  ;;  %v7670_v24 = vld [vmem:[%s10879_s1 + $0x1a8] sm:$0xff] }
 0x127   : > { %v2935_v8 = vsel %vm2934_vm1, %v2929_v3, %v2931_v62 }
 0x128   : > { %7614 = vmatmul.mubr.msk.f32.gmra.mrb[2].mxu0 %vm483_vm5, %v7610_v26  ;;  %v2933_v63 = vpop.permute.xlu0 %2932  ;;  %v8839_v26 = vmov 0  }
 0x129   : > { %2290 = vmatprep.mubr.f32.mxu0 %v8813_v13  ;;  %v2936_v2 = vsel %vm2934_vm1, %v2931_v62, %v2933_v63  ;;  %8390 = vset.pattern.permute.xlu1 %v8839_v26 }
 0x12a   : > { %v3036_v6 = vpop.permute.xlu1 %3035  ;;  %8391 = vset.pattern.permute.xlu0 %v8839_v26  ;;  %3456 = vperm.xlu1 %8390, %v3452_v25  }
 0x12c   : > { %7619 = vmatmul.mubr.msk.f32.vlgmr.msra.gmra.mrb[0].mxu0 %vm483_vm5, %v7615_v29  ;;  %v3034_v5 = vpop.permute.xlu0 %3033  ;;  %v3245_v29 = vsub.s32 1, %v3240_v28 }
 0x12d   : > { %7624 = vmatpush1.msk.msra.mxu0 %vm490_vm4, %v2317_v30  ;;  %2296 = vmatprep.mubr.f32.mxu0 %v8813_v13  ;;  %v3039_v9 = vsel %vm3037_vm2, %v3034_v5, %v3036_v6  ;;  %v360_v30 = vld [vmem:[%s10887_s9] sm:$0x3]  ;;  %v3453_v6 = vld [vmem:[%s10881_s3 + $0x8] sm:$0xff] }
 0x12e   : > { %7629 = vmatprep.subr.msk.mxu0 %vm490_vm4, %v2421_v31  ;;  %v3137_v15 = vpop.permute.xlu1 %3136  ;;  %v9485_v35 = vrot.slane %v360_v30, %v3245_v29 }
 0x130   : > { %7620 = vmatmul.mubr.msk.f32.gmra.mrb[2].mxu0 %vm483_vm5, %v7616_v33  ;;  %v3032_v10 = vpop.permute.xlu0 %3031 }
 0x131   : > { %2393 = vmatprep.mubr.f32.mxu0 %v8813_v13  ;;  %v3038_v16 = vsel %vm3037_vm2, %v3032_v10, %v3034_v5  ;;  %v3469_v5 = vld [vmem:[%s10882_s4 + $0x8] sm:$0xff] }
 0x132   : > { %v3135_v19 = vpop.permute.xlu1 %3134 }
 0x133   : > { %v3141_v21 = vsel %vm3140_vm3, %v3135_v19, %v3137_v15 }
 0x134   : > { %7625 = vmatmul.mubr.msk.f32.vlgmr.msra.gmra.mrb[0].mxu0 %vm483_vm5, %v7621_v36  ;;  %v3139_v12 = vpop.permute.xlu0 %3138 }
 0x135   : > { %7630 = vmatpush1.msk.msra.mxu0 %vm490_vm4, %v2420_v37  ;;  %2399 = vmatprep.mubr.f32.mxu0 %v8813_v13  ;;  %v3142_v17 = vsel %vm3140_vm3, %v3137_v15, %v3139_v12 }
 0x136   : > { %7635 = vmatprep.subr.msk.mxu0 %vm490_vm4, %v2524_v38  ;;  %v9490_v38 = vrot.slane %v360_v30, %v3241_v32 }
 0x138   : > { %7626 = vmatmul.mubr.msk.f32.gmra.mrb[2].mxu0 %vm483_vm5, %v7622_v40 }
 0x139   : > { %2496 = vmatprep.mubr.f32.mxu0 %v8813_v13 }
 0x13c   : > { %7631 = vmatmul.mubr.msk.f32.vlgmr.msra.gmra.mrb[0].mxu0 %vm483_vm5, %v7627_v43 }
 0x13d   : > { %7636 = vmatpush1.msk.msra.mxu0 %vm490_vm4, %v2523_v44  ;;  %2502 = vmatprep.mubr.f32.mxu0 %v8813_v13 }
 0x13e   : > { %7641 = vmatprep.subr.msk.mxu0 %vm490_vm4, %v2627_v45 }
 0x140   : > { %7632 = vmatmul.mubr.msk.f32.gmra.mrb[2].mxu0 %vm483_vm5, %v7628_v47 }
 0x141   : > { %2599 = vmatprep.mubr.f32.mxu0 %v8813_v13 }
 0x144   : > { %7637 = vmatmul.mubr.msk.f32.vlgmr.msra.gmra.mrb[0].mxu0 %vm483_vm5, %v7633_v50 }
 0x145   : > { %7642 = vmatpush1.msk.msra.mxu0 %vm490_vm4, %v2626_v51  ;;  %2605 = vmatprep.mubr.f32.mxu0 %v8813_v13 }
 0x146   : > { %7647 = vmatprep.subr.msk.mxu0 %vm490_vm4, %v2730_v52 }
 0x148   : > { %7638 = vmatmul.mubr.msk.f32.gmra.mrb[2].mxu0 %vm483_vm5, %v7634_v54  ;;  %v3254_v54 = vld [vmem:[%s10885_s7 + $0x8] sm:$0xff] }
 0x149   : > { %2702 = vmatprep.mubr.f32.mxu0 %v8813_v13 }
 0x14c   : > { %7643 = vmatmul.mubr.msk.f32.vlgmr.msra.gmra.mrb[0].mxu0 %vm483_vm5, %v7639_v57 }
 0x14d   : > { %7648 = vmatpush1.msk.msra.mxu0 %vm490_vm4, %v2729_v58  ;;  %2708 = vmatprep.mubr.f32.mxu0 %v8813_v13 }
 0x14e   : > { %7653 = vmatprep.subr.msk.mxu0 %vm490_vm4, %v2833_v59 }
 0x150   : > { %7644 = vmatmul.mubr.msk.f32.gmra.mrb[2].mxu0 %vm483_vm5, %v7640_v61 }
 0x151   : > { %2805 = vmatprep.mubr.f32.mxu0 %v8813_v13 }
 0x154   : > { %7649 = vmatmul.mubr.msk.f32.vlgmr.msra.gmra.mrb[0].mxu0 %vm483_vm5, %v7645_v0 }
 0x155   : > { %7654 = vmatpush1.msk.msra.mxu0 %vm490_vm4, %v2832_v1  ;;  %2811 = vmatprep.mubr.f32.mxu0 %v8813_v13 }
 0x156   : > { %7659 = vmatprep.subr.msk.mxu0 %vm490_vm4, %v2936_v2 }
 0x158   : > { %7650 = vmatmul.mubr.msk.f32.gmra.mrb[2].mxu0 %vm483_vm5, %v7646_v4  ;;  %v3468_v4 = vld [vmem:[%s10882_s4] sm:$0xff] }
 0x159   : > { %2908 = vmatprep.mubr.f32.mxu0 %v8813_v13 }
 0x15c   : > { %7655 = vmatmul.mubr.msk.f32.vlgmr.msra.gmra.mrb[0].mxu0 %vm483_vm5, %v7651_v7 }
 0x15d   : > { %7660 = vmatpush1.msk.msra.mxu0 %vm490_vm4, %v2935_v8  ;;  %2914 = vmatprep.mubr.f32.mxu0 %v8813_v13 }
 0x15e   : > { %7665 = vmatprep.subr.msk.mxu0 %vm490_vm4, %v3039_v9 }
 0x160   : > { %7656 = vmatmul.mubr.msk.f32.gmra.mrb[2].mxu0 %vm483_vm5, %v7652_v11 }
 0x161   : > { %3011 = vmatprep.mubr.f32.mxu0 %v8813_v13 }
 0x164   : > { %7661 = vmatmul.mubr.msk.f32.vlgmr.msra.gmra.mrb[0].mxu0 %vm483_vm5, %v7657_v14 }
 0x165   : > { %7666 = vmatpush1.msk.msra.mxu0 %vm490_vm4, %v3038_v16  ;;  %3017 = vmatprep.mubr.f32.mxu0 %v8813_v13 }
 0x166   : > { %7671 = vmatprep.subr.msk.mxu0 %vm490_vm4, %v3142_v17 }
 0x168   : > { %7662 = vmatmul.mubr.msk.f32.gmra.mrb[2].mxu0 %vm483_vm5, %v7658_v18 }
 0x169   : > { %3114 = vmatprep.mubr.f32.mxu0 %v8813_v13 }
 0x16c   : > { %7667 = vmatmul.mubr.msk.f32.vlgmr.msra.gmra.mrb[0].mxu0 %vm483_vm5, %v7663_v20 }
 0x16d   : > { %7672 = vmatpush1.msk.msra.mxu0 %vm490_vm4, %v3141_v21  ;;  %3120 = vmatprep.mubr.f32.mxu0 %v8813_v13  ;;  %vm3255_vm4 = vcmask 130048  }
 0x170   : > { %7668 = vmatmul.mubr.msk.f32.gmra.mrb[2].mxu0 %vm483_vm5, %v7664_v22 }
 0x171   : > { %3217 = vmatprep.mubr.f32.mxu0 %v8813_v13 }
 0x174   : > { %7673 = vmatmul.mubr.msk.f32.vlgmr.msra.gmra.mrb[0].mxu0 %vm483_vm5, %v7669_v23 }
 0x175   : > { %3223 = vmatprep.mubr.f32.mxu0 %v8813_v13 }
 0x178   : > { %7674 = vmatmul.mubr.msk.f32.gmra.mrb[2].mxu0 %vm483_vm5, %v7670_v24  ;;  %vm10943_vm5 = vcmask 441344  }
 0x179   : > { %3326 = vmatprep.mubr.f32.mxu0 %v8813_v13 }
 0x1a9   : > { %v3457_v7 = vpop.permute.xlu1 %3456 }
 0x247   : > { %v9480_v31 = vpop.f32.mrb[0].mxu0 }
 0x248   : > { %v9482_v33 = vpop.f32.mrb[1].mxu0  ;;  %v3234_v37 = vmax.f32 %v9480_v31, 0.0 }
 0x249   : > { %v3235_v34 = vmax.f32 %v9482_v33, 0.0 }
 0x24a   : > { %v3249_v45 = vmul.f32 %v9490_v38, %v3234_v37 }
 0x24b   : > { %v9487_v36 = vpop.f32.mrb[2].mxu0  ;;  %v3250_v41 = vmul.f32 %v9485_v35, %v3235_v34 }
 0x24c   : > { %v3236_v39 = vmax.f32 %v9487_v36, 0.0  ;;  %v9493_v40 = vpop.f32.mrb[3].mxu0  ;;  %v3339_v52 = vmul.f32 %v3249_v45, %v3249_v45 }
 0x24d   : > { %v3237_v42 = vmax.f32 %v9493_v40, 0.0  ;;  %v3340_v46 = vmul.f32 %v3250_v41, %v3250_v41 }
 0x24e   : > { %v3251_v43 = vmul.f32 %v9490_v38, %v3236_v39 }
 0x24f   : > { %v3252_v44 = vmul.f32 %v9485_v35, %v3237_v42 }
 0x250   : > { %v7908_v49 = vpack.c.bf16 %v3251_v43, %v3249_v45  ;;  %v3341_v50 = vmul.f32 %v3251_v43, %v3251_v43 }
 0x251   : > { %v3342_v47 = vmul.f32 %v3252_v44, %v3252_v44  ;;  %v7906_v48 = vpack.c.bf16 %v3252_v44, %v3250_v41 }
 0x252   : > { %v7912_v55 = vpack.c.bf16 %v3341_v50, %v3339_v52 }
 0x253   : > { %7907 = vmatprep.subr.bf16.mxu0 %v7906_v48  ;;  %8039 = vmatprep.subr.bf16.mxu1 %v7906_v48  ;;  %v7910_v51 = vpack.c.bf16 %v3342_v47, %v3340_v46 }
 0x254   : > { %7909 = vmatpush1.bf16.msra.mxu0 %v7908_v49  ;;  %8040 = vmatpush1.bf16.msra.mxu1 %v7908_v49 }
 0x255   : > { %7911 = vmatprep.subr.bf16.mxu1 %v7910_v51 }
 0x257   : > { %7675 = vmatmul.mubr.msk.f32.vlgmr.msra.gmra.mrb[4].mxu0 %vm3255_vm4, %v3253_v53  ;;  %7676 = vmatmul.mubr.msk.f32.vlgmr.msra.gmra.mrb[0].mxu1 %vm3255_vm4, %v3254_v54 }
 0x258   : > { %7913 = vmatpush1.bf16.msra.mxu1 %v7912_v55  ;;  %3407 = vmatprep.mubr.f32.mxu1 %v8813_v13 }
 0x259   : > { %3621 = vmatprep.mubr.f32.mxu0 %v8813_v13 }
 0x25b   : > { %7677 = vmatmul.mubr.msk.f32.vlgmr.msra.gmra.mrb[2].mxu1 %vm3255_vm4, %v3253_v53 }
 0x25c   : > { %3413 = vmatprep.mubr.f32.mxu1 %v8813_v13 }
 0x25f   : > { %7678 = vmatmul.mubr.msk.f32.gmra.mrb[4].mxu1 %vm3255_vm4, %v3254_v54 }
 0x260   : > { %4384 = vmatprep.mubr.f32.mxu1 %v8813_v13 }
 0x32a   : > { %v3328_v56 = vpop.f32.mrb[4].mxu0  ;;  %v3334_v57 = vpop.f32.mrb[0].mxu1 }
 0x32b   : > { %v3330_v58 = vpop.f32.mrb[5].mxu0  ;;  %v3336_v59 = vpop.f32.mrb[1].mxu1 }
 0x32c   : > { %v3420_v60 = vadd.f32 %v3330_v58, %v3328_v56  ;;  %v3423_v61 = vadd.f32 %v3336_v59, %v3334_v57 }
 0x32e   : > { %3424 = vadd.xlane.f32.xlu1 %v3423_v61  ;;  %v3409_v62 = vpop.f32.mrb[2].mxu1  ;;  %3421 = vadd.xlane.f32.xlu0 %v3420_v60 }
 0x32f   : > { %v3411_v63 = vpop.f32.mrb[3].mxu1 }
 0x330   : > { %v3426_v0 = vadd.f32 %v3411_v63, %v3409_v62 }
 0x332   : > { %v3415_v1 = vpop.f32.mrb[4].mxu1  ;;  %3427 = vadd.xlane.f32.xlu0 %v3426_v0 }
 0x333   : > { %v3417_v2 = vpop.f32.mrb[5].mxu1 }
 0x334   : > { %v3429_v3 = vadd.f32 %v3417_v2, %v3415_v1 }
 0x336   : > { %3430 = vadd.xlane.f32.xlu0 %v3429_v3 }
 0x33f   : > { %3472 = vperm.xlu1 %8390, %v3468_v4  }
 0x343   : > { %3477 = vperm.xlu1 %8390, %v3469_v5  }
 0x34c   : > { %3461 = vperm.xlu0 %8391, %v3453_v6  }
 0x3bb   : > { %v3422_v8 = vpop.xlane.xlu0 %3421  ;;  %v3425_v10 = vpop.xlane.xlu1 %3424 }
 0x3bc   : > { %v3432_v9 = vmul.f32 0.0078125, %v3422_v8  ;;  %v3433_v12 = vmul.f32 0.0078125, %v3425_v10 }
 0x3be   : > { %v3436_v14 = vmul.f32 %v3432_v9, %v3432_v9  ;;  %v3437_v20 = vmul.f32 %v3433_v12, %v3433_v12  ;;  %v3444_v23 = vsub.f32 %v3234_v37, %v3432_v9  ;;  %v3445_v24 = vsub.f32 %v3235_v34, %v3432_v9 }
 0x3bf   : > { %v3428_v11 = vpop.xlane.xlu0 %3427  ;;  %v3473_v28 = vpop.permute.xlu1 %3472  ;;  %v3446_v32 = vsub.f32 %v3236_v39, %v3433_v12  ;;  %v3447_v41 = vsub.f32 %v3237_v42, %v3433_v12 }
 0x3c0   : > { %v3434_v15 = vmul.f32 0.0078125, %v3428_v11 }
 0x3c2   : > { %v3438_v16 = vsub.f32 %v3434_v15, %v3436_v14 }
 0x3c3   : > { %v3431_v17 = vpop.xlane.xlu0 %3430  ;;  %v3478_v49 = vpop.permute.xlu1 %3477 }
 0x3c4   : > { %v3440_v18 = vadd.f32 1e-05, %v3438_v16  ;;  %v3435_v19 = vmul.f32 0.0078125, %v3431_v17 }
 0x3c6   : > { %8792 = vrsqrt.f32 %v3440_v18  ;;  %v3439_v21 = vsub.f32 %v3435_v19, %v3437_v20 }
 0x3c8   : > { %v3441_v22 = vadd.f32 1e-05, %v3439_v21 }
 0x3ca   : > { %8794 = vrsqrt.f32 %v3441_v22 }
 0x3cb   : > { %v3462_v44 = vpop.permute.xlu0 %3461 }
 0x3d0   : > { %v8793_v25 = vpop.eup %8792 }
 0x3d1   : > { %v3448_v26 = vmul.f32 %v8793_v25, %v3444_v23  ;;  %v3449_v27 = vmul.f32 %v8793_v25, %v3445_v24 }
 0x3d3   : > { %v3464_v29 = vmul.f32 %v3457_v7, %v3448_v26  ;;  %v3465_v30 = vmul.f32 %v3457_v7, %v3449_v27 }
 0x3d4   : > { %v8795_v43 = vpop.eup %8794 }
 0x3d5   : > { %v3480_v45 = vadd.f32 %v3473_v28, %v3464_v29  ;;  %v3481_v31 = vadd.f32 %v3473_v28, %v3465_v30  ;;  %v3450_v37 = vmul.f32 %v8795_v43, %v3446_v32  ;;  %v3451_v46 = vmul.f32 %v8795_v43, %v3447_v41  ;;  %v7727_v29 = vld [vmem:[%s10880_s2 + $0xc0] sm:$0xff] }
 0x3d7   : > { %v3484_v33 = vmul.f32 %v3480_v45, %v9490_v38  ;;  %v3485_v34 = vmul.f32 %v3481_v31, %v9485_v35  ;;  %v3466_v47 = vmul.f32 %v3462_v44, %v3450_v37  ;;  %v3467_v48 = vmul.f32 %v3462_v44, %v3451_v46 }
 0x3d9   : > { %v3482_v50 = vadd.f32 %v3478_v49, %v3466_v47  ;;  %v3483_v51 = vadd.f32 %v3478_v49, %v3467_v48  ;;  %v8392_v36 = vpack.i.bf16 %v3485_v34, %v3484_v33  ;;  %v7728_v47 = vld [vmem:[%s10880_s2 + $0xc8] sm:$0xff] }
 0x3db   : > { %v3486_v39 = vmul.f32 %v3482_v50, %v9490_v38  ;;  %v3487_v40 = vmul.f32 %v3483_v51, %v9485_v35  ;;  %8393 = vrot.lane.b32.xlu1 %v8392_v36, %s8837_s19 }
 0x3dd   : > { %v8397_v42 = vpack.i.bf16 %v3487_v40, %v3486_v39  ;;  %v7729_v39 = vld [vmem:[%s10880_s2 + $0xd0] sm:$0xff] }
 0x3df   : > { %8398 = vrot.lane.b32.xlu1 %v8397_v42, %s8837_s19 }
 0x44d   : > { %v8394_v52 = vpop.permute.xlu1 %8393 }
 0x44e   : > { %v8396_v53 = vunpack.i.h.bf16 %v8394_v52  ;;  %v9545_v54 = vunpack.i.l.bf16 %v8394_v52 }
 0x450   : > { %v3510_v55 = vsel %vm3037_vm2, %v8396_v53, 0.0  ;;  %v9550_v56 = vsel %vm3037_vm2, %v9545_v54, %v8396_v53  ;;  %v3508_v2 = vsel %vm3037_vm2, 0.0, %v9545_v54 }
 0x451   : > { %v8399_v57 = vpop.permute.xlu1 %8398  ;;  %v9553_v58 = vpack.i.bf16 %v3510_v55, %v9550_v56 }
 0x452   : > { %v8401_v59 = vunpack.i.h.bf16 %v8399_v57  ;;  %v9555_v60 = vunpack.i.l.bf16 %v8399_v57 }
 0x453   : > { %8403 = vrot.lane.b32.xlu1 %v9553_v58, %s8818_s24 }
 0x454   : > { %v3511_v61 = vsel %vm3037_vm2, %v8401_v59, 0.0  ;;  %v9562_v62 = vsel %vm3037_vm2, %v9555_v60, %v8401_v59  ;;  %v7920_v63 = vpack.c.bf16 %v9555_v60, %v9545_v54  ;;  %v3509_v1 = vsel %vm3037_vm2, 0.0, %v9555_v60  ;;  %v7776_v54 = vld [vmem:[%s10880_s2 + $0x188] sm:$0xff] }
 0x455   : > { %v9567_v0 = vpack.i.bf16 %v3511_v61, %v9562_v62  ;;  %v9577_v3 = vpack.i.bf16 %v3509_v1, %v3508_v2  ;;  %v7918_v4 = vpack.c.bf16 %v9562_v62, %v9550_v56  ;;  %v7730_v61 = vld [vmem:[%s10880_s2 + $0xd8] sm:$0xff] }
 0x457   : > { %8423 = vrot.lane.b32.xlu0 %v9567_v0, %s8819_s25  ;;  %8408 = vrot.lane.b32.xlu1 %v9567_v0, %s8818_s24 }
 0x45b   : > { %8433 = vrot.lane.b32.xlu0 %v9553_v58, %s8820_s26  ;;  %8413 = vrot.lane.b32.xlu1 %v9577_v3, %s8818_s24  ;;  %s10929_s24 = smov 78  }
 0x45f   : > { %8443 = vrot.lane.b32.xlu0 %v9577_v3, %s8820_s26  ;;  %8418 = vrot.lane.b32.xlu1 %v9553_v58, %s8819_s25 }
 0x463   : > { %8453 = vrot.lane.b32.xlu0 %v9567_v0, %s8821_s27  ;;  %8428 = vrot.lane.b32.xlu1 %v9577_v3, %s8819_s25  ;;  %s10930_s25 = smov 56  }
 0x467   : > { %8463 = vrot.lane.b32.xlu0 %v9553_v58, %s8822_s28  ;;  %8438 = vrot.lane.b32.xlu1 %v9567_v0, %s8820_s26  ;;  %s10931_s26 = smov 55  }
 0x46b   : > { %8473 = vrot.lane.b32.xlu0 %v9577_v3, %s8822_s28  ;;  %8448 = vrot.lane.b32.xlu1 %v9553_v58, %s8821_s27 }
 0x46f   : > { %8483 = vrot.lane.b32.xlu0 %v9567_v0, %s8823_s29  ;;  %8458 = vrot.lane.b32.xlu1 %v9577_v3, %s8821_s27  ;;  %s10932_s27 = smov 54  }
 0x473   : > { %8493 = vrot.lane.b32.xlu0 %v9553_v58, %s8824_s30  ;;  %8468 = vrot.lane.b32.xlu1 %v9567_v0, %s8822_s28  ;;  %s10933_s28 = smov 127  }
 0x477   : > { %8503 = vrot.lane.b32.xlu0 %v9577_v3, %s8824_s30  ;;  %8478 = vrot.lane.b32.xlu1 %v9553_v58, %s8823_s29 }
 0x47b   : > { %8513 = vrot.lane.b32.xlu0 %v9567_v0, %s8825_s11  ;;  %8488 = vrot.lane.b32.xlu1 %v9577_v3, %s8823_s29  ;;  %s10934_s29 = smov 50  }
 0x47f   : > { %8523 = vrot.lane.b32.xlu0 %v9553_v58, %s8826_s12  ;;  %8498 = vrot.lane.b32.xlu1 %v9567_v0, %s8824_s30  ;;  %s10935_s30 = smov 49  }
 0x483   : > { %8533 = vrot.lane.b32.xlu0 %v9577_v3, %s8826_s12  ;;  %8508 = vrot.lane.b32.xlu1 %v9553_v58, %s8825_s11 }
 0x487   : > { %8543 = vrot.lane.b32.xlu0 %v9567_v0, %s8827_s15  ;;  %8518 = vrot.lane.b32.xlu1 %v9577_v3, %s8825_s11  ;;  %s10936_s11 = smov 126  }
 0x48b   : > { %8553 = vrot.lane.b32.xlu0 %v9553_v58, %s8828_s16  ;;  %8528 = vrot.lane.b32.xlu1 %v9567_v0, %s8826_s12  ;;  %s10937_s12 = smov 48  }
 0x48f   : > { %8563 = vrot.lane.b32.xlu0 %v9577_v3, %s8828_s16  ;;  %8538 = vrot.lane.b32.xlu1 %v9553_v58, %s8827_s15 }
 0x493   : > { %8573 = vrot.lane.b32.xlu0 %v9567_v0, %s10929_s24  ;;  %8548 = vrot.lane.b32.xlu1 %v9577_v3, %s8827_s15  ;;  %s10938_s15 = smov 122  }
 0x497   : > { %8583 = vrot.lane.b32.xlu0 %v9553_v58, %s10930_s25  ;;  %8558 = vrot.lane.b32.xlu1 %v9567_v0, %s8828_s16  ;;  %s10939_s16 = smov 44  }
 0x49b   : > { %8593 = vrot.lane.b32.xlu0 %v9577_v3, %s10930_s25  ;;  %8568 = vrot.lane.b32.xlu1 %v9553_v58, %s10929_s24 }
 0x49f   : > { %8603 = vrot.lane.b32.xlu0 %v9567_v0, %s10931_s26  ;;  %8578 = vrot.lane.b32.xlu1 %v9577_v3, %s10929_s24 }
 0x4a3   : > { %8613 = vrot.lane.b32.xlu0 %v9553_v58, %s10932_s27  ;;  %8588 = vrot.lane.b32.xlu1 %v9567_v0, %s10930_s25  ;;  %s10941_s25 = smov 120  }
 0x4a7   : > { %8623 = vrot.lane.b32.xlu0 %v9577_v3, %s10932_s27  ;;  %8598 = vrot.lane.b32.xlu1 %v9553_v58, %s10931_s26 }
 0x4ab   : > { %8638 = vrot.lane.b32.xlu0 %v9567_v0, %s10933_s28  ;;  %8608 = vrot.lane.b32.xlu1 %v9577_v3, %s10931_s26 }
 0x4af   : > { %8643 = vrot.lane.b32.xlu0 %v9567_v0, %s10934_s29  ;;  %8618 = vrot.lane.b32.xlu1 %v9567_v0, %s10932_s27  ;;  %s7905_s27 = sshll.u32 %s11010_s14, 6 }
 0x4b3   : > { %8653 = vrot.lane.b32.xlu0 %v9577_v3, %s10934_s29  ;;  %8628 = vrot.lane.b32.xlu1 %v9553_v58, %s10933_s28 }
 0x4b7   : > { %8663 = vrot.lane.b32.xlu0 %v9567_v0, %s10935_s30  ;;  %8633 = vrot.lane.b32.xlu1 %v9553_v58, %s10934_s29 }
 0x4bb   : > { %8673 = vrot.lane.b32.xlu0 %v9553_v58, %s10936_s11  ;;  %8648 = vrot.lane.b32.xlu1 %v9577_v3, %s10933_s28  ;;  %s10942_s28 = smov 42  }
 0x4bf   : > { %8678 = vrot.lane.b32.xlu0 %v9553_v58, %s10937_s12  ;;  %8658 = vrot.lane.b32.xlu1 %v9553_v58, %s10935_s30 }
 0x4c3   : > { %8693 = vrot.lane.b32.xlu0 %v9577_v3, %s10936_s11  ;;  %8668 = vrot.lane.b32.xlu1 %v9577_v3, %s10935_s30  ;;  %s10853_s30 = scalar_lea.vmem %s10888_s10, %s7905_s27 }
 0x4c5   : > { %v8404_v5 = vpop.permute.xlu1 %8403 }
 0x4c6   : > { %v8406_v6 = vunpack.i.h.bf16 %v8404_v5  ;;  %v8405_v7 = vunpack.i.l.bf16 %v8404_v5 }
 0x4c7   : > { %8703 = vrot.lane.b32.xlu0 %v9553_v58, %s10938_s15  ;;  %8683 = vrot.lane.b32.xlu1 %v9567_v0, %s10936_s11 }
 0x4c8   : > { %v4301_v12 = vsel %vm1080_vm10, %v8405_v7, %v8406_v6 }
 0x4c9   : > { %v8424_v8 = vpop.permute.xlu0 %8423  ;;  %v8409_v9 = vpop.permute.xlu1 %8408 }
 0x4ca   : > { %v8411_v10 = vunpack.i.h.bf16 %v8409_v9  ;;  %v8410_v11 = vunpack.i.l.bf16 %v8409_v9  ;;  %v8426_v20 = vunpack.i.h.bf16 %v8424_v8  ;;  %v8425_v21 = vunpack.i.l.bf16 %v8424_v8 }
 0x4cb   : > { %8708 = vrot.lane.b32.xlu0 %v9553_v58, %s10939_s16  ;;  %8688 = vrot.lane.b32.xlu1 %v9567_v0, %s10937_s12 }
 0x4cc   : > { %v4303_v14 = vsel %vm1080_vm10, %v8410_v11, %v8411_v10  ;;  %v4437_v32 = vsel %vm1183_vm11, %v8425_v21, %v8426_v20  ;;  %v7735_v10 = vld [vmem:[%s10880_s2 + $0xe0] sm:$0xff] }
 0x4cd   : > { %v9699_v15 = vpop.permute.xlu0 %8433  ;;  %v8414_v16 = vpop.permute.xlu1 %8413  ;;  %v7939_v17 = vpack.c.bf16 %v4303_v14, %v4301_v12 }
 0x4ce   : > { %v8416_v18 = vunpack.i.h.bf16 %v8414_v16  ;;  %v8415_v19 = vunpack.i.l.bf16 %v8414_v16  ;;  %v8436_v37 = vunpack.i.h.bf16 %v9699_v15  ;;  %v8435_v46 = vunpack.i.l.bf16 %v9699_v15 }
 0x4cf   : > { %8723 = vrot.lane.b32.xlu0 %v9577_v3, %s10938_s15  ;;  %8698 = vrot.lane.b32.xlu1 %v9577_v3, %s10937_s12 }
 0x4d0   : > { %v4300_v22 = vsel %vm1080_vm10, %v8415_v19, %v8405_v7  ;;  %v4302_v23 = vsel %vm1080_vm10, %v8416_v18, %v8410_v11  ;;  %7940 = vmatprep.subr.bf16.mxu1 %v7939_v17  ;;  %v4569_v40 = vsel %vm1286_vm12, %v8435_v46, %v8436_v37  ;;  %v7736_v18 = vld [vmem:[%s10880_s2 + $0xe8] sm:$0xff]  ;;  %vm10948_vm10 = vcmask 695296  }
 0x4d1   : > { %v7941_v24 = vpack.c.bf16 %v4302_v23, %v4300_v22  ;;  %v9707_v25 = vpop.permute.xlu0 %8443  ;;  %v8419_v26 = vpop.permute.xlu1 %8418  ;;  %v7381_v19 = vld [vmem:[%s10883_s5 + $0x8] sm:$0xff]  ;;  %v7737_v22 = vld [vmem:[%s10880_s2 + $0xf0] sm:$0xff]  ;;  %v7412_v23 = vld [vmem:[%s10884_s6] sm:$0xff] }
 0x4d2   : > { %v8421_v27 = vunpack.i.h.bf16 %v8419_v26  ;;  %v8420_v28 = vunpack.i.l.bf16 %v8419_v26  ;;  %v8446_v1 = vunpack.i.h.bf16 %v9707_v25  ;;  %v8445_v2 = vunpack.i.l.bf16 %v9707_v25 }
 0x4d3   : > { %8733 = vrot.lane.b32.xlu0 %v9553_v58, %s10940_s21  ;;  %8713 = vrot.lane.b32.xlu1 %v9567_v0, %s10938_s15 }
 0x4d4   : > { %7942 = vmatpush1.bf16.msra.mxu1 %v7941_v24  ;;  %v4435_v30 = vsel %vm1183_vm11, %v8420_v28, %v8421_v27  ;;  %v4568_v12 = vsel %vm1286_vm12, %v8445_v2, %v8435_v46 }
 0x4d5   : > { %v9718_v41 = vpop.permute.xlu0 %8453  ;;  %v8429_v43 = vpop.permute.xlu1 %8428  ;;  %v7943_v44 = vpack.c.bf16 %v4437_v32, %v4435_v30  ;;  %v7738_v30 = vld [vmem:[%s10880_s2 + $0xf8] sm:$0xff] }
 0x4d6   : > { %v8431_v45 = vunpack.i.h.bf16 %v8429_v43  ;;  %v8430_v31 = vunpack.i.l.bf16 %v8429_v43  ;;  %v8456_v7 = vunpack.i.h.bf16 %v9718_v41  ;;  %v8455_v8 = vunpack.i.l.bf16 %v9718_v41 }
 0x4d7   : > { %7731 = vmatmul.mubr.msk.f32.vlgmr.msra.gmra.mrb[6].mxu1 %vm3255_vm4, %v7727_v29  ;;  %8738 = vrot.lane.b32.xlu0 %v9553_v58, %s8837_s19 }
 0x4d8   : > { %v4436_v33 = vsel %vm1183_vm11, %v8431_v45, %v8425_v21  ;;  %v4434_v34 = vsel %vm1183_vm11, %v8430_v31, %v8420_v28  ;;  %8718 = vrot.lane.b32.xlu1 %v9567_v0, %s10939_s16  ;;  %7944 = vmatprep.subr.bf16.mxu1 %v7943_v44  ;;  %vm10949_vm11 = vmmov %vm10943_vm5 }
 0x4d9   : > { %v7945_v48 = vpack.c.bf16 %v4436_v33, %v4434_v34  ;;  %v9732_v49 = vpop.permute.xlu0 %8463  ;;  %v8439_v50 = vpop.permute.xlu1 %8438  ;;  %4390 = vmatprep.mubr.f32.mxu1 %v8813_v13  ;;  %v7380_v34 = vld [vmem:[%s10883_s5] sm:$0xff] }
 0x4da   : > { %v8441_v51 = vunpack.i.h.bf16 %v8439_v50  ;;  %v8440_v36 = vunpack.i.l.bf16 %v8439_v50  ;;  %v8466_v43 = vunpack.i.h.bf16 %v9732_v49  ;;  %v8465_v44 = vunpack.i.l.bf16 %v9732_v49  ;;  %v7744_v49 = vld [vmem:[%s10880_s2 + $0x108] sm:$0xff] }
 0x4db   : > { %7732 = vmatmul.mubr.msk.f32.gmra.mrb[8].mxu1 %vm3255_vm4, %v7728_v47  ;;  %8753 = vrot.lane.b32.xlu0 %v9577_v3, %s10940_s21 }
 0x4dc   : > { %8728 = vrot.lane.b32.xlu1 %v9577_v3, %s10939_s16  ;;  %7946 = vmatpush1.bf16.msra.mxu1 %v7945_v48  ;;  %v4571_v42 = vsel %vm1286_vm12, %v8440_v36, %v8441_v51  ;;  %v4570_v9 = vsel %vm1286_vm12, %v8446_v1, %v8440_v36  ;;  %v4837_v48 = vsel %vm1492_vm14, %v8465_v44, %v8466_v43  ;;  %v7382_v36 = vld [vmem:[%s10883_s5 + $0x10] sm:$0xff]  ;;  %v7746_v1 = vld [vmem:[%s10880_s2 + $0x118] sm:$0xff]  ;;  %vm10950_vm12 = vmmov %vm10943_vm5 }
 0x4dd   : > { %v9745_v52 = vpop.permute.xlu0 %8473  ;;  %v9747_v53 = vpop.permute.xlu1 %8448  ;;  %4396 = vmatprep.mubr.f32.mxu1 %v8813_v13  ;;  %v7947_v55 = vpack.c.bf16 %v4571_v42, %v4569_v40  ;;  %v7949_v16 = vpack.c.bf16 %v4570_v9, %v4568_v12 }
 0x4de   : > { %v8451_v57 = vunpack.i.h.bf16 %v9747_v53  ;;  %v8450_v59 = vunpack.i.l.bf16 %v9747_v53  ;;  %v7383_v53 = vld [vmem:[%s10883_s5 + $0x18] sm:$0xff]  ;;  %v8476_v2 = vunpack.i.h.bf16 %v9745_v52 }
 0x4df   : > { %7733 = vmatmul.mubr.msk.f32.gmra.mrb[10].mxu1 %vm3255_vm4, %v7729_v39  ;;  %8763 = vrot.lane.b32.xlu0 %v9553_v58, %s10941_s25  ;;  %v7745_v39 = vld [vmem:[%s10880_s2 + $0x110] sm:$0xff] }
 0x4e0   : > { %8743 = vrot.lane.b32.xlu1 %v9567_v0, %s10940_s21  ;;  %7948 = vmatprep.subr.bf16.mxu1 %v7947_v55  ;;  %v4703_v11 = vsel %vm1389_vm13, %v8450_v59, %v8451_v57 }
 0x4e1   : > { %v9762_v5 = vpop.permute.xlu0 %8483  ;;  %v8459_v6 = vpop.permute.xlu1 %8458  ;;  %4402 = vmatprep.mubr.f32.mxu1 %v8813_v13 }
 0x4e2   : > { %v8461_v26 = vunpack.i.h.bf16 %v8459_v6  ;;  %v8460_v27 = vunpack.i.l.bf16 %v8459_v6  ;;  %v8475_v6 = vunpack.i.l.bf16 %v9745_v52 }
 0x4e3   : > { %7734 = vmatmul.mubr.msk.f32.gmra.mrb[12].mxu1 %vm3255_vm4, %v7730_v61  ;;  %8768 = vrot.lane.b32.xlu0 %v9553_v58, %s10942_s28  ;;  %v4705_v58 = vsel %vm1389_vm13, %v8455_v8, %v8456_v7  ;;  %v8486_v7 = vunpack.i.h.bf16 %v9762_v5 }
 0x4e4   : > { %8748 = vrot.lane.b32.xlu1 %v9567_v0, %s8837_s19  ;;  %4518 = vmatprep.mubr.f32.mxu1 %v8813_v13  ;;  %v7951_v17 = vpack.c.bf16 %v4705_v58, %v4703_v11  ;;  %v4704_v45 = vsel %vm1389_vm13, %v8461_v26, %v8455_v8  ;;  %v4702_v31 = vsel %vm1389_vm13, %v8460_v27, %v8450_v59  ;;  %v8485_v8 = vunpack.i.l.bf16 %v9762_v5  ;;  %v7413_v11 = vld [vmem:[%s10884_s6 + $0x8] sm:$0xff]  ;;  %v7759_v5 = vld [vmem:[%s10880_s2 + $0x140] sm:$0xff]  ;;  %vm10951_vm13 = vmmov %vm10943_vm5 }
 0x4e5   : > { %v9779_v14 = vpop.permute.xlu0 %8493  ;;  %v9781_v15 = vpop.permute.xlu1 %8468  ;;  %v7953_v47 = vpack.c.bf16 %v4704_v45, %v4702_v31  ;;  %v4836_v26 = vsel %vm1492_vm14, %v8475_v6, %v8465_v44 }
 0x4e6   : > { %v8471_v28 = vunpack.i.h.bf16 %v9781_v15  ;;  %v8470_v29 = vunpack.i.l.bf16 %v9781_v15  ;;  %v4973_v31 = vsel %vm1595_vm15, %v8485_v8, %v8486_v7 }
 0x4e7   : > { %7739 = vmatmul.mubr.msk.f32.vlgmr.msra.gmra.mrb[6].mxu1 %vm3255_vm4, %v7735_v10  ;;  %8783 = vrot.lane.b32.xlu0 %v9577_v3, %s10941_s25 }
 0x4e8   : > { %7950 = vmatpush1.bf16.msra.mxu1 %v7949_v16  ;;  %8758 = vrot.lane.b32.xlu1 %v9577_v3, %s8837_s19  ;;  %v4839_v37 = vsel %vm1492_vm14, %v8470_v29, %v8471_v28 }
 0x4e9   : > { %7952 = vmatprep.subr.bf16.mxu1 %v7951_v17  ;;  %v9795_v20 = vpop.permute.xlu0 %8503  ;;  %v9797_v21 = vpop.permute.xlu1 %8478  ;;  %4524 = vmatprep.mubr.f32.mxu1 %v8813_v13  ;;  %v4838_v17 = vsel %vm1492_vm14, %v8476_v2, %v8470_v29  ;;  %vm10952_vm14 = vmmov %vm10948_vm10 }
 0x4ea   : > { %v8481_v55 = vunpack.i.h.bf16 %v9797_v21  ;;  %v8480_v57 = vunpack.i.l.bf16 %v9797_v21 }
 0x4eb   : > { %7740 = vmatmul.mubr.msk.f32.gmra.mrb[8].mxu1 %vm3255_vm4, %v7736_v18  ;;  %7391 = vperm.xlu0 %8391, %v7381_v19   ;;  %v7751_v19 = vld [vmem:[%s10880_s2 + $0x120] sm:$0xff] }
 0x4ec   : > { %8773 = vrot.lane.b32.xlu1 %v9567_v0, %s10941_s25  ;;  %4530 = vmatprep.mubr.f32.mxu1 %v8813_v13  ;;  %v4971_v52 = vsel %vm1595_vm15, %v8480_v57, %v8481_v55 }
 0x4ed   : > { %v9810_v24 = vpop.permute.xlu0 %8513  ;;  %v9812_v25 = vpop.permute.xlu1 %8488 }
 0x4ef   : > { %7741 = vmatmul.mubr.msk.f32.gmra.mrb[10].mxu1 %vm3255_vm4, %v7737_v22  ;;  %7418 = vperm.xlu0 %8391, %v7412_v23  }
 0x4f0   : > { %8778 = vrot.lane.b32.xlu1 %v9567_v0, %s10942_s28  ;;  %4536 = vmatprep.mubr.f32.mxu1 %v8813_v13  ;;  %v7743_v0 = vld [vmem:[%s10880_s2 + $0x100] sm:$0xff] }
 0x4f1   : > { %v9823_v32 = vpop.permute.xlu0 %8523  ;;  %v9825_v41 = vpop.permute.xlu1 %8498 }
 0x4f3   : > { %7742 = vmatmul.mubr.msk.f32.gmra.mrb[12].mxu1 %vm3255_vm4, %v7738_v30  ;;  %v7957_v30 = vpack.c.bf16 %v4838_v17, %v4836_v26  ;;  %v8501_v17 = vunpack.i.h.bf16 %v9825_v41  ;;  %v7754_v26 = vld [vmem:[%s10880_s2 + $0x138] sm:$0xff] }
 0x4f4   : > { %8788 = vrot.lane.b32.xlu1 %v9577_v3, %s10942_s28  ;;  %4652 = vmatprep.mubr.f32.mxu1 %v8813_v13  ;;  %v7955_v3 = vpack.c.bf16 %v4839_v37, %v4837_v48  ;;  %v7959_v37 = vpack.c.bf16 %v4973_v31, %v4971_v52  ;;  %v8500_v52 = vunpack.i.l.bf16 %v9825_v41 }
 0x4f5   : > { %v9839_v46 = vpop.permute.xlu0 %8533  ;;  %v9841_v33 = vpop.permute.xlu1 %8508 }
 0x4f6   : > { %v5107_v21 = vsel %vm1698_vm0, %v8500_v52, %v8501_v17 }
 0x4f7   : > { %7747 = vmatmul.mubr.msk.f32.vlgmr.msra.gmra.mrb[6].mxu1 %vm3255_vm4, %v7743_v0 }
 0x4f8   : > { %7954 = vmatpush1.bf16.msra.mxu1 %v7953_v47  ;;  %7386 = vperm.xlu1 %8390, %v7380_v34   ;;  %v7752_v47 = vld [vmem:[%s10880_s2 + $0x128] sm:$0xff] }
 0x4f9   : > { %7956 = vmatprep.subr.bf16.mxu1 %v7955_v3  ;;  %v8544_v50 = vpop.permute.xlu0 %8543  ;;  %v9851_v51 = vpop.permute.xlu1 %8518  ;;  %4658 = vmatprep.mubr.f32.mxu1 %v8813_v13 }
 0x4fa   : > { %v8546_v59 = vunpack.i.h.bf16 %v8544_v50  ;;  %v8545_v61 = vunpack.i.l.bf16 %v8544_v50 }
 0x4fb   : > { %7748 = vmatmul.mubr.msk.f32.gmra.mrb[8].mxu1 %vm3255_vm4, %v7744_v49 }
 0x4fc   : > { %7396 = vperm.xlu1 %8390, %v7382_v36   ;;  %4664 = vmatprep.mubr.f32.mxu1 %v8813_v13  ;;  %v9897_v23 = vsel %vm2007_vm9, %v8545_v61, %v8546_v59 }
 0x4fd   : > { %v8554_v40 = vpop.permute.xlu0 %8553  ;;  %v9862_v42 = vpop.permute.xlu1 %8528 }
 0x4fe   : > { %v8555_v12 = vunpack.i.l.bf16 %v8554_v40  ;;  %v8556_v0 = vunpack.i.h.bf16 %v8554_v40 }
 0x4ff   : > { %7749 = vmatmul.mubr.msk.f32.gmra.mrb[10].mxu1 %vm3255_vm4, %v7745_v39 }
 0x500   : > { %7401 = vperm.xlu1 %8390, %v7383_v53   ;;  %4670 = vmatprep.mubr.f32.mxu1 %v8813_v13  ;;  %v9920_v40 = vsel %vm2110_vm8, %v8555_v12, %v8556_v0 }
 0x501   : > { %v8564_v9 = vpop.permute.xlu0 %8563  ;;  %v8539_v10 = vpop.permute.xlu1 %8538 }
 0x502   : > { %v8565_v15 = vunpack.i.l.bf16 %v8564_v9  ;;  %v8541_v16 = vunpack.i.h.bf16 %v8539_v10  ;;  %v8540_v58 = vunpack.i.l.bf16 %v8539_v10  ;;  %v8566_v50 = vunpack.i.h.bf16 %v8564_v9 }
 0x503   : > { %7750 = vmatmul.mubr.msk.f32.gmra.mrb[12].mxu1 %vm3255_vm4, %v7746_v1 }
 0x504   : > { %v9887_v18 = vsel %vm2110_vm8, %v8565_v15, %v8555_v12  ;;  %7423 = vperm.xlu1 %8390, %v7413_v11   ;;  %4786 = vmatprep.mubr.f32.mxu1 %v8813_v13  ;;  %v9894_v22 = vsel %vm2007_vm9, %v8540_v58, %v8541_v16  ;;  %v8491_v16 = vunpack.i.h.bf16 %v9812_v25 }
 0x505   : > { %v8574_v27 = vpop.permute.xlu0 %8573  ;;  %v8549_v28 = vpop.permute.xlu1 %8548  ;;  %v7975_v29 = vpack.c.bf16 %v9897_v23, %v9894_v22  ;;  %v7785_v22 = vld [vmem:[%s10880_s2 + $0x1b0] sm:$0xff] }
 0x506   : > { %v8551_v43 = vunpack.i.h.bf16 %v8549_v28  ;;  %v8550_v45 = vunpack.i.l.bf16 %v8549_v28  ;;  %v8576_v53 = vunpack.i.h.bf16 %v8574_v27  ;;  %v8575_v55 = vunpack.i.l.bf16 %v8574_v27 }
 0x507   : > { %7755 = vmatmul.mubr.msk.f32.vlgmr.msra.gmra.mrb[6].mxu1 %vm3255_vm4, %v7751_v19  ;;  %v8496_v28 = vunpack.i.h.bf16 %v9779_v14 }
 0x508   : > { %v9907_v34 = vsel %vm2007_vm9, %v8551_v43, %v8545_v61  ;;  %v9910_v44 = vsel %vm2007_vm9, %v8550_v45, %v8540_v58  ;;  %7958 = vmatpush1.bf16.msra.mxu1 %v7957_v30  ;;  %4792 = vmatprep.mubr.f32.mxu1 %v8813_v13  ;;  %v7753_v61 = vld [vmem:[%s10880_s2 + $0x130] sm:$0xff]  ;;  %v8490_v58 = vunpack.i.l.bf16 %v9812_v25  ;;  %v9952_v25 = vsel %vm2213_vm7, %v8575_v55, %v8576_v53 }
 0x509   : > { %7960 = vmatprep.subr.bf16.mxu1 %v7959_v37  ;;  %v8584_v3 = vpop.permute.xlu0 %8583  ;;  %v8559_v49 = vpop.permute.xlu1 %8558  ;;  %v8495_v30 = vunpack.i.l.bf16 %v9779_v14  ;;  %v7767_v14 = vld [vmem:[%s10880_s2 + $0x160] sm:$0xff] }
 0x50a   : > { %v8561_v36 = vunpack.i.h.bf16 %v8559_v49  ;;  %v8560_v39 = vunpack.i.l.bf16 %v8559_v49  ;;  %v8585_v10 = vunpack.i.l.bf16 %v8584_v3  ;;  %v4970_v49 = vsel %vm1595_vm15, %v8490_v58, %v8480_v57 }
 0x50b   : > { %7756 = vmatmul.mubr.msk.f32.gmra.mrb[8].mxu1 %vm3255_vm4, %v7752_v47  ;;  %v4972_v47 = vsel %vm1595_vm15, %v8491_v16, %v8485_v8  ;;  %v5105_v53 = vsel %vm1698_vm0, %v8495_v30, %v8496_v28  ;;  %vm10953_vm15 = vcmask 408576  }
 0x50c   : > { %v9923_v59 = vsel %vm2110_vm8, %v8566_v50, %v8560_v39  ;;  %4798 = vmatprep.mubr.f32.mxu1 %v8813_v13  ;;  %v9930_v1 = vsel %vm2110_vm8, %v8560_v39, %v8561_v36  ;;  %v8586_v50 = vunpack.i.h.bf16 %v8584_v3 }
 0x50d   : > { %v8594_v6 = vpop.permute.xlu0 %8593  ;;  %v8569_v7 = vpop.permute.xlu1 %8568 }
 0x50e   : > { %v8595_v11 = vunpack.i.l.bf16 %v8594_v6  ;;  %v8571_v12 = vunpack.i.h.bf16 %v8569_v7  ;;  %v8570_v15 = vunpack.i.l.bf16 %v8569_v7 }
 0x50f   : > { %7757 = vmatmul.mubr.msk.f32.gmra.mrb[10].mxu1 %vm3255_vm4, %v7753_v61  ;;  %v8596_v61 = vunpack.i.h.bf16 %v8594_v6  ;;  %v7760_v6 = vld [vmem:[%s10880_s2 + $0x148] sm:$0xff] }
 0x510   : > { %v9942_v19 = vsel %vm2316_vm6, %v8595_v11, %v8585_v10  ;;  %4804 = vmatprep.mubr.f32.mxu1 %v8813_v13  ;;  %v9949_v27 = vsel %vm2213_vm7, %v8570_v15, %v8571_v12  ;;  %v7963_v12 = vpack.c.bf16 %v5107_v21, %v5105_v53 }
 0x511   : > { %v8604_v43 = vpop.permute.xlu0 %8603  ;;  %v8579_v45 = vpop.permute.xlu1 %8578 }
 0x512   : > { %v8581_v0 = vunpack.i.h.bf16 %v8579_v45  ;;  %v8580_v37 = vunpack.i.l.bf16 %v8579_v45  ;;  %v8606_v16 = vunpack.i.h.bf16 %v8604_v43  ;;  %v8605_v58 = vunpack.i.l.bf16 %v8604_v43 }
 0x513   : > { %7758 = vmatmul.mubr.msk.f32.gmra.mrb[12].mxu1 %vm3255_vm4, %v7754_v26 }
 0x514   : > { %v9966_v36 = vsel %vm2213_vm7, %v8581_v0, %v8575_v55  ;;  %v9969_v39 = vsel %vm2213_vm7, %v8580_v37, %v8570_v15  ;;  %4920 = vmatprep.mubr.f32.mxu1 %v8813_v13  ;;  %v7961_v55 = vpack.c.bf16 %v4972_v47, %v4970_v49  ;;  %v9985_v15 = vsel %vm2316_vm6, %v8585_v10, %v8586_v50 }
 0x515   : > { %v8614_v8 = vpop.permute.xlu0 %8613  ;;  %v8589_v3 = vpop.permute.xlu1 %8588 }
 0x516   : > { %v8591_v7 = vunpack.i.h.bf16 %v8589_v3  ;;  %v8590_v11 = vunpack.i.l.bf16 %v8589_v3  ;;  %v8615_v0 = vunpack.i.l.bf16 %v8614_v8 }
 0x517   : > { %7763 = vmatmul.mubr.msk.f32.vlgmr.msra.gmra.mrb[6].mxu1 %vm3255_vm4, %v7759_v5  ;;  %v7761_v5 = vld [vmem:[%s10880_s2 + $0x150] sm:$0xff] }
 0x518   : > { %v9988_v17 = vsel %vm2316_vm6, %v8596_v61, %v8590_v11  ;;  %7962 = vmatpush1.bf16.msra.mxu1 %v7961_v55  ;;  %4926 = vmatprep.mubr.f32.mxu1 %v8813_v13  ;;  %v9995_v26 = vsel %vm2316_vm6, %v8590_v11, %v8591_v7  ;;  %vm10944_vm6 = vcmask 449536   ;;  %v8516_v61 = vunpack.i.h.bf16 %v9810_v24 }
 0x519   : > { %7964 = vmatprep.subr.bf16.mxu1 %v7963_v12  ;;  %v8624_v10 = vpop.permute.xlu0 %8623  ;;  %v8599_v45 = vpop.permute.xlu1 %8598  ;;  %vm10945_vm7 = vmmov %vm10944_vm6  ;;  %v8505_v12 = vunpack.i.l.bf16 %v9795_v20 }
 0x51a   : > { %v8625_v37 = vunpack.i.l.bf16 %v8624_v10  ;;  %v8601_v47 = vunpack.i.h.bf16 %v8599_v45  ;;  %v8600_v49 = vunpack.i.l.bf16 %v8599_v45  ;;  %v10013_v3 = vsel %vm10945_vm7, %v8605_v58, %v8606_v16  ;;  %vm10946_vm8 = vmmov %vm10944_vm6 }
 0x51b   : > { %7764 = vmatmul.mubr.msk.f32.gmra.mrb[8].mxu1 %vm3255_vm4, %v7760_v6  ;;  %v8511_v6 = vunpack.i.h.bf16 %v9841_v33  ;;  %v8510_v45 = vunpack.i.l.bf16 %v9841_v33  ;;  %v8506_v16 = vunpack.i.h.bf16 %v9795_v20  ;;  %vm10947_vm9 = vmmov %vm10944_vm6  ;;  %v5104_v57 = vsel %vm1698_vm0, %v8505_v12, %v8495_v30 }
 0x51c   : > { %v10003_v50 = vsel %vm10943_vm5, %v8625_v37, %v8615_v0  ;;  %4932 = vmatprep.mubr.f32.mxu1 %v8813_v13  ;;  %v10010_v21 = vsel %vm10944_vm6, %v8600_v49, %v8601_v47  ;;  %v8616_v37 = vunpack.i.h.bf16 %v8614_v8  ;;  %v8515_v8 = vunpack.i.l.bf16 %v9810_v24  ;;  %vm10956_vm6 = vmmov %vm10953_vm15  ;;  %v7775_v24 = vld [vmem:[%s10880_s2 + $0x180] sm:$0xff] }
 0x51d   : > { %v10015_v53 = vpop.permute.xlu0 %8638  ;;  %v8609_v55 = vpop.permute.xlu1 %8608  ;;  %v5239_v31 = vsel %vm10948_vm10, %v8510_v45, %v8511_v6  ;;  %vm10957_vm7 = vmmov %vm10956_vm6 }
 0x51e   : > { %v8611_v7 = vunpack.i.h.bf16 %v8609_v55  ;;  %v8610_v11 = vunpack.i.l.bf16 %v8609_v55  ;;  %v7762_v55 = vld [vmem:[%s10880_s2 + $0x158] sm:$0xff]  ;;  %v8641_v41 = vunpack.i.h.bf16 %v10015_v53 }
 0x51f   : > { %7765 = vmatmul.mubr.msk.f32.gmra.mrb[10].mxu1 %vm3255_vm4, %v7761_v5  ;;  %v10049_v5 = vsel %vm10949_vm11, %v8615_v0, %v8616_v37  ;;  %v8520_v37 = vunpack.i.l.bf16 %v9851_v51  ;;  %vm10118_vm11 = vmneg %vm3037_vm2 }
 0x520   : > { %v10025_v47 = vsel %vm10946_vm8, %v8611_v7, %v8605_v58  ;;  %v10028_v28 = vsel %vm10947_vm9, %v8610_v11, %v8600_v49  ;;  %4938 = vmatprep.mubr.f32.mxu1 %v8813_v13  ;;  %v5106_v58 = vsel %vm1698_vm0, %v8506_v16, %v8500_v52  ;;  %v8626_v49 = vunpack.i.h.bf16 %v8624_v10  ;;  %vm10958_vm8 = vmmov %vm10956_vm6 }
 0x521   : > { %v8644_v20 = vpop.permute.xlu0 %8643  ;;  %v8619_v43 = vpop.permute.xlu1 %8618  ;;  %v8640_v52 = vunpack.i.l.bf16 %v10015_v53  ;;  %v5241_v53 = vsel %vm10952_vm14, %v8515_v8, %v8516_v61  ;;  %v7768_v61 = vld [vmem:[%s10880_s2 + $0x168] sm:$0xff]  ;;  %vm10954_vm0 = vcmask 1039360  }
 0x522   : > { %v8621_v7 = vunpack.i.h.bf16 %v8619_v43  ;;  %v8620_v11 = vunpack.i.l.bf16 %v8619_v43  ;;  %v7965_v43 = vpack.c.bf16 %v5106_v58, %v5104_v57  ;;  %v8645_v16 = vunpack.i.l.bf16 %v8644_v20  ;;  %vm10955_vm5 = vmmov %vm10954_vm0 }
 0x523   : > { %7766 = vmatmul.mubr.msk.f32.gmra.mrb[12].mxu1 %vm3255_vm4, %v7762_v55  ;;  %v8646_v57 = vunpack.i.h.bf16 %v8644_v20  ;;  %v3540_v0 = vsel %vm10955_vm5, %v8640_v52, %v8641_v41  ;;  %v7769_v41 = vld [vmem:[%s10880_s2 + $0x170] sm:$0xff]  ;;  %vm10959_vm9 = vmmov %vm10954_vm0 }
 0x524   : > { %v10054_v10 = vsel %vm10950_vm12, %v8626_v49, %v8620_v11  ;;  %5054 = vmatprep.mubr.f32.mxu1 %v8813_v13  ;;  %v10061_v30 = vsel %vm10951_vm13, %v8620_v11, %v8621_v7  ;;  %v7967_v7 = vpack.c.bf16 %v5241_v53, %v5239_v31  ;;  %vm10960_vm10 = vmmov %vm10954_vm0 }
 0x525   : > { %v8654_v12 = vpop.permute.xlu0 %8653  ;;  %v8629_v6 = vpop.permute.xlu1 %8628  ;;  %vm10963_vm12 = vmmov %vm10952_vm14 }
 0x526   : > { %v8656_v55 = vunpack.i.h.bf16 %v8654_v12  ;;  %v8631_v49 = vunpack.i.h.bf16 %v8629_v6  ;;  %v8630_v2 = vunpack.i.l.bf16 %v8629_v6  ;;  %v8655_v20 = vunpack.i.l.bf16 %v8654_v12  ;;  %vm10964_vm13 = vmmov %vm10963_vm12 }
 0x527   : > { %7771 = vmatmul.mubr.msk.f32.vlgmr.msra.gmra.mrb[6].mxu1 %vm3255_vm4, %v7767_v14  ;;  %vm7921_vm14 = vmpackc.low %vm10118_vm11, %vm10118_vm11  ;;  %vm10973_vm11 = vcmask 392192  }
 0x528   : > { %v10072_v58 = vsel %vm10953_vm15, %v8656_v55, %v8645_v16  ;;  %7966 = vmatpush1.bf16.msra.mxu1 %v7965_v43  ;;  %5060 = vmatprep.mubr.f32.mxu1 %v8813_v13  ;;  %v3538_v11 = vsel %vm10954_vm0, %v8630_v2, %v8631_v49  ;;  %vm10965_vm15 = vcmask 687104   ;;  %vm10966_vm0 = vcmask 400384  }
 0x529   : > { %7968 = vmatprep.subr.bf16.mxu1 %v7967_v7  ;;  %v10080_v6 = vpop.permute.xlu0 %8663  ;;  %v8634_v14 = vpop.permute.xlu1 %8633  ;;  %v7914_v31 = vpack.c.bf16 %v3540_v0, %v3538_v11  ;;  %v10094_v0 = vsel %vm10958_vm8, %v8645_v16, %v8646_v57  ;;  %v8530_v16 = vunpack.i.l.bf16 %v9862_v42  ;;  %vm10967_vm5 = vmmov %vm10966_vm0 }
 0x52a   : > { %v8636_v53 = vunpack.i.h.bf16 %v8634_v14  ;;  %v8635_v55 = vunpack.i.l.bf16 %v8634_v14  ;;  %v8666_v57 = vunpack.i.h.bf16 %v10080_v6  ;;  %vm10970_vm8 = vmmov %vm10966_vm0 }
 0x52b   : > { %7772 = vmatmul.mubr.msk.f32.gmra.mrb[8].mxu1 %vm3255_vm4, %v7768_v61  ;;  %7915 = vmatprep.subr.bf16.mxu0 %v7914_v31 }
 0x52c   : > { %v10084_v43 = vsel %vm10956_vm6, %v8655_v20, %v8635_v55  ;;  %5066 = vmatprep.mubr.f32.mxu1 %v8813_v13  ;;  %v10091_v49 = vsel %vm10957_vm7, %v8635_v55, %v8636_v53  ;;  %v8521_v20 = vunpack.i.h.bf16 %v9851_v51  ;;  %v8531_v53 = vunpack.i.h.bf16 %v9862_v42  ;;  %v7770_v51 = vld [vmem:[%s10880_s2 + $0x178] sm:$0xff]  ;;  %vm10968_vm6 = vmmov %vm10965_vm15 }
 0x52d   : > { %v10098_v7 = vpop.permute.xlu0 %8673  ;;  %v8649_v61 = vpop.permute.xlu1 %8648  ;;  %v8665_v55 = vunpack.i.l.bf16 %v10080_v6  ;;  %v8526_v6 = vunpack.i.h.bf16 %v9823_v32  ;;  %vm10969_vm7 = vmmov %vm10966_vm0 }
 0x52e   : > { %v8651_v14 = vunpack.i.h.bf16 %v8649_v61  ;;  %v8650_v31 = vunpack.i.l.bf16 %v8649_v61  ;;  %v5375_v33 = vsel %vm10965_vm15, %v8530_v16, %v8531_v53 }
 0x52f   : > { %7773 = vmatmul.mubr.msk.f32.gmra.mrb[10].mxu1 %vm3255_vm4, %v7769_v41  ;;  %v10151_v56 = vsel %vm10967_vm5, %v8665_v55, %v8666_v57  ;;  %v8675_v41 = vunpack.i.l.bf16 %v10098_v7 }
 0x530   : > { %v3539_v12 = vsel %vm10959_vm9, %v8651_v14, %v8640_v52  ;;  %v3537_v11 = vsel %vm10960_vm10, %v8650_v31, %v8630_v2  ;;  %5072 = vmatprep.mubr.f32.mxu1 %v8813_v13  ;;  %v8525_v52 = vunpack.i.l.bf16 %v9823_v32  ;;  %v5240_v31 = vsel %vm10963_vm12, %v8521_v20, %v8515_v8  ;;  %vm10974_vm12 = vmmov %vm10973_vm11  ;;  %v3513_v32 = vld [vmem:[%s10880_s2 + $0x8] sm:$0xff] }
 0x531   : > { %v7916_v61 = vpack.c.bf16 %v3539_v12, %v3537_v11  ;;  %v10115_v9 = vpop.permute.xlu0 %8678  ;;  %v8659_v48 = vpop.permute.xlu1 %8658  ;;  %v5238_v12 = vsel %vm10964_vm13, %v8520_v37, %v8510_v45  ;;  %v7679_v11 = vld [vmem:[%s10880_s2 + $0x20] sm:$0xff]  ;;  %vm10971_vm9 = vcmask 1031168  }
 0x532   : > { %v8661_v2 = vunpack.i.h.bf16 %v8659_v48  ;;  %v8660_v14 = vunpack.i.l.bf16 %v8659_v48  ;;  %v7969_v8 = vpack.c.bf16 %v5240_v31, %v5238_v12  ;;  %v5373_v53 = vsel %vm10968_vm6, %v8525_v52, %v8526_v6  ;;  %vm10972_vm10 = vmmov %vm10971_vm9 }
 0x533   : > { %7774 = vmatmul.mubr.msk.f32.gmra.mrb[12].mxu1 %vm3255_vm4, %v7770_v51  ;;  %7917 = vmatpush1.bf16.msra.mxu0 %v7916_v61  ;;  %v7971_v57 = vpack.c.bf16 %v5375_v33, %v5373_v53  ;;  %v7680_v51 = vld [vmem:[%s10880_s2 + $0x28] sm:$0xff]  ;;  %v8676_v61 = vunpack.i.h.bf16 %v10098_v7  ;;  %v8681_v12 = vunpack.i.h.bf16 %v10115_v9  ;;  %vm10975_vm13 = vmmov %vm10971_vm9 }
 0x534   : > { %7919 = vmatprep.subr.bf16.mxu0 %v7918_v4  ;;  %5188 = vmatprep.mubr.f32.mxu1 %v8813_v13  ;;  %v10148_v48 = vsel %vm10966_vm0, %v8660_v14, %v8661_v2  ;;  %vm10977_vm15 = vmmov %vm10971_vm9 }
 0x535   : > { %v10153_v62 = vpop.permute.xlu0 %8693  ;;  %v8669_v4 = vpop.permute.xlu1 %8668  ;;  %v8003_v45 = vpack.c.bf16 %v10151_v56, %v10148_v48  ;;  %v3765_v33 = vsel %vm10971_vm9, %v8675_v41, %v8676_v61  ;;  %vm10978_vm0 = vmmov %vm10973_vm11  ;;  %v7848_v48 = vld [vmem:[%s10880_s2 + $0x2a8] sm:$0xff] }
 0x536   : > { %v8671_v37 = vunpack.i.h.bf16 %v8669_v4  ;;  %v8670_v20 = vunpack.i.l.bf16 %v8669_v4  ;;  %7683 = vmatmul.mubr.msk.f32.vlgmr.msra.gmra.mrb[6].mxu0 %vm3255_vm4, %v7679_v11  ;;  %v8680_v11 = vunpack.i.l.bf16 %v10115_v9  ;;  %v7682_v9 = vld [vmem:[%s10880_s2 + $0x38] sm:$0xff]  ;;  %vm10979_vm5 = vmmov %vm10978_vm0 }
 0x537   : > { %7779 = vmatmul.mubr.msk.f32.vlgmr.msra.gmra.mrb[6].mxu1 %vm3255_vm4, %v7775_v24  ;;  %7922 = vmatpush1.bf16.msk.msra.mxu0 %vm7921_vm14, %v7920_v63  ;;  %v7777_v24 = vld [vmem:[%s10880_s2 + $0x190] sm:$0xff]  ;;  %vm10976_vm14 = vmmov %vm10968_vm6 }
 0x538   : > { %v10171_v2 = vsel %vm10969_vm7, %v8671_v37, %v8665_v55  ;;  %v10174_v6 = vsel %vm10970_vm8, %v8670_v20, %v8660_v14  ;;  %7970 = vmatpush1.bf16.msra.mxu1 %v7969_v8  ;;  %3627 = vmatprep.mubr.f32.mxu0 %v8813_v13  ;;  %v7681_v14 = vld [vmem:[%s10880_s2 + $0x30] sm:$0xff]  ;;  %vm10980_vm7 = vcmask 998400  }
 0x539   : > { %v8005_v60 = vpack.c.bf16 %v10171_v2, %v10174_v6  ;;  %7972 = vmatprep.subr.bf16.mxu1 %v7971_v57  ;;  %v8684_v63 = vpop.permute.xlu1 %8683  ;;  %5194 = vmatprep.mubr.f32.mxu1 %v8813_v13  ;;  %v10183_v7 = vpop.permute.xlu0 %8703  ;;  %v8695_v57 = vunpack.i.l.bf16 %v10153_v62  ;;  %vm10981_vm8 = vmmov %vm10980_vm7  ;;  %v7850_v2 = vld [vmem:[%s10880_s2 + $0x2b8] sm:$0xff]  ;;  %v7855_v6 = vld [vmem:[%s10880_s2 + $0x2c0] sm:$0xff] }
 0x53a   : > { %v8686_v55 = vunpack.i.h.bf16 %v8684_v63  ;;  %v8685_v31 = vunpack.i.l.bf16 %v8684_v63  ;;  %7684 = vmatmul.mubr.msk.f32.gmra.mrb[8].mxu0 %vm3255_vm4, %v7680_v51  ;;  %v8696_v51 = vunpack.i.h.bf16 %v10153_v62  ;;  %v10214_v63 = vsel %vm10973_vm11, %v8680_v11, %v8681_v12  ;;  %vm10982_vm9 = vmmov %vm10980_vm7 }
 0x53b   : > { %7780 = vmatmul.mubr.msk.f32.gmra.mrb[8].mxu1 %vm3255_vm4, %v7776_v54  ;;  %3633 = vmatprep.mubr.f32.mxu0 %v8813_v13  ;;  %v7778_v54 = vld [vmem:[%s10880_s2 + $0x198] sm:$0xff]  ;;  %v8535_v62 = vunpack.i.l.bf16 %v9839_v46 }
 0x53c   : > { %5200 = vmatprep.mubr.f32.mxu1 %v8813_v13  ;;  %v3767_v4 = vsel %vm10972_vm10, %v8685_v31, %v8686_v55  ;;  %vm10984_vm10 = vcmask 990208  }
 0x53d   : > { %v8689_v8 = vpop.permute.xlu1 %8688  ;;  %v7923_v37 = vpack.c.bf16 %v3767_v4, %v3765_v33  ;;  %v10206_v61 = vpop.permute.xlu0 %8708  ;;  %v3766_v4 = vsel %vm10975_vm13, %v8696_v51, %v8685_v31  ;;  %v8706_v31 = vunpack.i.h.bf16 %v10183_v7  ;;  %v8705_v51 = vunpack.i.l.bf16 %v10183_v7  ;;  %vm10985_vm11 = vmmov %vm10984_vm10 }
 0x53e   : > { %v8691_v20 = vunpack.i.h.bf16 %v8689_v8  ;;  %v8690_v53 = vunpack.i.l.bf16 %v8689_v8  ;;  %7685 = vmatmul.mubr.msk.f32.gmra.mrb[10].mxu0 %vm3255_vm4, %v7681_v14  ;;  %v8536_v14 = vunpack.i.h.bf16 %v9839_v46  ;;  %v3512_v46 = vld [vmem:[%s10880_s2] sm:$0xff] }
 0x53f   : > { %7781 = vmatmul.mubr.msk.f32.gmra.mrb[10].mxu1 %vm3255_vm4, %v7777_v24  ;;  %7924 = vmatprep.subr.bf16.mxu0 %v7923_v37 }
 0x540   : > { %3639 = vmatprep.mubr.f32.mxu0 %v8813_v13  ;;  %5206 = vmatprep.mubr.f32.mxu1 %v8813_v13  ;;  %v10217_v55 = vsel %vm10974_vm12, %v8690_v53, %v8691_v20  ;;  %v5374_v12 = vsel %vm10976_vm14, %v8536_v14, %v8530_v16  ;;  %v3764_v20 = vsel %vm10977_vm15, %v8695_v57, %v8675_v41  ;;  %v7783_v16 = vld [vmem:[%s10880_s2 + $0x1a0] sm:$0xff]  ;;  %vm10989_vm12 = vcmask 982016  }
 0x541   : > { %v8699_v24 = vpop.permute.xlu1 %8698  ;;  %v5372_v41 = vsel %vm10968_vm6, %v8535_v62, %v8525_v52  ;;  %v7925_v57 = vpack.c.bf16 %v3766_v4, %v3764_v20  ;;  %v7784_v52 = vld [vmem:[%s10880_s2 + $0x1a8] sm:$0xff]  ;;  %v3899_v62 = vsel %vm10980_vm7, %v8705_v51, %v8706_v31  ;;  %v3514_v31 = vld [vmem:[%s10880_s2 + $0x10] sm:$0xff]  ;;  %vm10991_vm14 = vmmov %vm10989_vm12  ;;  %v11005_v56 = vpack.c.bf16 %v10217_v55, %v10214_v63 }
 0x542   : > { %v8701_v8 = vunpack.i.h.bf16 %v8699_v24  ;;  %v8700_v37 = vunpack.i.l.bf16 %v8699_v24  ;;  %7686 = vmatmul.mubr.msk.f32.gmra.mrb[12].mxu0 %vm3255_vm4, %v7682_v9  ;;  %v8724_v24 = vpop.permute.xlu0 %8723  ;;  %vm10994_vm15 = vmmov %vm10989_vm12  ;;  %v7856_v63 = vld [vmem:[%s10880_s2 + $0x2c8] sm:$0xff] }
 0x543   : > { %7782 = vmatmul.mubr.msk.f32.gmra.mrb[12].mxu1 %vm3255_vm4, %v7778_v54  ;;  %3722 = vmatprep.mubr.f32.mxu0 %v8813_v13 }
 0x544   : > { %v10237_v9 = vsel %vm10978_vm0, %v8700_v37, %v8680_v11  ;;  %v10240_v42 = vsel %vm10979_vm5, %v8701_v8, %v8690_v53  ;;  %5322 = vmatprep.mubr.f32.mxu1 %v8813_v13  ;;  %v7973_v11 = vpack.c.bf16 %v5374_v12, %v5372_v41  ;;  %v8711_v8 = vunpack.i.h.bf16 %v10206_v61  ;;  %vm10995_vm0 = vmmov %vm10989_vm12 }
 0x545   : > { %v8714_v14 = vpop.permute.xlu1 %8713  ;;  %v8710_v12 = vunpack.i.l.bf16 %v10206_v61 }
 0x546   : > { %v8716_v37 = vunpack.i.h.bf16 %v8714_v14  ;;  %v8715_v53 = vunpack.i.l.bf16 %v8714_v14  ;;  %7691 = vmatmul.mubr.msk.f32.vlgmr.msra.gmra.mrb[6].mxu0 %vm3255_vm4, %v3512_v46  ;;  %v10275_v61 = vpop.permute.xlu0 %8733 }
 0x547   : > { %7926 = vmatpush1.bf16.msra.mxu0 %v7925_v57  ;;  %7787 = vmatmul.mubr.msk.f32.vlgmr.msra.gmra.mrb[6].mxu1 %vm3255_vm4, %v7783_v16  ;;  %v10283_v23 = vsel %vm2934_vm1, %v8710_v12, %v8711_v8  ;;  %v8735_v8 = vunpack.i.l.bf16 %v10275_v61 }
 0x548   : > { %7974 = vmatpush1.bf16.msra.mxu1 %v7973_v11  ;;  %3728 = vmatprep.mubr.f32.mxu0 %v8813_v13  ;;  %v3901_v4 = vsel %vm10981_vm8, %v8715_v53, %v8716_v37 }
 0x549   : > { %7976 = vmatprep.subr.bf16.mxu1 %v7975_v29  ;;  %5328 = vmatprep.mubr.f32.mxu1 %v8813_v13  ;;  %v7927_v20 = vpack.c.bf16 %v3901_v4, %v3899_v62  ;;  %v8725_v62 = vunpack.i.l.bf16 %v8724_v24  ;;  %v8736_v4 = vunpack.i.h.bf16 %v10275_v61  ;;  %v7704_v61 = vld [vmem:[%s10880_s2 + $0x68] sm:$0xff] }
 0x54a   : > { %v8719_v46 = vpop.permute.xlu1 %8718  ;;  %7692 = vmatmul.mubr.msk.f32.gmra.mrb[8].mxu0 %vm3255_vm4, %v3513_v32  ;;  %v3515_v32 = vld [vmem:[%s10880_s2 + $0x18] sm:$0xff] }
 0x54b   : > { %v8721_v16 = vunpack.i.h.bf16 %v8719_v46  ;;  %v8720_v41 = vunpack.i.l.bf16 %v8719_v46  ;;  %7788 = vmatmul.mubr.msk.f32.gmra.mrb[8].mxu1 %vm3255_vm4, %v7784_v52  ;;  %7928 = vmatprep.subr.bf16.mxu0 %v7927_v20  ;;  %v8726_v52 = vunpack.i.h.bf16 %v8724_v24  ;;  %v7786_v20 = vld [vmem:[%s10880_s2 + $0x1b8] sm:$0xff]  ;;  %v7696_v24 = vld [vmem:[%s10880_s2 + $0x48] sm:$0xff] }
 0x54c   : > { %3734 = vmatprep.mubr.f32.mxu0 %v8813_v13  ;;  %5334 = vmatprep.mubr.f32.mxu1 %v8813_v13 }
 0x54d   : > { %v10286_v29 = vsel %vm2934_vm1, %v8720_v41, %v8721_v16 }
 0x54e   : > { %v8729_v57 = vpop.permute.xlu1 %8728  ;;  %7693 = vmatmul.mubr.msk.f32.gmra.mrb[10].mxu0 %vm3255_vm4, %v3514_v31  ;;  %v3900_v31 = vsel %vm10982_vm9, %v8726_v52, %v8715_v53  ;;  %v11007_v55 = vpack.c.bf16 %v10286_v29, %v10283_v23  ;;  %v7864_v29 = vld [vmem:[%s10880_s2 + $0x2e8] sm:$0xff] }
 0x54f   : > { %v8731_v11 = vunpack.i.h.bf16 %v8729_v57  ;;  %v8730_v37 = vunpack.i.l.bf16 %v8729_v57  ;;  %7789 = vmatmul.mubr.msk.f32.gmra.mrb[10].mxu1 %vm3255_vm4, %v7785_v22  ;;  %3740 = vmatprep.mubr.f32.mxu0 %v8813_v13  ;;  %v8739_v22 = vpop.permute.xlu0 %8738 }
 0x550   : > { %5340 = vmatprep.mubr.f32.mxu1 %v8813_v13  ;;  %v8740_v52 = vunpack.i.l.bf16 %v8739_v22 }
 0x551   : > { %v10303_v46 = vsel %vm2934_vm1, %v8730_v37, %v8710_v12  ;;  %v10306_v16 = vsel %vm2934_vm1, %v8731_v11, %v8720_v41  ;;  %v7695_v12 = vld [vmem:[%s10880_s2 + $0x40] sm:$0xff]  ;;  %vm10983_vm1 = vmmov %vm10980_vm7  ;;  %v4033_v11 = vsel %vm10984_vm10, %v8735_v8, %v8736_v4  ;;  %v10986_v4 = vpack.c.bf16 %v9907_v34, %v9910_v44 }
 0x552   : > { %v8744_v57 = vpop.permute.xlu1 %8743  ;;  %7694 = vmatmul.mubr.msk.f32.gmra.mrb[12].mxu0 %vm3255_vm4, %v3515_v32  ;;  %v3898_v53 = vsel %vm10983_vm1, %v8725_v62, %v8705_v51  ;;  %v7791_v41 = vld [vmem:[%s10880_s2 + $0x1c0] sm:$0xff]  ;;  %v8741_v32 = vunpack.i.h.bf16 %v8739_v22  ;;  %v11008_v23 = vpack.c.bf16 %v10306_v16, %v10303_v46 }
 0x553   : > { %v8746_v14 = vunpack.i.h.bf16 %v8744_v57  ;;  %v8745_v54 = vunpack.i.l.bf16 %v8744_v57  ;;  %7790 = vmatmul.mubr.msk.f32.gmra.mrb[12].mxu1 %vm3255_vm4, %v7786_v20  ;;  %3848 = vmatprep.mubr.f32.mxu0 %v8813_v13  ;;  %v7929_v37 = vpack.c.bf16 %v3900_v31, %v3898_v53  ;;  %v8754_v33 = vpop.permute.xlu0 %8753  ;;  %v10987_v31 = vpack.c.bf16 %v9930_v1, %v9920_v40  ;;  %v7697_v40 = vld [vmem:[%s10880_s2 + $0x50] sm:$0xff] }
 0x554   : > { %5456 = vmatprep.mubr.f32.mxu1 %v8813_v13  ;;  %v10344_v22 = vsel %vm3037_vm2, %v8740_v52, %v8741_v32  ;;  %v7793_v1 = vld [vmem:[%s10880_s2 + $0x1d0] sm:$0xff] }
 0x555   : > { %v4035_v20 = vsel %vm10985_vm11, %v8745_v54, %v8746_v14  ;;  %v7792_v14 = vld [vmem:[%s10880_s2 + $0x1c8] sm:$0xff] }
 0x556   : > { %v8749_v57 = vpop.permute.xlu1 %8748  ;;  %7699 = vmatmul.mubr.msk.f32.vlgmr.msra.gmra.mrb[6].mxu0 %vm3255_vm4, %v7695_v12  ;;  %v7931_v7 = vpack.c.bf16 %v4035_v20, %v4033_v11 }
 0x557   : > { %v8751_v51 = vunpack.i.h.bf16 %v8749_v57  ;;  %v8750_v62 = vunpack.i.l.bf16 %v8749_v57  ;;  %7930 = vmatpush1.bf16.msra.mxu0 %v7929_v37  ;;  %7795 = vmatmul.mubr.msk.f32.vlgmr.msra.gmra.mrb[6].mxu1 %vm3255_vm4, %v7791_v41  ;;  %v8764_v37 = vpop.permute.xlu0 %8763 }
 0x558   : > { %7978 = vmatpush1.bf16.msra.mxu1 %v10986_v4  ;;  %7932 = vmatprep.subr.bf16.mxu0 %v7931_v7  ;;  %v7794_v4 = vld [vmem:[%s10880_s2 + $0x1d8] sm:$0xff] }
 0x559   : > { %7980 = vmatprep.subr.bf16.mxu1 %v10987_v31  ;;  %3854 = vmatprep.mubr.f32.mxu0 %v8813_v13  ;;  %v10347_v12 = vsel %vm3037_vm2, %v8750_v62, %v8751_v51  ;;  %v8756_v51 = vunpack.i.h.bf16 %v8754_v33  ;;  %v8765_v31 = vunpack.i.l.bf16 %v8764_v37 }
 0x55a   : > { %v8759_v53 = vpop.permute.xlu1 %8758  ;;  %5462 = vmatprep.mubr.f32.mxu1 %v8813_v13  ;;  %7700 = vmatmul.mubr.msk.f32.gmra.mrb[8].mxu0 %vm3255_vm4, %v7696_v24  ;;  %v8015_v34 = vpack.c.bf16 %v10347_v12, %v10344_v22  ;;  %v7866_v22 = vld [vmem:[%s10880_s2 + $0x2f8] sm:$0xff] }
 0x55b   : > { %v8761_v44 = vunpack.i.h.bf16 %v8759_v53  ;;  %v8760_v41 = vunpack.i.l.bf16 %v8759_v53  ;;  %7796 = vmatmul.mubr.msk.f32.gmra.mrb[8].mxu1 %vm3255_vm4, %v7792_v14  ;;  %3860 = vmatprep.mubr.f32.mxu0 %v8813_v13  ;;  %v8766_v14 = vunpack.i.h.bf16 %v8764_v37 }
 0x55c   : > { %5468 = vmatprep.mubr.f32.mxu1 %v8813_v13 }
 0x55d   : > { %v10363_v24 = vsel %vm3037_vm2, %v8760_v41, %v8740_v52  ;;  %v10366_v11 = vsel %vm3037_vm2, %v8761_v44, %v8750_v62  ;;  %v7698_v52 = vld [vmem:[%s10880_s2 + $0x58] sm:$0xff]  ;;  %v8755_v62 = vunpack.i.l.bf16 %v8754_v33  ;;  %vm10988_vm2 = vmmov %vm10984_vm10  ;;  %v7703_v33 = vld [vmem:[%s10880_s2 + $0x60] sm:$0xff] }
 0x55e   : > { %v8017_v32 = vpack.c.bf16 %v10366_v11, %v10363_v24  ;;  %v8774_v20 = vpop.permute.xlu1 %8773  ;;  %7701 = vmatmul.mubr.msk.f32.gmra.mrb[10].mxu0 %vm3255_vm4, %v7697_v40  ;;  %v4034_v53 = vsel %vm10988_vm2, %v8756_v51, %v8745_v54  ;;  %vm10990_vm13 = vmmov %vm10988_vm2  ;;  %v7799_v54 = vld [vmem:[%s10880_s2 + $0x1e0] sm:$0xff]  ;;  %v7874_v24 = vld [vmem:[%s10880_s2 + $0x318] sm:$0xff] }
 0x55f   : > { %v8776_v57 = vunpack.i.h.bf16 %v8774_v20  ;;  %v8775_v7 = vunpack.i.l.bf16 %v8774_v20  ;;  %7797 = vmatmul.mubr.msk.f32.gmra.mrb[10].mxu1 %vm3255_vm4, %v7793_v1  ;;  %3866 = vmatprep.mubr.f32.mxu0 %v8813_v13  ;;  %v4032_v41 = vsel %vm10990_vm13, %v8755_v62, %v8735_v8  ;;  %v4167_v1 = vsel %vm10991_vm14, %v8765_v31, %v8766_v14  ;;  %v10397_v20 = vpop.permute.xlu0 %8768 }
 0x560   : > { %5474 = vmatprep.mubr.f32.mxu1 %v8813_v13  ;;  %v7933_v40 = vpack.c.bf16 %v4034_v53, %v4032_v41  ;;  %v10992_v8 = vpack.c.bf16 %v9923_v59, %v9887_v18  ;;  %v7705_v18 = vld [vmem:[%s10880_s2 + $0x70] sm:$0xff]  ;;  %v7711_v53 = vld [vmem:[%s10880_s2 + $0x80] sm:$0xff]  ;;  %v8771_v12 = vunpack.i.h.bf16 %v10397_v20 }
 0x561   : > { %v4169_v44 = vsel %vm10989_vm12, %v8775_v7, %v8776_v57  ;;  %v7800_v57 = vld [vmem:[%s10880_s2 + $0x1e8] sm:$0xff]  ;;  %v7801_v59 = vld [vmem:[%s10880_s2 + $0x1f0] sm:$0xff] }
 0x562   : > { %7702 = vmatmul.mubr.msk.f32.gmra.mrb[12].mxu0 %vm3255_vm4, %v7698_v52  ;;  %v7935_v37 = vpack.c.bf16 %v4169_v44, %v4167_v1  ;;  %v10993_v52 = vpack.c.bf16 %v9952_v25, %v9949_v27  ;;  %v7706_v25 = vld [vmem:[%s10880_s2 + $0x78] sm:$0xff]  ;;  %v7807_v44 = vld [vmem:[%s10880_s2 + $0x200] sm:$0xff]  ;;  %v8779_v46 = vpop.permute.xlu1 %8778 }
 0x563   : > { %7798 = vmatmul.mubr.msk.f32.gmra.mrb[12].mxu1 %vm3255_vm4, %v7794_v4  ;;  %3982 = vmatprep.mubr.f32.mxu0 %v8813_v13  ;;  %v8784_v27 = vpop.permute.xlu0 %8783  ;;  %v7802_v4 = vld [vmem:[%s10880_s2 + $0x1f8] sm:$0xff]  ;;  %v7719_v1 = vld [vmem:[%s10880_s2 + $0xa0] sm:$0xff]  ;;  %v8781_v16 = vunpack.i.h.bf16 %v8779_v46 }
 0x564   : > { %5590 = vmatprep.mubr.f32.mxu1 %v8813_v13  ;;  %v8786_v51 = vunpack.i.h.bf16 %v8784_v27  ;;  %v8785_v62 = vunpack.i.l.bf16 %v8784_v27  ;;  %v7824_v27 = vld [vmem:[%s10880_s2 + $0x248] sm:$0xff] }
 0x566   : > { %7707 = vmatmul.mubr.msk.f32.vlgmr.msra.gmra.mrb[6].mxu0 %vm3255_vm4, %v7703_v33  ;;  %v4168_v14 = vsel %vm10994_vm15, %v8786_v51, %v8775_v7  ;;  %v4166_v33 = vsel %vm10995_vm0, %v8785_v62, %v8765_v31  ;;  %v7712_v7 = vld [vmem:[%s10880_s2 + $0x88] sm:$0xff]  ;;  %v7825_v51 = vld [vmem:[%s10880_s2 + $0x250] sm:$0xff]  ;;  %v11003_v62 = vpack.c.bf16 %v10094_v0, %v10091_v49  ;;  %v11004_v49 = vpack.c.bf16 %v10072_v58, %v10084_v43  ;;  %v7842_v58 = vld [vmem:[%s10880_s2 + $0x298] sm:$0xff] }
 0x567   : > { %7934 = vmatpush1.bf16.msra.mxu0 %v7933_v40  ;;  %7803 = vmatmul.mubr.msk.f32.vlgmr.msra.gmra.mrb[6].mxu1 %vm3255_vm4, %v7799_v54  ;;  %v7937_v41 = vpack.c.bf16 %v4168_v14, %v4166_v33  ;;  %v10996_v54 = vpack.c.bf16 %v9966_v36, %v9969_v39  ;;  %v7808_v31 = vld [vmem:[%s10880_s2 + $0x208] sm:$0xff]  ;;  %v10997_v40 = vpack.c.bf16 %v9995_v26, %v9985_v15  ;;  %v7713_v36 = vld [vmem:[%s10880_s2 + $0x90] sm:$0xff]  ;;  %v7714_v15 = vld [vmem:[%s10880_s2 + $0x98] sm:$0xff] }
 0x568   : > { %7982 = vmatpush1.bf16.msra.mxu1 %v10992_v8  ;;  %7936 = vmatprep.subr.bf16.mxu0 %v7935_v37  ;;  %v7809_v39 = vld [vmem:[%s10880_s2 + $0x210] sm:$0xff]  ;;  %v7810_v26 = vld [vmem:[%s10880_s2 + $0x218] sm:$0xff]  ;;  %v7815_v37 = vld [vmem:[%s10880_s2 + $0x220] sm:$0xff]  ;;  %v10998_v8 = vpack.c.bf16 %v9988_v17, %v9942_v19 }
 0x569   : > { %7984 = vmatprep.subr.bf16.mxu1 %v10993_v52  ;;  %3988 = vmatprep.mubr.f32.mxu0 %v8813_v13  ;;  %v10999_v52 = vpack.c.bf16 %v10013_v3, %v10010_v21  ;;  %v7721_v19 = vld [vmem:[%s10880_s2 + $0xb0] sm:$0xff]  ;;  %v7722_v21 = vld [vmem:[%s10880_s2 + $0xb8] sm:$0xff]  ;;  %v7840_v0 = vld [vmem:[%s10880_s2 + $0x288] sm:$0xff] }
 0x56a   : > { %5596 = vmatprep.mubr.f32.mxu1 %v8813_v13  ;;  %7708 = vmatmul.mubr.msk.f32.gmra.mrb[8].mxu0 %vm3255_vm4, %v7704_v61  ;;  %v7720_v61 = vld [vmem:[%s10880_s2 + $0xa8] sm:$0xff]  ;;  %v7817_v17 = vld [vmem:[%s10880_s2 + $0x230] sm:$0xff]  ;;  %v7818_v3 = vld [vmem:[%s10880_s2 + $0x238] sm:$0xff] }
 0x56b   : > { %7804 = vmatmul.mubr.msk.f32.gmra.mrb[8].mxu1 %vm3255_vm4, %v7800_v57  ;;  %3994 = vmatprep.mubr.f32.mxu0 %v8813_v13  ;;  %v7816_v57 = vld [vmem:[%s10880_s2 + $0x228] sm:$0xff]  ;;  %v7841_v14 = vld [vmem:[%s10880_s2 + $0x290] sm:$0xff]  ;;  %v7847_v43 = vld [vmem:[%s10880_s2 + $0x2a0] sm:$0xff] }
 0x56c   : > { %5602 = vmatprep.mubr.f32.mxu1 %v8813_v13  ;;  %v7865_v33 = vld [vmem:[%s10880_s2 + $0x2f0] sm:$0xff] }
 0x56e   : > { %7709 = vmatmul.mubr.msk.f32.gmra.mrb[10].mxu0 %vm3255_vm4, %v7705_v18  ;;  %v7823_v18 = vld [vmem:[%s10880_s2 + $0x240] sm:$0xff] }
 0x56f   : > { %7805 = vmatmul.mubr.msk.f32.gmra.mrb[10].mxu1 %vm3255_vm4, %v7801_v59  ;;  %4000 = vmatprep.mubr.f32.mxu0 %v8813_v13  ;;  %v11000_v59 = vpack.c.bf16 %v10025_v47, %v10028_v28  ;;  %v7826_v28 = vld [vmem:[%s10880_s2 + $0x258] sm:$0xff]  ;;  %v7831_v47 = vld [vmem:[%s10880_s2 + $0x260] sm:$0xff] }
 0x570   : > { %5608 = vmatprep.mubr.f32.mxu1 %v8813_v13 }
 0x572   : > { %7710 = vmatmul.mubr.msk.f32.gmra.mrb[12].mxu0 %vm3255_vm4, %v7706_v25  ;;  %v11001_v25 = vpack.c.bf16 %v10061_v30, %v10049_v5  ;;  %v11002_v5 = vpack.c.bf16 %v10054_v10, %v10003_v50  ;;  %v7832_v30 = vld [vmem:[%s10880_s2 + $0x268] sm:$0xff]  ;;  %v7834_v50 = vld [vmem:[%s10880_s2 + $0x278] sm:$0xff]  ;;  %v7839_v10 = vld [vmem:[%s10880_s2 + $0x280] sm:$0xff] }
 0x573   : > { %7806 = vmatmul.mubr.msk.f32.gmra.mrb[12].mxu1 %vm3255_vm4, %v7802_v4  ;;  %4116 = vmatprep.mubr.f32.mxu0 %v8813_v13  ;;  %v7833_v4 = vld [vmem:[%s10880_s2 + $0x270] sm:$0xff] }
 0x574   : > { %5724 = vmatprep.mubr.f32.mxu1 %v8813_v13 }
 0x576   : > { %7715 = vmatmul.mubr.msk.f32.vlgmr.msra.gmra.mrb[6].mxu0 %vm3255_vm4, %v7711_v53  ;;  %v7857_v53 = vld [vmem:[%s10880_s2 + $0x2d0] sm:$0xff] }
 0x577   : > { %7938 = vmatpush1.bf16.msra.mxu0 %v7937_v41  ;;  %7811 = vmatmul.mubr.msk.f32.vlgmr.msra.gmra.mrb[6].mxu1 %vm3255_vm4, %v7807_v44  ;;  %v8780_v44 = vunpack.i.l.bf16 %v8779_v46  ;;  %v7871_v41 = vld [vmem:[%s10880_s2 + $0x300] sm:$0xff] }
 0x578   : > { %7986 = vmatpush1.bf16.msra.mxu1 %v10996_v54  ;;  %5730 = vmatprep.mubr.f32.mxu1 %v8813_v13 }
 0x579   : > { %7988 = vmatprep.subr.bf16.mxu1 %v10997_v40  ;;  %4122 = vmatprep.mubr.f32.mxu0 %v8813_v13  ;;  %v8789_v40 = vpop.permute.xlu1 %8788 }
 0x57a   : > { %7716 = vmatmul.mubr.msk.f32.gmra.mrb[8].mxu0 %vm3255_vm4, %v7712_v7  ;;  %v6983_v7 = vsel %vm3140_vm3, %v8780_v44, %v8781_v16 }
 0x57b   : > { %7812 = vmatmul.mubr.msk.f32.gmra.mrb[8].mxu1 %vm3255_vm4, %v7808_v31  ;;  %4128 = vmatprep.mubr.f32.mxu0 %v8813_v13 }
 0x57c   : > { %5736 = vmatprep.mubr.f32.mxu1 %v8813_v13 }
 0x57e   : > { %7717 = vmatmul.mubr.msk.f32.gmra.mrb[10].mxu0 %vm3255_vm4, %v7713_v36  ;;  %v7873_v36 = vld [vmem:[%s10880_s2 + $0x310] sm:$0xff] }
 0x57f   : > { %7813 = vmatmul.mubr.msk.f32.gmra.mrb[10].mxu1 %vm3255_vm4, %v7809_v39  ;;  %4134 = vmatprep.mubr.f32.mxu0 %v8813_v13  ;;  %v8791_v39 = vunpack.i.h.bf16 %v8789_v40 }
 0x580   : > { %5742 = vmatprep.mubr.f32.mxu1 %v8813_v13 }
 0x582   : > { %7718 = vmatmul.mubr.msk.f32.gmra.mrb[12].mxu0 %vm3255_vm4, %v7714_v15  ;;  %v8790_v15 = vunpack.i.l.bf16 %v8789_v40 }
 0x583   : > { %7814 = vmatmul.mubr.msk.f32.gmra.mrb[12].mxu1 %vm3255_vm4, %v7810_v26  ;;  %4250 = vmatprep.mubr.f32.mxu0 %v8813_v13  ;;  %v7879_v26 = vld [vmem:[%s10880_s2 + $0x320] sm:$0xff] }
 0x584   : > { %5858 = vmatprep.mubr.f32.mxu1 %v8813_v13 }
 0x586   : > { %7723 = vmatmul.mubr.msk.f32.vlgmr.msra.gmra.mrb[6].mxu0 %vm3255_vm4, %v7719_v1 }
 0x587   : > { %7819 = vmatmul.mubr.msk.f32.vlgmr.msra.gmra.mrb[6].mxu1 %vm3255_vm4, %v7815_v37  ;;  %4256 = vmatprep.mubr.f32.mxu0 %v8813_v13  ;;  %v7880_v37 = vld [vmem:[%s10880_s2 + $0x328] sm:$0xff] }
 0x588   : > { %7990 = vmatpush1.bf16.msra.mxu1 %v10998_v8  ;;  %5864 = vmatprep.mubr.f32.mxu1 %v8813_v13  ;;  %v7882_v8 = vld [vmem:[%s10880_s2 + $0x338] sm:$0xff] }
 0x589   : > { %7992 = vmatprep.subr.bf16.mxu1 %v10999_v52  ;;  %v7888_v52 = vld [vmem:[%s10880_s2 + $0x348] sm:$0xff] }
 0x58a   : > { %7724 = vmatmul.mubr.msk.f32.gmra.mrb[8].mxu0 %vm3255_vm4, %v7720_v61  ;;  %v7881_v61 = vld [vmem:[%s10880_s2 + $0x330] sm:$0xff] }
 0x58b   : > { %7820 = vmatmul.mubr.msk.f32.gmra.mrb[8].mxu1 %vm3255_vm4, %v7816_v57  ;;  %4262 = vmatprep.mubr.f32.mxu0 %v8813_v13  ;;  %v7887_v57 = vld [vmem:[%s10880_s2 + $0x340] sm:$0xff] }
 0x58c   : > { %5870 = vmatprep.mubr.f32.mxu1 %v8813_v13 }
 0x58e   : > { %7725 = vmatmul.mubr.msk.f32.gmra.mrb[10].mxu0 %vm3255_vm4, %v7721_v19  ;;  %v7889_v19 = vld [vmem:[%s10880_s2 + $0x350] sm:$0xff] }
 0x58f   : > { %7821 = vmatmul.mubr.msk.f32.gmra.mrb[10].mxu1 %vm3255_vm4, %v7817_v17  ;;  %4268 = vmatprep.mubr.f32.mxu0 %v8813_v13  ;;  %v7890_v17 = vld [vmem:[%s10880_s2 + $0x358] sm:$0xff] }
 0x590   : > { %5876 = vmatprep.mubr.f32.mxu1 %v8813_v13 }
 0x592   : > { %7726 = vmatmul.mubr.msk.f32.gmra.mrb[12].mxu0 %vm3255_vm4, %v7722_v21 }
 0x593   : > { %7822 = vmatmul.mubr.msk.f32.gmra.mrb[12].mxu1 %vm3255_vm4, %v7818_v3  ;;  %7194 = vmatprep.mubr.f32.mxu0 %v8813_v13 }
 0x594   : > { %5992 = vmatprep.mubr.f32.mxu1 %v8813_v13 }
 0x597   : > { %7827 = vmatmul.mubr.msk.f32.vlgmr.msra.gmra.mrb[6].mxu1 %vm3255_vm4, %v7823_v18 }
 0x598   : > { %7994 = vmatpush1.bf16.msra.mxu1 %v11000_v59  ;;  %5998 = vmatprep.mubr.f32.mxu1 %v8813_v13 }
 0x599   : > { %7996 = vmatprep.subr.bf16.mxu1 %v11001_v25 }
 0x59b   : > { %7828 = vmatmul.mubr.msk.f32.gmra.mrb[8].mxu1 %vm3255_vm4, %v7824_v27 }
 0x59c   : > { %6004 = vmatprep.mubr.f32.mxu1 %v8813_v13 }
 0x59f   : > { %7829 = vmatmul.mubr.msk.f32.gmra.mrb[10].mxu1 %vm3255_vm4, %v7825_v51 }
 0x5a0   : > { %6010 = vmatprep.mubr.f32.mxu1 %v8813_v13 }
 0x5a3   : > { %7830 = vmatmul.mubr.msk.f32.gmra.mrb[12].mxu1 %vm3255_vm4, %v7826_v28 }
 0x5a4   : > { %6126 = vmatprep.mubr.f32.mxu1 %v8813_v13 }
 0x5a7   : > { %7835 = vmatmul.mubr.msk.f32.vlgmr.msra.gmra.mrb[6].mxu1 %vm3255_vm4, %v7831_v47 }
 0x5a8   : > { %7998 = vmatpush1.bf16.msra.mxu1 %v11002_v5  ;;  %6132 = vmatprep.mubr.f32.mxu1 %v8813_v13 }
 0x5a9   : > { %8000 = vmatprep.subr.bf16.mxu1 %v11003_v62 }
 0x5ab   : > { %7836 = vmatmul.mubr.msk.f32.gmra.mrb[8].mxu1 %vm3255_vm4, %v7832_v30 }
 0x5ac   : > { %6138 = vmatprep.mubr.f32.mxu1 %v8813_v13 }
 0x5af   : > { %7837 = vmatmul.mubr.msk.f32.gmra.mrb[10].mxu1 %vm3255_vm4, %v7833_v4 }
 0x5b0   : > { %6144 = vmatprep.mubr.f32.mxu1 %v8813_v13 }
 0x5b3   : > { %7838 = vmatmul.mubr.msk.f32.gmra.mrb[12].mxu1 %vm3255_vm4, %v7834_v50 }
 0x5b4   : > { %6260 = vmatprep.mubr.f32.mxu1 %v8813_v13 }
 0x5b7   : > { %7843 = vmatmul.mubr.msk.f32.vlgmr.msra.gmra.mrb[6].mxu1 %vm3255_vm4, %v7839_v10 }
 0x5b8   : > { %8002 = vmatpush1.bf16.msra.mxu1 %v11004_v49  ;;  %6266 = vmatprep.mubr.f32.mxu1 %v8813_v13 }
 0x5b9   : > { %8004 = vmatprep.subr.bf16.mxu1 %v8003_v45  ;;  %v7849_v45 = vld [vmem:[%s10880_s2 + $0x2b0] sm:$0xff] }
 0x5bb   : > { %7844 = vmatmul.mubr.msk.f32.gmra.mrb[8].mxu1 %vm3255_vm4, %v7840_v0 }
 0x5bc   : > { %6272 = vmatprep.mubr.f32.mxu1 %v8813_v13 }
 0x5bf   : > { %7845 = vmatmul.mubr.msk.f32.gmra.mrb[10].mxu1 %vm3255_vm4, %v7841_v14 }
 0x5c0   : > { %6278 = vmatprep.mubr.f32.mxu1 %v8813_v13 }
 0x5c3   : > { %7846 = vmatmul.mubr.msk.f32.gmra.mrb[12].mxu1 %vm3255_vm4, %v7842_v58 }
 0x5c4   : > { %6394 = vmatprep.mubr.f32.mxu1 %v8813_v13 }
 0x5c7   : > { %7851 = vmatmul.mubr.msk.f32.vlgmr.msra.gmra.mrb[6].mxu1 %vm3255_vm4, %v7847_v43 }
 0x5c8   : > { %8006 = vmatpush1.bf16.msra.mxu1 %v8005_v60  ;;  %6400 = vmatprep.mubr.f32.mxu1 %v8813_v13  ;;  %v11006_v60 = vpack.c.bf16 %v10240_v42, %v10237_v9  ;;  %v7858_v9 = vld [vmem:[%s10880_s2 + $0x2d8] sm:$0xff]  ;;  %v7863_v42 = vld [vmem:[%s10880_s2 + $0x2e0] sm:$0xff] }
 0x5c9   : > { %8008 = vmatprep.subr.bf16.mxu1 %v11005_v56 }
 0x5cb   : > { %7852 = vmatmul.mubr.msk.f32.gmra.mrb[8].mxu1 %vm3255_vm4, %v7848_v48 }
 0x5cc   : > { %6406 = vmatprep.mubr.f32.mxu1 %v8813_v13 }
 0x5cf   : > { %7853 = vmatmul.mubr.msk.f32.gmra.mrb[10].mxu1 %vm3255_vm4, %v7849_v45 }
 0x5d0   : > { %6412 = vmatprep.mubr.f32.mxu1 %v8813_v13 }
 0x5d3   : > { %7854 = vmatmul.mubr.msk.f32.gmra.mrb[12].mxu1 %vm3255_vm4, %v7850_v2 }
 0x5d4   : > { %6528 = vmatprep.mubr.f32.mxu1 %v8813_v13 }
 0x5d7   : > { %7859 = vmatmul.mubr.msk.f32.vlgmr.msra.gmra.mrb[6].mxu1 %vm3255_vm4, %v7855_v6 }
 0x5d8   : > { %8010 = vmatpush1.bf16.msra.mxu1 %v11006_v60  ;;  %6534 = vmatprep.mubr.f32.mxu1 %v8813_v13 }
 0x5d9   : > { %8012 = vmatprep.subr.bf16.mxu1 %v11007_v55 }
 0x5db   : > { %7860 = vmatmul.mubr.msk.f32.gmra.mrb[8].mxu1 %vm3255_vm4, %v7856_v63 }
 0x5dc   : > { %6540 = vmatprep.mubr.f32.mxu1 %v8813_v13 }
 0x5df   : > { %7861 = vmatmul.mubr.msk.f32.gmra.mrb[10].mxu1 %vm3255_vm4, %v7857_v53 }
 0x5e0   : > { %6546 = vmatprep.mubr.f32.mxu1 %v8813_v13 }
 0x5e3   : > { %7862 = vmatmul.mubr.msk.f32.gmra.mrb[12].mxu1 %vm3255_vm4, %v7858_v9 }
 0x5e4   : > { %6662 = vmatprep.mubr.f32.mxu1 %v8813_v13 }
 0x5e7   : > { %7867 = vmatmul.mubr.msk.f32.vlgmr.msra.gmra.mrb[6].mxu1 %vm3255_vm4, %v7863_v42 }
 0x5e8   : > { %8014 = vmatpush1.bf16.msra.mxu1 %v11008_v23  ;;  %6668 = vmatprep.mubr.f32.mxu1 %v8813_v13 }
 0x5e9   : > { %8016 = vmatprep.subr.bf16.mxu1 %v8015_v34  ;;  %v8770_v34 = vunpack.i.l.bf16 %v10397_v20  ;;  %v7872_v20 = vld [vmem:[%s10880_s2 + $0x308] sm:$0xff] }
 0x5eb   : > { %7868 = vmatmul.mubr.msk.f32.gmra.mrb[8].mxu1 %vm3255_vm4, %v7864_v29  ;;  %v6981_v54 = vsel %vm3140_vm3, %v8770_v34, %v8771_v12  ;;  %v6980_v11 = vsel %vm3140_vm3, %v8790_v15, %v8770_v34 }
 0x5ec   : > { %6674 = vmatprep.mubr.f32.mxu1 %v8813_v13  ;;  %v8019_v31 = vpack.c.bf16 %v6983_v7, %v6981_v54 }
 0x5ef   : > { %7869 = vmatmul.mubr.msk.f32.gmra.mrb[10].mxu1 %vm3255_vm4, %v7865_v33 }
 0x5f0   : > { %6680 = vmatprep.mubr.f32.mxu1 %v8813_v13 }
 0x5f3   : > { %7870 = vmatmul.mubr.msk.f32.gmra.mrb[12].mxu1 %vm3255_vm4, %v7866_v22 }
 0x5f4   : > { %6796 = vmatprep.mubr.f32.mxu1 %v8813_v13 }
 0x5f7   : > { %7875 = vmatmul.mubr.msk.f32.vlgmr.msra.gmra.mrb[6].mxu1 %vm3255_vm4, %v7871_v41 }
 0x5f8   : > { %8018 = vmatpush1.bf16.msra.mxu1 %v8017_v32  ;;  %6802 = vmatprep.mubr.f32.mxu1 %v8813_v13  ;;  %v6982_v32 = vsel %vm3140_vm3, %v8791_v39, %v8780_v44  ;;  %vm7117_vm3 = vcmask 261120  }
 0x5f9   : > { %8020 = vmatprep.subr.bf16.mxu1 %v8019_v31  ;;  %v8021_v1 = vpack.c.bf16 %v6982_v32, %v6980_v11  ;;  %v7113_v11 = vld [vmem:[%s10886_s8] sm:$0xff] }
 0x5fb   : > { %7876 = vmatmul.mubr.msk.f32.gmra.mrb[8].mxu1 %vm3255_vm4, %v7872_v20 }
 0x5fc   : > { %6808 = vmatprep.mubr.f32.mxu1 %v8813_v13 }
 0x5ff   : > { %7877 = vmatmul.mubr.msk.f32.gmra.mrb[10].mxu1 %vm3255_vm4, %v7873_v36 }
 0x600   : > { %6814 = vmatprep.mubr.f32.mxu1 %v8813_v13 }
 0x603   : > { %7878 = vmatmul.mubr.msk.f32.gmra.mrb[12].mxu1 %vm3255_vm4, %v7874_v24 }
 0x604   : > { %6930 = vmatprep.mubr.f32.mxu1 %v8813_v13 }
 0x607   : > { %7883 = vmatmul.mubr.msk.f32.vlgmr.msra.gmra.mrb[6].mxu1 %vm3255_vm4, %v7879_v26 }
 0x608   : > { %8022 = vmatpush1.bf16.msra.mxu1 %v8021_v1  ;;  %6936 = vmatprep.mubr.f32.mxu1 %v8813_v13 }
 0x60b   : > { %7884 = vmatmul.mubr.msk.f32.gmra.mrb[8].mxu1 %vm3255_vm4, %v7880_v37  ;;  %v7114_v37 = vld [vmem:[%s10886_s8 + $0x8] sm:$0xff] }
 0x60c   : > { %6942 = vmatprep.mubr.f32.mxu1 %v8813_v13 }
 0x60f   : > { %7885 = vmatmul.mubr.msk.f32.gmra.mrb[10].mxu1 %vm3255_vm4, %v7881_v61 }
 0x610   : > { %6948 = vmatprep.mubr.f32.mxu1 %v8813_v13 }
 0x613   : > { %7886 = vmatmul.mubr.msk.f32.gmra.mrb[12].mxu1 %vm3255_vm4, %v7882_v8  ;;  %v7115_v8 = vld [vmem:[%s10886_s8 + $0x10] sm:$0xff] }
 0x614   : > { %7064 = vmatprep.mubr.f32.mxu1 %v8813_v13 }
 0x617   : > { %7891 = vmatmul.mubr.msk.f32.vlgmr.msra.gmra.mrb[6].mxu1 %vm3255_vm4, %v7887_v57  ;;  %v7116_v57 = vld [vmem:[%s10886_s8 + $0x18] sm:$0xff] }
 0x618   : > { %7070 = vmatprep.mubr.f32.mxu1 %v8813_v13 }
 0x61b   : > { %7892 = vmatmul.mubr.msk.f32.gmra.mrb[8].mxu1 %vm3255_vm4, %v7888_v52 }
 0x61c   : > { %7076 = vmatprep.mubr.f32.mxu1 %v8813_v13 }
 0x61f   : > { %7893 = vmatmul.mubr.msk.f32.gmra.mrb[10].mxu1 %vm3255_vm4, %v7889_v19 }
 0x620   : > { %7082 = vmatprep.mubr.f32.mxu1 %v8813_v13 }
 0x623   : > { %7894 = vmatmul.mubr.msk.f32.gmra.mrb[12].mxu1 %vm3255_vm4, %v7890_v17 }
 0x659   : > { %v4252_v21 = vpop.f32.mrb[6].mxu0 }
 0x65a   : > { %v4254_v3 = vpop.f32.mrb[7].mxu0 }
 0x65d   : > { %v4258_v18 = vpop.f32.mrb[8].mxu0 }
 0x65e   : > { %v4260_v59 = vpop.f32.mrb[9].mxu0 }
 0x661   : > { %v4264_v27 = vpop.f32.mrb[10].mxu0 }
 0x662   : > { %v4266_v25 = vpop.f32.mrb[11].mxu0 }
 0x665   : > { %v4270_v51 = vpop.f32.mrb[12].mxu0 }
 0x666   : > { %v4272_v28 = vpop.f32.mrb[13].mxu0 }
 0x6ea   : > { %v7066_v47 = vpop.f32.mrb[6].mxu1 }
 0x6eb   : > { %v10756_v5 = vadd.f32 %v7066_v47, %v4252_v21  ;;  %v7068_v30 = vpop.f32.mrb[7].mxu1 }
 0x6ec   : > { %v10758_v62 = vadd.f32 %v7068_v30, %v4254_v3 }
 0x6ed   : > { %v7097_v14 = vmax.f32 %v10756_v5, 0.0 }
 0x6ee   : > { %v7072_v4 = vpop.f32.mrb[8].mxu1  ;;  %v7098_v49 = vmax.f32 %v10758_v62, 0.0 }
 0x6ef   : > { %v10760_v50 = vadd.f32 %v7072_v4, %v4258_v18  ;;  %v7074_v10 = vpop.f32.mrb[9].mxu1  ;;  %v7105_v55 = vmul.f32 %v7097_v14, %v9490_v38 }
 0x6f0   : > { %v10763_v0 = vadd.f32 %v7074_v10, %v4260_v59  ;;  %v7106_v6 = vmul.f32 %v7098_v49, %v9485_v35 }
 0x6f1   : > { %v7099_v58 = vmax.f32 %v10760_v50, 0.0  ;;  %v7219_v24 = vmul.f32 %v7105_v55, %v7105_v55 }
 0x6f2   : > { %v7100_v43 = vmax.f32 %v10763_v0, 0.0  ;;  %v7078_v48 = vpop.f32.mrb[10].mxu1  ;;  %v7220_v31 = vmul.f32 %v7106_v6, %v7106_v6 }
 0x6f3   : > { %v7107_v56 = vmul.f32 %v7099_v58, %v9490_v38  ;;  %v10771_v45 = vadd.f32 %v7078_v48, %v4264_v27  ;;  %v7080_v2 = vpop.f32.mrb[11].mxu1 }
 0x6f4   : > { %v7108_v60 = vmul.f32 %v7100_v43, %v9485_v35  ;;  %v10779_v63 = vadd.f32 %v7080_v2, %v4266_v25 }
 0x6f5   : > { %v8025_v42 = vpack.c.bf16 %v7107_v56, %v7105_v55  ;;  %v7101_v16 = vmax.f32 %v10771_v45, 0.0  ;;  %v7221_v40 = vmul.f32 %v7107_v56, %v7107_v56 }
 0x6f6   : > { %v7084_v53 = vpop.f32.mrb[12].mxu1  ;;  %v8023_v9 = vpack.c.bf16 %v7108_v60, %v7106_v6  ;;  %v7102_v33 = vmax.f32 %v10779_v63, 0.0  ;;  %v7222_v34 = vmul.f32 %v7108_v60, %v7108_v60 }
 0x6f7   : > { %v10784_v23 = vadd.f32 %v7084_v53, %v4270_v51  ;;  %v7086_v29 = vpop.f32.mrb[13].mxu1  ;;  %v7109_v54 = vmul.f32 %v7101_v16, %v9490_v38 }
 0x6f8   : > { %v10787_v46 = vadd.f32 %v7086_v29, %v4272_v28  ;;  %8024 = vmatprep.subr.bf16.mxu0 %v8023_v9  ;;  %v7110_v41 = vmul.f32 %v7102_v33, %v9485_v35  ;;  %v8031_v15 = vpack.c.bf16 %v7222_v34, %v7220_v31  ;;  %v7414_v29 = vld [vmem:[%s10884_s6 + $0x10] sm:$0xff]  ;;  %v7392_v34 = vpop.permute.xlu0 %7391 }
 0x6f9   : > { %v7103_v44 = vmax.f32 %v10784_v23, 0.0  ;;  %8026 = vmatpush1.bf16.msra.mxu0 %v8025_v42  ;;  %v7223_v1 = vmul.f32 %v7109_v54, %v7109_v54  ;;  %v7415_v42 = vld [vmem:[%s10884_s6 + $0x18] sm:$0xff] }
 0x6fa   : > { %v7104_v22 = vmax.f32 %v10787_v46, 0.0  ;;  %v7224_v32 = vmul.f32 %v7110_v41, %v7110_v41 }
 0x6fb   : > { %v7111_v12 = vmul.f32 %v7103_v44, %v9490_v38 }
 0x6fc   : > { %v7112_v7 = vmul.f32 %v7104_v22, %v9485_v35  ;;  %v8033_v35 = vpack.c.bf16 %v7221_v40, %v7219_v24 }
 0x6fd   : > { %v8029_v36 = vpack.c.bf16 %v7111_v12, %v7109_v54  ;;  %v7225_v26 = vmul.f32 %v7111_v12, %v7111_v12  ;;  %v7387_v12 = vpop.permute.xlu1 %7386 }
 0x6fe   : > { %v8027_v20 = vpack.c.bf16 %v7112_v7, %v7110_v41  ;;  %v7226_v39 = vmul.f32 %v7112_v7, %v7112_v7  ;;  %v7419_v7 = vpop.permute.xlu0 %7418 }
 0x6ff   : > { %v8037_v61 = vpack.c.bf16 %v7225_v26, %v7223_v1 }
 0x700   : > { %8028 = vmatprep.subr.bf16.mxu0 %v8027_v20  ;;  %v8035_v38 = vpack.c.bf16 %v7226_v39, %v7224_v32 }
 0x701   : > { %8030 = vmatpush1.bf16.msra.mxu0 %v8029_v36  ;;  %v10837_v41 = vpop.permute.xlu1 %7396 }
 0x702   : > { %8032 = vmatprep.subr.bf16.mxu0 %v8031_v15 }
 0x704   : > { %7895 = vmatmul.mubr.msk.f32.vlgmr.msra.gmra.mrb[14].mxu0 %vm7117_vm3, %v7113_v11 }
 0x705   : > { %8034 = vmatpush1.bf16.msra.mxu0 %v8033_v35  ;;  %7200 = vmatprep.mubr.f32.mxu0 %v8813_v13  ;;  %v10839_v54 = vpop.permute.xlu1 %7401 }
 0x706   : > { %8036 = vmatprep.subr.bf16.mxu0 %v8035_v38 }
 0x708   : > { %7896 = vmatmul.mubr.msk.f32.gmra.mrb[16].mxu0 %vm7117_vm3, %v7114_v37 }
 0x709   : > { %8038 = vmatpush1.bf16.msra.mxu0 %v8037_v61  ;;  %7206 = vmatprep.mubr.f32.mxu0 %v8813_v13  ;;  %v7424_v20 = vpop.permute.xlu1 %7423 }
 0x70c   : > { %7897 = vmatmul.mubr.msk.f32.gmra.mrb[18].mxu0 %vm7117_vm3, %v7115_v8 }
 0x70d   : > { %7212 = vmatprep.mubr.f32.mxu0 %v8813_v13 }
 0x710   : > { %7898 = vmatmul.mubr.msk.f32.gmra.mrb[20].mxu0 %vm7117_vm3, %v7116_v57 }
 0x711   : > { %7291 = vmatprep.mubr.f32.mxu0 %v8813_v13 }
 0x714   : > { %7899 = vmatmul.mubr.msk.f32.vlgmr.msra.gmra.mrb[22].mxu0 %vm7117_vm3, %v7113_v11 }
 0x715   : > { %7297 = vmatprep.mubr.f32.mxu0 %v8813_v13 }
 0x718   : > { %7900 = vmatmul.mubr.msk.f32.gmra.mrb[24].mxu0 %vm7117_vm3, %v7114_v37 }
 0x719   : > { %7303 = vmatprep.mubr.f32.mxu0 %v8813_v13 }
 0x71c   : > { %7901 = vmatmul.mubr.msk.f32.gmra.mrb[26].mxu0 %vm7117_vm3, %v7115_v8 }
 0x71d   : > { %7309 = vmatprep.mubr.f32.mxu0 %v8813_v13 }
 0x720   : > { %7902 = vmatmul.mubr.msk.f32.gmra.mrb[28].mxu0 %vm7117_vm3, %v7116_v57 }
 0x7d7   : > { %v7196_v52 = vpop.f32.mrb[14].mxu0 }
 0x7d8   : > { %v7198_v19 = vpop.f32.mrb[15].mxu0 }
 0x7d9   : > { %v7316_v17 = vadd.f32 %v7198_v19, %v7196_v52 }
 0x7db   : > { %7317 = vadd.xlane.f32.xlu0 %v7316_v17  ;;  %v7202_v21 = vpop.f32.mrb[16].mxu0 }
 0x7dc   : > { %v7204_v3 = vpop.f32.mrb[17].mxu0 }
 0x7dd   : > { %v7319_v18 = vadd.f32 %v7204_v3, %v7202_v21 }
 0x7df   : > { %7320 = vadd.xlane.f32.xlu1 %v7319_v18  ;;  %v7208_v59 = vpop.f32.mrb[18].mxu0 }
 0x7e0   : > { %v7210_v27 = vpop.f32.mrb[19].mxu0 }
 0x7e1   : > { %v7322_v25 = vadd.f32 %v7210_v27, %v7208_v59 }
 0x7e3   : > { %7323 = vadd.xlane.f32.xlu0 %v7322_v25  ;;  %v7214_v51 = vpop.f32.mrb[20].mxu0 }
 0x7e4   : > { %v7216_v28 = vpop.f32.mrb[21].mxu0 }
 0x7e5   : > { %v7325_v47 = vadd.f32 %v7216_v28, %v7214_v51 }
 0x7e7   : > { %7326 = vadd.xlane.f32.xlu0 %v7325_v47  ;;  %v7293_v30 = vpop.f32.mrb[22].mxu0 }
 0x7e8   : > { %v7295_v13 = vpop.f32.mrb[23].mxu0 }
 0x7e9   : > { %v7328_v4 = vadd.f32 %v7295_v13, %v7293_v30 }
 0x7eb   : > { %7329 = vadd.xlane.f32.xlu1 %v7328_v4  ;;  %v7299_v10 = vpop.f32.mrb[24].mxu0 }
 0x7ec   : > { %v7301_v48 = vpop.f32.mrb[25].mxu0 }
 0x7ed   : > { %v7331_v56 = vadd.f32 %v7301_v48, %v7299_v10 }
 0x7ef   : > { %7332 = vadd.xlane.f32.xlu0 %v7331_v56  ;;  %v7305_v2 = vpop.f32.mrb[26].mxu0 }
 0x7f0   : > { %v7307_v6 = vpop.f32.mrb[27].mxu0 }
 0x7f1   : > { %v7334_v60 = vadd.f32 %v7307_v6, %v7305_v2 }
 0x7f3   : > { %7335 = vadd.xlane.f32.xlu1 %v7334_v60  ;;  %v7311_v55 = vpop.f32.mrb[28].mxu0 }
 0x7f4   : > { %v7313_v53 = vpop.f32.mrb[29].mxu0 }
 0x7f5   : > { %v7337_v9 = vadd.f32 %v7313_v53, %v7311_v55 }
 0x7f7   : > { %7338 = vadd.xlane.f32.xlu0 %v7337_v9 }
 0x804   : > { %7433 = vperm.xlu1 %8390, %v7415_v42  }
 0x80d   : > { %7428 = vperm.xlu0 %8391, %v7414_v29  }
 0x868   : > { %v7318_v31 = vpop.xlane.xlu0 %7317 }
 0x869   : > { %v7340_v39 = vmul.f32 0.00390625, %v7318_v31 }
 0x86b   : > { %v7348_v32 = vmul.f32 %v7340_v39, %v7340_v39  ;;  %v7364_v47 = vsub.f32 %v7097_v14, %v7340_v39  ;;  %v7365_v30 = vsub.f32 %v7098_v49, %v7340_v39 }
 0x86c   : > { %v7321_v36 = vpop.xlane.xlu1 %7320 }
 0x86d   : > { %v7341_v11 = vmul.f32 0.00390625, %v7321_v36 }
 0x86f   : > { %v7349_v61 = vmul.f32 %v7341_v11, %v7341_v11  ;;  %v7366_v56 = vsub.f32 %v7099_v58, %v7341_v11  ;;  %v7367_v2 = vsub.f32 %v7100_v43, %v7341_v11 }
 0x870   : > { %v7324_v40 = vpop.xlane.xlu0 %7323 }
 0x871   : > { %v7342_v1 = vmul.f32 0.00390625, %v7324_v40 }
 0x873   : > { %v7350_v21 = vmul.f32 %v7342_v1, %v7342_v1  ;;  %v7368_v50 = vsub.f32 %v7101_v16, %v7342_v1  ;;  %v7369_v0 = vsub.f32 %v7102_v33, %v7342_v1 }
 0x874   : > { %v7327_v15 = vpop.xlane.xlu0 %7326 }
 0x875   : > { %v7343_v19 = vmul.f32 0.00390625, %v7327_v15 }
 0x877   : > { %v7351_v25 = vmul.f32 %v7343_v19, %v7343_v19  ;;  %v7370_v45 = vsub.f32 %v7103_v44, %v7343_v19  ;;  %v7371_v16 = vsub.f32 %v7104_v22, %v7343_v19 }
 0x878   : > { %v7330_v24 = vpop.xlane.xlu1 %7329 }
 0x879   : > { %v7344_v35 = vmul.f32 0.00390625, %v7330_v24 }
 0x87b   : > { %v7352_v26 = vsub.f32 %v7344_v35, %v7348_v32 }
 0x87c   : > { %v7333_v38 = vpop.xlane.xlu0 %7332 }
 0x87d   : > { %v7356_v37 = vadd.f32 1e-05, %v7352_v26  ;;  %v7345_v8 = vmul.f32 0.00390625, %v7333_v38 }
 0x87f   : > { %8796 = vrsqrt.f32 %v7356_v37  ;;  %v7353_v57 = vsub.f32 %v7345_v8, %v7349_v61 }
 0x880   : > { %v7336_v52 = vpop.xlane.xlu1 %7335 }
 0x881   : > { %v7357_v17 = vadd.f32 1e-05, %v7353_v57  ;;  %v7346_v3 = vmul.f32 0.00390625, %v7336_v52 }
 0x883   : > { %8798 = vrsqrt.f32 %v7357_v17  ;;  %v7354_v18 = vsub.f32 %v7346_v3, %v7350_v21 }
 0x884   : > { %v7339_v59 = vpop.xlane.xlu0 %7338  ;;  %v7434_v46 = vpop.permute.xlu1 %7433 }
 0x885   : > { %v7358_v27 = vadd.f32 1e-05, %v7354_v18  ;;  %v7347_v51 = vmul.f32 0.00390625, %v7339_v59 }
 0x887   : > { %8800 = vrsqrt.f32 %v7358_v27  ;;  %v7355_v28 = vsub.f32 %v7347_v51, %v7351_v25 }
 0x889   : > { %v8797_v13 = vpop.eup %8796  ;;  %v7359_v4 = vadd.f32 1e-05, %v7355_v28 }
 0x88a   : > { %v7372_v10 = vmul.f32 %v8797_v13, %v7364_v47  ;;  %v7373_v48 = vmul.f32 %v8797_v13, %v7365_v30 }
 0x88b   : > { %8802 = vrsqrt.f32 %v7359_v4 }
 0x88c   : > { %v7404_v6 = vmul.f32 %v7387_v12, %v7372_v10  ;;  %v7405_v60 = vmul.f32 %v7387_v12, %v7373_v48 }
 0x88d   : > { %v8799_v55 = vpop.eup %8798 }
 0x88e   : > { %v7436_v5 = vadd.f32 %v7419_v7, %v7404_v6  ;;  %v7437_v62 = vadd.f32 %v7419_v7, %v7405_v60  ;;  %v7374_v49 = vmul.f32 %v8799_v55, %v7366_v56  ;;  %v7375_v14 = vmul.f32 %v8799_v55, %v7367_v2  ;;  %v7429_v7 = vpop.permute.xlu0 %7428 }
 0x890   : > { %v7406_v58 = vmul.f32 %v7392_v34, %v7374_v49  ;;  %v7407_v43 = vmul.f32 %v7392_v34, %v7375_v14  ;;  %7444 = vst [vmem:[%s10853_s30] sm:$0xff] %v7436_v5  ;;  %7445 = vst [vmem:[%s10853_s30 + $0x8] sm:$0xff] %v7437_v62 }
 0x891   : > { %v8801_v53 = vpop.eup %8800 }
 0x892   : > { %v7438_v9 = vadd.f32 %v7424_v20, %v7406_v58  ;;  %v7439_v42 = vadd.f32 %v7424_v20, %v7407_v43  ;;  %v7376_v29 = vmul.f32 %v8801_v53, %v7368_v50  ;;  %v7377_v12 = vmul.f32 %v8801_v53, %v7369_v0 }
 0x894   : > { %v7408_v63 = vmul.f32 %v10837_v41, %v7376_v29  ;;  %v7409_v33 = vmul.f32 %v10837_v41, %v7377_v12  ;;  %7446 = vst [vmem:[%s10853_s30 + $0x10] sm:$0xff] %v7438_v9  ;;  %7447 = vst [vmem:[%s10853_s30 + $0x18] sm:$0xff] %v7439_v42 }
 0x895   : > { %v8803_v34 = vpop.eup %8802 }
 0x896   : > { %v7378_v31 = vmul.f32 %v8803_v34, %v7370_v45  ;;  %v7379_v20 = vmul.f32 %v8803_v34, %v7371_v16  ;;  %v7440_v40 = vadd.f32 %v7429_v7, %v7408_v63  ;;  %v7441_v36 = vadd.f32 %v7429_v7, %v7409_v33 }
 0x898   : > { %v7410_v23 = vmul.f32 %v10839_v54, %v7378_v31  ;;  %v7411_v44 = vmul.f32 %v10839_v54, %v7379_v20  ;;  %7448 = vst [vmem:[%s10853_s30 + $0x20] sm:$0xff] %v7440_v40  ;;  %7449 = vst [vmem:[%s10853_s30 + $0x28] sm:$0xff] %v7441_v36 }
 0x89a   : > { %v7442_v22 = vadd.f32 %v7434_v46, %v7410_v23  ;;  %v7443_v39 = vadd.f32 %v7434_v46, %v7411_v44 }
 0x89c   : > { %7450 = vst [vmem:[%s10853_s30 + $0x30] sm:$0xff] %v7442_v22  ;;  %7451 = vst [vmem:[%s10853_s30 + $0x38] sm:$0xff] %v7443_v39 }
 0x89d PF: > { %s20_s13 = sadd.s32 1, %s8810_s13  }
 0x89e   : > { %p17_p4 = scmp.ge.s32.totalorder %s20_s13, 4  }
 0x8a0   :  { %19 = sbr.rel (!%p17_p4) target bundleno = 1 (0x1), region = 142 }

</bundles_post_ra>
